<compile_context>
chip_gen: v6e
topology: v6e:2x2x1
jax: 0.10.0
libtpu: 0.0.40
codegen_flags: <defaults>
</compile_context>

<pallas_src>
import functools

import jax
import jax.numpy as jnp
from jax import lax
from jax.experimental import pallas as pl
from jax.experimental.pallas import tpu as pltpu

# ----------------------------- model dims -----------------------------------
MODEL_DIM = 64        # TimeSeriesTransformer model_dim
NUM_HEADS = 8
NUM_LAYERS = 3
FF_DIM = 128
TS_OUT = 32           # transformer head output (implied by 32+16+32+32 concat)
TXT_OUT = 16
CNN_OUT = 32
CNN_CH = 16           # small ResNet-style backbone channel width
IMG_CH = 3

_VMEM = pl.BlockSpec(memory_space=pltpu.MemorySpace.VMEM)


# ============================ small helpers ==================================

def _bdot(a, b):
    """MXU matmul: bf16 operands, f32 accumulation."""
    return jnp.dot(a.astype(jnp.bfloat16), b.astype(jnp.bfloat16),
                   preferred_element_type=jnp.float32)


def _layernorm(y, g, b, eps=1e-5):
    mu = jnp.mean(y, axis=-1, keepdims=True)
    var = jnp.mean((y - mu) ** 2, axis=-1, keepdims=True)
    return (y - mu) * lax.rsqrt(var + eps) * g + b


def sinusoidal_pe(seq_len, dim):
    pos = jnp.arange(seq_len, dtype=jnp.float32)[:, None]
    i = jnp.arange(dim // 2, dtype=jnp.float32)[None, :]
    angle = pos / jnp.power(10000.0, 2.0 * i / dim)
    pe = jnp.zeros((seq_len, dim), jnp.float32)
    pe = pe.at[:, 0::2].set(jnp.sin(angle))
    pe = pe.at[:, 1::2].set(jnp.cos(angle))
    return pe


# ===================== time-series transformer (1 kernel) ====================

def _ts_kernel(x_ref, pe_ref, inw_ref, inb_ref,
               wq_ref, bq_ref, wk_ref, bk_ref, wv_ref, bv_ref, wo_ref, bo_ref,
               g1_ref, be1_ref, w1_ref, b1_ref, w2_ref, b2_ref, g2_ref, be2_ref,
               outw_ref, outb_ref, o_ref, h_ref, *, batch, seq, num_heads):
    """One grid step = one fused post-norm encoder layer.  First step also does
    the input projection + positional encoding, last step pools + projects."""
    l = pl.program_id(0)

    @pl.when(l == 0)
    def _():
        xin = x_ref[...] * inw_ref[...] + inb_ref[...]                 # (B*S, D)
        xin = xin.reshape(batch, seq, -1) + pe_ref[...][None]
        h_ref[...] = xin.reshape(batch * seq, -1)

    x = h_ref[...]                                                     # (B*S, D)
    d = x.shape[-1]
    hd = d // num_heads
    scale = 1.0 / float(hd) ** 0.5

    # --- multi-head self attention (batched over B, heads unrolled) ---
    q = _bdot(x, wq_ref[0]) + bq_ref[0]
    k = _bdot(x, wk_ref[0]) + bk_ref[0]
    v = _bdot(x, wv_ref[0]) + bv_ref[0]
    q3 = q.reshape(batch, seq, d)
    k3 = k.reshape(batch, seq, d)
    v3 = v.reshape(batch, seq, d)
    ctx = []
    for h_i in range(num_heads):
        sl = slice(h_i * hd, (h_i + 1) * hd)
        qh, kh, vh = q3[:, :, sl], k3[:, :, sl], v3[:, :, sl]
        s = jnp.einsum("bqd,bkd->bqk", qh.astype(jnp.bfloat16),
                       kh.astype(jnp.bfloat16),
                       preferred_element_type=jnp.float32) * scale
        s = s - jnp.max(s, axis=-1, keepdims=True)
        p = jnp.exp(s)
        p = p * pl.reciprocal(jnp.sum(p, axis=-1, keepdims=True), approx=True)
        ctx.append(jnp.einsum("bqk,bkd->bqd", p.astype(jnp.bfloat16),
                              vh.astype(jnp.bfloat16),
                              preferred_element_type=jnp.float32))
    ctx = jnp.concatenate(ctx, axis=-1).reshape(batch * seq, d)
    attn = _bdot(ctx, wo_ref[0]) + bo_ref[0]

    # --- residual + post-LN, FFN(ReLU) + residual + post-LN (dropout = eval no-op)
    h1 = _layernorm(x + attn, g1_ref[0], be1_ref[0])
    ff = jnp.maximum(_bdot(h1, w1_ref[0]) + b1_ref[0], 0.0)
    ff = _bdot(ff, w2_ref[0]) + b2_ref[0]
    h2 = _layernorm(h1 + ff, g2_ref[0], be2_ref[0])
    h_ref[...] = h2

    @pl.when(l == pl.num_programs(0) - 1)
    def _():
        pooled = jnp.mean(h2.reshape(batch, seq, -1), axis=1)          # (B, D)
        o_ref[...] = _bdot(pooled, outw_ref[...]) + outb_ref[...]      # (B, 32)


def time_series_transformer(p, cgm):                    # cgm: (B, S)
    B, S = cgm.shape
    BS, D, FF, L = B * S, MODEL_DIM, FF_DIM, NUM_LAYERS
    x_col = cgm.reshape(BS, 1).astype(jnp.float32)      # unsqueeze(-1) + flatten

    def shared(shape):
        return pl.BlockSpec(shape, lambda l: (0,) * len(shape))

    def per_layer(shape):
        return pl.BlockSpec((1,) + shape[1:], lambda l: (l, 0, 0))

    in_specs = [
        shared((BS, 1)), shared((S, D)), shared((1, D)), shared((1, D)),
        per_layer((L, D, D)), per_layer((L, 1, D)),      # wq, bq
        per_layer((L, D, D)), per_layer((L, 1, D)),      # wk, bk
        per_layer((L, D, D)), per_layer((L, 1, D)),      # wv, bv
        per_layer((L, D, D)), per_layer((L, 1, D)),      # wo, bo
        per_layer((L, 1, D)), per_layer((L, 1, D)),      # ln1 g/b
        per_layer((L, D, FF)), per_layer((L, 1, FF)),    # w1, b1
        per_layer((L, FF, D)), per_layer((L, 1, D)),     # w2, b2
        per_layer((L, 1, D)), per_layer((L, 1, D)),      # ln2 g/b
        shared((D, TS_OUT)), shared((1, TS_OUT)),
    ]
    gs = pltpu.PrefetchScalarGridSpec(
        num_scalar_prefetch=0, grid=(L,), in_specs=in_specs,
        out_specs=pl.BlockSpec((B, TS_OUT), lambda l: (0, 0)),
        scratch_shapes=[pltpu.VMEM((BS, D), jnp.float32)])
    return pl.pallas_call(
        functools.partial(_ts_kernel, batch=B, seq=S, num_heads=NUM_HEADS),
        out_shape=jax.ShapeDtypeStruct((B, TS_OUT), jnp.float32),
        grid_spec=gs,
        compiler_params=pltpu.CompilerParams(dimension_semantics=("arbitrary",)),
    )(x_col, p["pe"], p["in_w"], p["in_b"],
      p["wq"], p["bq"], p["wk"], p["bk"], p["wv"], p["bv"], p["wo"], p["bo"],
      p["ln1_g"], p["ln1_b"], p["w1"], p["b1"], p["w2"], p["b2"],
      p["ln2_g"], p["ln2_b"], p["out_w"], p["out_b"])


# ===================== both CNN image branches (1 kernel) ====================

def _dual_resnet_kernel(img_ref, mask_ref, pool_ref,
                        stw_ref, sts_ref, stsh_ref,
                        aw_ref, asc_ref, ash_ref,
                        bw_ref, bsc_ref, bsh_ref,
                        fw_ref, fb_ref, o_ref, *, width):
    a0 = img_ref[0]                      # (C_in, B*H*W), channel-major, spatial on lanes
    masks = mask_ref[...]                # (9, B*H*W) tap-validity masks ('same' padding)

    def conv3x3(act, w, scale, shift, res=None):
        c = act.shape[0]
        taps, j = [], 0
        for oy in (-1, 0, 1):            # gather 3x3 neighborhood inside VMEM
            for ox in (-1, 0, 1):
                off = oy * width + ox
                if off > 0:
                    sh = jnp.concatenate(
                        [act[:, off:], jnp.zeros((c, off), act.dtype)], axis=1)
                elif off < 0:
                    sh = jnp.concatenate(
                        [jnp.zeros((c, -off), act.dtype), act[:, :off]], axis=1)
                else:
                    sh = act
                taps.append(sh * masks[j:j + 1, :])
                j += 1
        rhs = jnp.concatenate(taps, axis=0)                            # (9*C, N)
        out = jnp.dot(w.astype(jnp.bfloat16), rhs.astype(jnp.bfloat16),
                      preferred_element_type=jnp.float32)              # (C_out, N)
        out = out * scale + shift                                      # folded BatchNorm
        if res is not None:
            out = out + res
        return jnp.maximum(out, 0.0)

    h = conv3x3(a0, stw_ref[0], sts_ref[0], stsh_ref[0])               # stem conv
    y = conv3x3(h, aw_ref[0], asc_ref[0], ash_ref[0])                  # block conv a
    y = conv3x3(y, bw_ref[0], bsc_ref[0], bsh_ref[0], res=h)           # block conv b + residual
    # global average pool as an MXU matmul with the (B, B*H*W) pooling matrix
    pooled = lax.dot_general(pool_ref[...].astype(jnp.bfloat16),
                             y.astype(jnp.bfloat16),
                             (((1,), (1,)), ((), ())),
                             preferred_element_type=jnp.float32)       # (B, C_out)
    o_ref[0] = _bdot(pooled, fw_ref[0]) + fb_ref[0]                    # (B, 32)


def dual_resnet(p, img_bf, img_ln):
    # TODO(synk): torchvision ResNet source / pretrained weights not available; using
    # a small ResNet-style backbone (3x3 conv stem + one residual block, folded BN) +
    # global-avg-pool + Linear(., 32).  Both image branches fused, one per grid step.
    B, C, H, W = img_bf.shape
    n = B * H * W

    def cmajor(x):                       # NCHW -> (C, B*H*W)
        return jnp.transpose(x.astype(jnp.float32), (1, 0, 2, 3)).reshape(C, n)

    imgs = jnp.stack([cmajor(img_bf), cmajor(img_ln)], axis=0)         # (2, C, n)

    pos = jnp.arange(n)
    xx = pos % W
    yy = (pos // W) % H
    mask_rows = []
    for oy in (-1, 0, 1):
        for ox in (-1, 0, 1):
            mask_rows.append((yy + oy >= 0) & (yy + oy < H) &
                             (xx + ox >= 0) & (xx + ox < W))
    masks = jnp.stack(mask_rows, axis=0).astype(jnp.float32)           # (9, n)
    pool = (pos[None, :] // (H * W) == jnp.arange(B)[:, None]
            ).astype(jnp.float32) / float(H * W)                       # (B, n)

    def per_branch(shape):
        return pl.BlockSpec((1,) + shape[1:], lambda g: (g, 0, 0))

    def shared(shape):
        return pl.BlockSpec(shape, lambda g: (0,) * len(shape))

    in_specs = [
        per_branch(imgs.shape), shared(masks.shape), shared(pool.shape),
        per_branch(p["stem_w"].shape), per_branch(p["stem_s"].shape), per_branch(p["stem_sh"].shape),
        per_branch(p["b1a_w"].shape), per_branch(p["b1a_s"].shape), per_branch(p["b1a_sh"].shape),
        per_branch(p["b1b_w"].shape), per_branch(p["b1b_s"].shape), per_branch(p["b1b_sh"].shape),
        per_branch(p["fc_w"].shape), per_branch(p["fc_b"].shape),
    ]
    gs = pltpu.PrefetchScalarGridSpec(
        num_scalar_prefetch=0, grid=(2,), in_specs=in_specs,
        out_specs=pl.BlockSpec((1, B, CNN_OUT), lambda g: (g, 0, 0)))
    return pl.pallas_call(
        functools.partial(_dual_resnet_kernel, width=W),
        out_shape=jax.ShapeDtypeStruct((2, B, CNN_OUT), jnp.float32),
        grid_spec=gs,
        compiler_params=pltpu.CompilerParams(dimension_semantics=("parallel",)),
    )(imgs, masks, pool,
      p["stem_w"], p["stem_s"], p["stem_sh"],
      p["b1a_w"], p["b1a_s"], p["b1a_sh"],
      p["b1b_w"], p["b1b_s"], p["b1b_sh"],
      p["fc_w"], p["fc_b"])


# ============== fused head: text MLP + concat + fc_combined (1 kernel) =======

def _head_kernel(ts_ref, txt_ref, img_ref, w1_ref, b1_ref, w2_ref, b2_ref,
                 fc1w_ref, fc1b_ref, fc2w_ref, fc2b_ref, o_ref):
    # TODO(synk): TextTransformer source not provided; approximated as a 2-layer
    # MLP on the (seq-len-1) textual features projected down to 16 dims.
    t = jnp.maximum(_bdot(txt_ref[...], w1_ref[...]) + b1_ref[...], 0.0)
    txt16 = _bdot(t, w2_ref[...]) + b2_ref[...]                        # (B, 16)
    combined = jnp.concatenate(
        [ts_ref[...], txt16, img_ref[0], img_ref[1]], axis=1)          # (B, 112)
    h = jnp.maximum(_bdot(combined, fc1w_ref[...]) + fc1b_ref[...], 0.0)
    o_ref[...] = _bdot(h, fc2w_ref[...]) + fc2b_ref[...]               # (B, 1)


def fused_head(params, ts_out, textual, img_out):
    B = ts_out.shape[0]
    t = params["txt"]
    args = (ts_out, textual.astype(jnp.float32), img_out,
            t["w1"], t["b1"], t["w2"], t["b2"],
            params["fc1_w"], params["fc1_b"], params["fc2_w"], params["fc2_b"])
    return pl.pallas_call(
        _head_kernel,
        out_shape=jax.ShapeDtypeStruct((B, 1), jnp.float32),
        in_specs=[_VMEM] * len(args),
        out_specs=_VMEM,
    )(*args)


# ================================ forward ====================================

def forward(params, cgm_seq, textual, img_bf, img_ln):
    ts_out = time_series_transformer(params["ts"], cgm_seq)            # (B, 32)
    if textual.ndim == 3:    # mirrors torch's dim()==2 -> unsqueeze(1) handling
        textual = textual.reshape(textual.shape[0], -1)
    img_out = dual_resnet(params["cnn"], img_bf, img_ln)               # (2, B, 32)
    return fused_head(params, ts_out, textual, img_out)                # (B, 1)


# ============================ parameter init =================================

def _uniform(key, shape, fan_in, dtype=jnp.float32):
    bound = 1.0 / (fan_in ** 0.5)
    return jax.random.uniform(key, shape, jnp.float32, -bound, bound).astype(dtype)


def make_params(key, cgm_seq_len, textual_features):
    keys = iter(jax.random.split(key, 64))
    nxt = lambda: next(keys)
    L, D, FF = NUM_LAYERS, MODEL_DIM, FF_DIM
    bf16 = jnp.bfloat16
    zeros = lambda *s: jnp.zeros(s, jnp.float32)

    ts = {
        "pe": sinusoidal_pe(cgm_seq_len, D),                            # precomputed PE
        "in_w": _uniform(nxt(), (1, D), 1), "in_b": zeros(1, D),
        "wq": _uniform(nxt(), (L, D, D), D, bf16), "bq": zeros(L, 1, D),
        "wk": _uniform(nxt(), (L, D, D), D, bf16), "bk": zeros(L, 1, D),
        "wv": _uniform(nxt(), (L, D, D), D, bf16), "bv": zeros(L, 1, D),
        "wo": _uniform(nxt(), (L, D, D), D, bf16), "bo": zeros(L, 1, D),
        "ln1_g": jnp.ones((L, 1, D), jnp.float32), "ln1_b": zeros(L, 1, D),
        "w1": _uniform(nxt(), (L, D, FF), D, bf16), "b1": zeros(L, 1, FF),
        "w2": _uniform(nxt(), (L, FF, D), FF, bf16), "b2": zeros(L, 1, D),
        "ln2_g": jnp.ones((L, 1, D), jnp.float32), "ln2_b": zeros(L, 1, D),
        "out_w": _uniform(nxt(), (D, TS_OUT), D, bf16), "out_b": zeros(1, TS_OUT),
    }

    def conv_bn(k, cin, cout):           # stacked over the 2 branches: [bf, ln]
        k1, k2, k3 = jax.random.split(k, 3)
        w = _uniform(k1, (2, cout, 9 * cin), 9 * cin, bf16)   # (branch, Cout, 9*Cin)
        gamma = 1.0 + 0.1 * jax.random.normal(k2, (2, cout, 1), jnp.float32)
        beta = 0.1 * jax.random.normal(k3, (2, cout, 1), jnp.float32)
        mean = jnp.zeros((2, cout, 1), jnp.float32)
        var = jnp.ones((2, cout, 1), jnp.float32)
        scale = gamma / jnp.sqrt(var + 1e-5)                  # BN folded (eval mode)
        shift = beta - mean * scale
        return w, scale, shift

    cnn = {}
    cnn["stem_w"], cnn["stem_s"], cnn["stem_sh"] = conv_bn(nxt(), IMG_CH, CNN_CH)
    cnn["b1a_w"], cnn["b1a_s"], cnn["b1a_sh"] = conv_bn(nxt(), CNN_CH, CNN_CH)
    cnn["b1b_w"], cnn["b1b_s"], cnn["b1b_sh"] = conv_bn(nxt(), CNN_CH, CNN_CH)
    cnn["fc_w"] = _uniform(nxt(), (2, CNN_CH, CNN_OUT), CNN_CH, bf16)
    cnn["fc_b"] = zeros(2, 1, CNN_OUT)

    params = {
        "ts": ts,
        "cnn": cnn,
        "txt": {
            "w1": _uniform(nxt(), (textual_features, 64), textual_features, bf16),
            "b1": zeros(1, 64),
            "w2": _uniform(nxt(), (64, TXT_OUT), 64, bf16),
            "b2": zeros(1, TXT_OUT),
        },
        "fc1_w": _uniform(nxt(), (TS_OUT + TXT_OUT + 2 * CNN_OUT, 64),
                          TS_OUT + TXT_OUT + 2 * CNN_OUT, bf16),
        "fc1_b": zeros(1, 64),
        "fc2_w": _uniform(nxt(), (64, 1), 64, bf16),
        "fc2_b": zeros(1, 1),
    }
    return params


# ================================= main ======================================

if __name__ == "__main__":
    key = jax.random.PRNGKey(0)
    k1, k2, k3, k4, kp = jax.random.split(key, 5)

    B, S, F = 2, 8, 16                   # batch, cgm_seq_len, textual_features
    H = W = 16
    cgm_seq = jax.random.normal(k1, (B, S), jnp.float32)
    textual = jax.random.normal(k2, (B, F), jnp.float32)
    img_bf = jax.random.normal(k3, (B, IMG_CH, H, W), jnp.float32)   # PyTorch NCHW
    img_ln = jax.random.normal(k4, (B, IMG_CH, H, W), jnp.float32)

    params = make_params(kp, S, F)
    fwd = jax.jit(forward)
    out = jax.block_until_ready(fwd(params, cgm_seq, textual, img_bf, img_ln))
    assert out.shape == (B, 1) and out.dtype == jnp.float32
    print("KERNEL_OK")
</pallas_src>

<mosaic_0001>
module attributes {stable_mosaic.version = 11 : i64} {
  func.func @_dual_resnet_kernel(%arg0: i32, %arg1: memref<1x3x512xf32, #tpu.memory_space<vmem>>, %arg2: memref<9x512xf32, #tpu.memory_space<vmem>>, %arg3: memref<2x512xf32, #tpu.memory_space<vmem>>, %arg4: memref<1x16x27xbf16, #tpu.memory_space<vmem>>, %arg5: memref<1x16x1xf32, #tpu.memory_space<vmem>>, %arg6: memref<1x16x1xf32, #tpu.memory_space<vmem>>, %arg7: memref<1x16x144xbf16, #tpu.memory_space<vmem>>, %arg8: memref<1x16x1xf32, #tpu.memory_space<vmem>>, %arg9: memref<1x16x1xf32, #tpu.memory_space<vmem>>, %arg10: memref<1x16x144xbf16, #tpu.memory_space<vmem>>, %arg11: memref<1x16x1xf32, #tpu.memory_space<vmem>>, %arg12: memref<1x16x1xf32, #tpu.memory_space<vmem>>, %arg13: memref<1x16x32xbf16, #tpu.memory_space<vmem>>, %arg14: memref<1x1x32xf32, #tpu.memory_space<vmem>>, %arg15: memref<1x2x32xf32, #tpu.memory_space<vmem>>) attributes {dimension_semantics = [#tpu.dimension_semantics<parallel>], iteration_bounds = array<i64: 2>, scalar_prefetch = 0 : i64, scratch_operands = 0 : i64, tpu.core_type = #tpu.core_type<tc>, window_params = [{transform_indices = @transform_0, window_bounds = array<i64: 1, 3, 512>}, {pipeline_mode = #tpu.pipeline_mode<synchronous>, transform_indices = @transform_1, window_bounds = array<i64: 9, 512>}, {pipeline_mode = #tpu.pipeline_mode<synchronous>, transform_indices = @transform_2, window_bounds = array<i64: 2, 512>}, {transform_indices = @transform_3, window_bounds = array<i64: 1, 16, 27>}, {transform_indices = @transform_4, window_bounds = array<i64: 1, 16, 1>}, {transform_indices = @transform_5, window_bounds = array<i64: 1, 16, 1>}, {transform_indices = @transform_6, window_bounds = array<i64: 1, 16, 144>}, {transform_indices = @transform_7, window_bounds = array<i64: 1, 16, 1>}, {transform_indices = @transform_8, window_bounds = array<i64: 1, 16, 1>}, {transform_indices = @transform_9, window_bounds = array<i64: 1, 16, 144>}, {transform_indices = @transform_10, window_bounds = array<i64: 1, 16, 1>}, {transform_indices = @transform_11, window_bounds = array<i64: 1, 16, 1>}, {transform_indices = @transform_12, window_bounds = array<i64: 1, 16, 32>}, {transform_indices = @transform_13, window_bounds = array<i64: 1, 1, 32>}, {transform_indices = @transform_14, window_bounds = array<i64: 1, 2, 32>}]} {
    %c0 = arith.constant 0 : index
    %c0_0 = arith.constant 0 : index
    %c0_1 = arith.constant 0 : index
    %0 = vector.load %arg1[%c0, %c0_0, %c0_1] : memref<1x3x512xf32, #tpu.memory_space<vmem>>, vector<1x3x512xf32>
    %1 = vector.shape_cast %0 : vector<1x3x512xf32> to vector<3x512xf32>
    %c0_2 = arith.constant 0 : index
    %c0_3 = arith.constant 0 : index
    %2 = vector.load %arg2[%c0_2, %c0_3] : memref<9x512xf32, #tpu.memory_space<vmem>>, vector<9x512xf32>
    %c0_4 = arith.constant 0 : index
    %c0_5 = arith.constant 0 : index
    %c0_6 = arith.constant 0 : index
    %3 = vector.load %arg4[%c0_4, %c0_5, %c0_6] : memref<1x16x27xbf16, #tpu.memory_space<vmem>>, vector<1x16x27xbf16>
    %4 = vector.shape_cast %3 : vector<1x16x27xbf16> to vector<16x27xbf16>
    %c0_7 = arith.constant 0 : index
    %c0_8 = arith.constant 0 : index
    %c0_9 = arith.constant 0 : index
    %5 = vector.load %arg5[%c0_7, %c0_8, %c0_9] : memref<1x16x1xf32, #tpu.memory_space<vmem>>, vector<1x16x1xf32>
    %6 = vector.shape_cast %5 : vector<1x16x1xf32> to vector<16x1xf32>
    %c0_10 = arith.constant 0 : index
    %c0_11 = arith.constant 0 : index
    %c0_12 = arith.constant 0 : index
    %7 = vector.load %arg6[%c0_10, %c0_11, %c0_12] : memref<1x16x1xf32, #tpu.memory_space<vmem>>, vector<1x16x1xf32>
    %8 = vector.shape_cast %7 : vector<1x16x1xf32> to vector<16x1xf32>
    %cst = arith.constant 0.000000e+00 : f32
    %9 = vector.broadcast %cst : f32 to vector<3x17xf32>
    %10 = vector.extract_strided_slice %1 {offsets = [0, 0], sizes = [3, 495], strides = [1, 1]} : vector<3x512xf32> to vector<3x495xf32>
    %11 = tpu.concatenate %9, %10 in 1 : vector<3x17xf32>, vector<3x495xf32> -> vector<3x512xf32>
    %12 = vector.extract_strided_slice %2 {offsets = [0, 0], sizes = [1, 512], strides = [1, 1]} : vector<9x512xf32> to vector<1x512xf32>
    %13 = vector.broadcast %12 : vector<1x512xf32> to vector<3x512xf32>
    %14 = arith.mulf %11, %13 : vector<3x512xf32>
    %cst_13 = arith.constant 0.000000e+00 : f32
    %15 = vector.broadcast %cst_13 : f32 to vector<3x16xf32>
    %16 = vector.extract_strided_slice %1 {offsets = [0, 0], sizes = [3, 496], strides = [1, 1]} : vector<3x512xf32> to vector<3x496xf32>
    %17 = tpu.concatenate %15, %16 in 1 : vector<3x16xf32>, vector<3x496xf32> -> vector<3x512xf32>
    %18 = vector.extract_strided_slice %2 {offsets = [1, 0], sizes = [1, 512], strides = [1, 1]} : vector<9x512xf32> to vector<1x512xf32>
    %19 = vector.broadcast %18 : vector<1x512xf32> to vector<3x512xf32>
    %20 = arith.mulf %17, %19 : vector<3x512xf32>
    %cst_14 = arith.constant 0.000000e+00 : f32
    %21 = vector.broadcast %cst_14 : f32 to vector<3x15xf32>
    %22 = vector.extract_strided_slice %1 {offsets = [0, 0], sizes = [3, 497], strides = [1, 1]} : vector<3x512xf32> to vector<3x497xf32>
    %23 = tpu.concatenate %21, %22 in 1 : vector<3x15xf32>, vector<3x497xf32> -> vector<3x512xf32>
    %24 = vector.extract_strided_slice %2 {offsets = [2, 0], sizes = [1, 512], strides = [1, 1]} : vector<9x512xf32> to vector<1x512xf32>
    %25 = vector.broadcast %24 : vector<1x512xf32> to vector<3x512xf32>
    %26 = arith.mulf %23, %25 : vector<3x512xf32>
    %cst_15 = arith.constant 0.000000e+00 : f32
    %27 = vector.broadcast %cst_15 : f32 to vector<3x1xf32>
    %28 = vector.extract_strided_slice %1 {offsets = [0, 0], sizes = [3, 511], strides = [1, 1]} : vector<3x512xf32> to vector<3x511xf32>
    %29 = tpu.concatenate %27, %28 in 1 : vector<3x1xf32>, vector<3x511xf32> -> vector<3x512xf32>
    %30 = vector.extract_strided_slice %2 {offsets = [3, 0], sizes = [1, 512], strides = [1, 1]} : vector<9x512xf32> to vector<1x512xf32>
    %31 = vector.broadcast %30 : vector<1x512xf32> to vector<3x512xf32>
    %32 = arith.mulf %29, %31 : vector<3x512xf32>
    %33 = vector.extract_strided_slice %2 {offsets = [4, 0], sizes = [1, 512], strides = [1, 1]} : vector<9x512xf32> to vector<1x512xf32>
    %34 = vector.broadcast %33 : vector<1x512xf32> to vector<3x512xf32>
    %35 = arith.mulf %1, %34 : vector<3x512xf32>
    %36 = vector.extract_strided_slice %1 {offsets = [0, 1], sizes = [3, 511], strides = [1, 1]} : vector<3x512xf32> to vector<3x511xf32>
    %cst_16 = arith.constant 0.000000e+00 : f32
    %37 = vector.broadcast %cst_16 : f32 to vector<3x1xf32>
    %38 = tpu.concatenate %36, %37 in 1 : vector<3x511xf32>, vector<3x1xf32> -> vector<3x512xf32>
    %39 = vector.extract_strided_slice %2 {offsets = [5, 0], sizes = [1, 512], strides = [1, 1]} : vector<9x512xf32> to vector<1x512xf32>
    %40 = vector.broadcast %39 : vector<1x512xf32> to vector<3x512xf32>
    %41 = arith.mulf %38, %40 : vector<3x512xf32>
    %42 = vector.extract_strided_slice %1 {offsets = [0, 15], sizes = [3, 497], strides = [1, 1]} : vector<3x512xf32> to vector<3x497xf32>
    %cst_17 = arith.constant 0.000000e+00 : f32
    %43 = vector.broadcast %cst_17 : f32 to vector<3x15xf32>
    %44 = tpu.concatenate %42, %43 in 1 : vector<3x497xf32>, vector<3x15xf32> -> vector<3x512xf32>
    %45 = vector.extract_strided_slice %2 {offsets = [6, 0], sizes = [1, 512], strides = [1, 1]} : vector<9x512xf32> to vector<1x512xf32>
    %46 = vector.broadcast %45 : vector<1x512xf32> to vector<3x512xf32>
    %47 = arith.mulf %44, %46 : vector<3x512xf32>
    %48 = vector.extract_strided_slice %1 {offsets = [0, 16], sizes = [3, 496], strides = [1, 1]} : vector<3x512xf32> to vector<3x496xf32>
    %cst_18 = arith.constant 0.000000e+00 : f32
    %49 = vector.broadcast %cst_18 : f32 to vector<3x16xf32>
    %50 = tpu.concatenate %48, %49 in 1 : vector<3x496xf32>, vector<3x16xf32> -> vector<3x512xf32>
    %51 = vector.extract_strided_slice %2 {offsets = [7, 0], sizes = [1, 512], strides = [1, 1]} : vector<9x512xf32> to vector<1x512xf32>
    %52 = vector.broadcast %51 : vector<1x512xf32> to vector<3x512xf32>
    %53 = arith.mulf %50, %52 : vector<3x512xf32>
    %54 = vector.extract_strided_slice %1 {offsets = [0, 17], sizes = [3, 495], strides = [1, 1]} : vector<3x512xf32> to vector<3x495xf32>
    %cst_19 = arith.constant 0.000000e+00 : f32
    %55 = vector.broadcast %cst_19 : f32 to vector<3x17xf32>
    %56 = tpu.concatenate %54, %55 in 1 : vector<3x495xf32>, vector<3x17xf32> -> vector<3x512xf32>
    %57 = vector.extract_strided_slice %2 {offsets = [8, 0], sizes = [1, 512], strides = [1, 1]} : vector<9x512xf32> to vector<1x512xf32>
    %58 = vector.broadcast %57 : vector<1x512xf32> to vector<3x512xf32>
    %59 = arith.mulf %56, %58 : vector<3x512xf32>
    %60 = tpu.concatenate %14, %20, %26, %32, %35, %41, %47, %53, %59 in 0 : vector<3x512xf32>, vector<3x512xf32>, vector<3x512xf32>, vector<3x512xf32>, vector<3x512xf32>, vector<3x512xf32>, vector<3x512xf32>, vector<3x512xf32>, vector<3x512xf32> -> vector<27x512xf32>
    %61 = arith.truncf %60 : vector<27x512xf32> to vector<27x512xbf16>
    %cst_20 = arith.constant dense<0.000000e+00> : vector<16x512xf32>
    %62 = tpu.matmul %4, %61, %cst_20 {dimension_numbers = #tpu.dot_dimension_numbers<[1], [0], [0], [1], [0, 0, 1, 1], [], []>} : vector<16x27xbf16>, vector<27x512xbf16>, vector<16x512xf32> -> vector<16x512xf32>
    %63 = vector.broadcast %6 : vector<16x1xf32> to vector<16x512xf32>
    %64 = arith.mulf %62, %63 : vector<16x512xf32>
    %65 = vector.broadcast %8 : vector<16x1xf32> to vector<16x512xf32>
    %66 = arith.addf %64, %65 : vector<16x512xf32>
    %cst_21 = arith.constant 0.000000e+00 : f32
    %67 = vector.broadcast %cst_21 : f32 to vector<16x512xf32>
    %68 = arith.maximumf %66, %67 : vector<16x512xf32>
    %c0_22 = arith.constant 0 : index
    %c0_23 = arith.constant 0 : index
    %c0_24 = arith.constant 0 : index
    %69 = vector.load %arg7[%c0_22, %c0_23, %c0_24] : memref<1x16x144xbf16, #tpu.memory_space<vmem>>, vector<1x16x144xbf16>
    %70 = vector.shape_cast %69 : vector<1x16x144xbf16> to vector<16x144xbf16>
    %c0_25 = arith.constant 0 : index
    %c0_26 = arith.constant 0 : index
    %c0_27 = arith.constant 0 : index
    %71 = vector.load %arg8[%c0_25, %c0_26, %c0_27] : memref<1x16x1xf32, #tpu.memory_space<vmem>>, vector<1x16x1xf32>
    %72 = vector.shape_cast %71 : vector<1x16x1xf32> to vector<16x1xf32>
    %c0_28 = arith.constant 0 : index
    %c0_29 = arith.constant 0 : index
    %c0_30 = arith.constant 0 : index
    %73 = vector.load %arg9[%c0_28, %c0_29, %c0_30] : memref<1x16x1xf32, #tpu.memory_space<vmem>>, vector<1x16x1xf32>
    %74 = vector.shape_cast %73 : vector<1x16x1xf32> to vector<16x1xf32>
    %cst_31 = arith.constant 0.000000e+00 : f32
    %75 = vector.broadcast %cst_31 : f32 to vector<16x17xf32>
    %76 = vector.extract_strided_slice %68 {offsets = [0, 0], sizes = [16, 495], strides = [1, 1]} : vector<16x512xf32> to vector<16x495xf32>
    %77 = tpu.concatenate %75, %76 in 1 : vector<16x17xf32>, vector<16x495xf32> -> vector<16x512xf32>
    %78 = vector.extract_strided_slice %2 {offsets = [0, 0], sizes = [1, 512], strides = [1, 1]} : vector<9x512xf32> to vector<1x512xf32>
    %79 = vector.broadcast %78 : vector<1x512xf32> to vector<16x512xf32>
    %80 = arith.mulf %77, %79 : vector<16x512xf32>
    %cst_32 = arith.constant 0.000000e+00 : f32
    %81 = vector.broadcast %cst_32 : f32 to vector<16x16xf32>
    %82 = vector.extract_strided_slice %68 {offsets = [0, 0], sizes = [16, 496], strides = [1, 1]} : vector<16x512xf32> to vector<16x496xf32>
    %83 = tpu.concatenate %81, %82 in 1 : vector<16x16xf32>, vector<16x496xf32> -> vector<16x512xf32>
    %84 = vector.extract_strided_slice %2 {offsets = [1, 0], sizes = [1, 512], strides = [1, 1]} : vector<9x512xf32> to vector<1x512xf32>
    %85 = vector.broadcast %84 : vector<1x512xf32> to vector<16x512xf32>
    %86 = arith.mulf %83, %85 : vector<16x512xf32>
    %cst_33 = arith.constant 0.000000e+00 : f32
    %87 = vector.broadcast %cst_33 : f32 to vector<16x15xf32>
    %88 = vector.extract_strided_slice %68 {offsets = [0, 0], sizes = [16, 497], strides = [1, 1]} : vector<16x512xf32> to vector<16x497xf32>
    %89 = tpu.concatenate %87, %88 in 1 : vector<16x15xf32>, vector<16x497xf32> -> vector<16x512xf32>
    %90 = vector.extract_strided_slice %2 {offsets = [2, 0], sizes = [1, 512], strides = [1, 1]} : vector<9x512xf32> to vector<1x512xf32>
    %91 = vector.broadcast %90 : vector<1x512xf32> to vector<16x512xf32>
    %92 = arith.mulf %89, %91 : vector<16x512xf32>
    %cst_34 = arith.constant 0.000000e+00 : f32
    %93 = vector.broadcast %cst_34 : f32 to vector<16x1xf32>
    %94 = vector.extract_strided_slice %68 {offsets = [0, 0], sizes = [16, 511], strides = [1, 1]} : vector<16x512xf32> to vector<16x511xf32>
    %95 = tpu.concatenate %93, %94 in 1 : vector<16x1xf32>, vector<16x511xf32> -> vector<16x512xf32>
    %96 = vector.extract_strided_slice %2 {offsets = [3, 0], sizes = [1, 512], strides = [1, 1]} : vector<9x512xf32> to vector<1x512xf32>
    %97 = vector.broadcast %96 : vector<1x512xf32> to vector<16x512xf32>
    %98 = arith.mulf %95, %97 : vector<16x512xf32>
    %99 = vector.extract_strided_slice %2 {offsets = [4, 0], sizes = [1, 512], strides = [1, 1]} : vector<9x512xf32> to vector<1x512xf32>
    %100 = vector.broadcast %99 : vector<1x512xf32> to vector<16x512xf32>
    %101 = arith.mulf %68, %100 : vector<16x512xf32>
    %102 = vector.extract_strided_slice %68 {offsets = [0, 1], sizes = [16, 511], strides = [1, 1]} : vector<16x512xf32> to vector<16x511xf32>
    %cst_35 = arith.constant 0.000000e+00 : f32
    %103 = vector.broadcast %cst_35 : f32 to vector<16x1xf32>
    %104 = tpu.concatenate %102, %103 in 1 : vector<16x511xf32>, vector<16x1xf32> -> vector<16x512xf32>
    %105 = vector.extract_strided_slice %2 {offsets = [5, 0], sizes = [1, 512], strides = [1, 1]} : vector<9x512xf32> to vector<1x512xf32>
    %106 = vector.broadcast %105 : vector<1x512xf32> to vector<16x512xf32>
    %107 = arith.mulf %104, %106 : vector<16x512xf32>
    %108 = vector.extract_strided_slice %68 {offsets = [0, 15], sizes = [16, 497], strides = [1, 1]} : vector<16x512xf32> to vector<16x497xf32>
    %cst_36 = arith.constant 0.000000e+00 : f32
    %109 = vector.broadcast %cst_36 : f32 to vector<16x15xf32>
    %110 = tpu.concatenate %108, %109 in 1 : vector<16x497xf32>, vector<16x15xf32> -> vector<16x512xf32>
    %111 = vector.extract_strided_slice %2 {offsets = [6, 0], sizes = [1, 512], strides = [1, 1]} : vector<9x512xf32> to vector<1x512xf32>
    %112 = vector.broadcast %111 : vector<1x512xf32> to vector<16x512xf32>
    %113 = arith.mulf %110, %112 : vector<16x512xf32>
    %114 = vector.extract_strided_slice %68 {offsets = [0, 16], sizes = [16, 496], strides = [1, 1]} : vector<16x512xf32> to vector<16x496xf32>
    %cst_37 = arith.constant 0.000000e+00 : f32
    %115 = vector.broadcast %cst_37 : f32 to vector<16x16xf32>
    %116 = tpu.concatenate %114, %115 in 1 : vector<16x496xf32>, vector<16x16xf32> -> vector<16x512xf32>
    %117 = vector.extract_strided_slice %2 {offsets = [7, 0], sizes = [1, 512], strides = [1, 1]} : vector<9x512xf32> to vector<1x512xf32>
    %118 = vector.broadcast %117 : vector<1x512xf32> to vector<16x512xf32>
    %119 = arith.mulf %116, %118 : vector<16x512xf32>
    %120 = vector.extract_strided_slice %68 {offsets = [0, 17], sizes = [16, 495], strides = [1, 1]} : vector<16x512xf32> to vector<16x495xf32>
    %cst_38 = arith.constant 0.000000e+00 : f32
    %121 = vector.broadcast %cst_38 : f32 to vector<16x17xf32>
    %122 = tpu.concatenate %120, %121 in 1 : vector<16x495xf32>, vector<16x17xf32> -> vector<16x512xf32>
    %123 = vector.extract_strided_slice %2 {offsets = [8, 0], sizes = [1, 512], strides = [1, 1]} : vector<9x512xf32> to vector<1x512xf32>
    %124 = vector.broadcast %123 : vector<1x512xf32> to vector<16x512xf32>
    %125 = arith.mulf %122, %124 : vector<16x512xf32>
    %126 = tpu.concatenate %80, %86, %92, %98, %101, %107, %113, %119, %125 in 0 : vector<16x512xf32>, vector<16x512xf32>, vector<16x512xf32>, vector<16x512xf32>, vector<16x512xf32>, vector<16x512xf32>, vector<16x512xf32>, vector<16x512xf32>, vector<16x512xf32> -> vector<144x512xf32>
    %127 = arith.truncf %126 : vector<144x512xf32> to vector<144x512xbf16>
    %cst_39 = arith.constant dense<0.000000e+00> : vector<16x512xf32>
    %128 = tpu.matmul %70, %127, %cst_39 {dimension_numbers = #tpu.dot_dimension_numbers<[1], [0], [0], [1], [0, 0, 1, 1], [], []>} : vector<16x144xbf16>, vector<144x512xbf16>, vector<16x512xf32> -> vector<16x512xf32>
    %129 = vector.broadcast %72 : vector<16x1xf32> to vector<16x512xf32>
    %130 = arith.mulf %128, %129 : vector<16x512xf32>
    %131 = vector.broadcast %74 : vector<16x1xf32> to vector<16x512xf32>
    %132 = arith.addf %130, %131 : vector<16x512xf32>
    %cst_40 = arith.constant 0.000000e+00 : f32
    %133 = vector.broadcast %cst_40 : f32 to vector<16x512xf32>
    %134 = arith.maximumf %132, %133 : vector<16x512xf32>
    %c0_41 = arith.constant 0 : index
    %c0_42 = arith.constant 0 : index
    %c0_43 = arith.constant 0 : index
    %135 = vector.load %arg10[%c0_41, %c0_42, %c0_43] : memref<1x16x144xbf16, #tpu.memory_space<vmem>>, vector<1x16x144xbf16>
    %136 = vector.shape_cast %135 : vector<1x16x144xbf16> to vector<16x144xbf16>
    %c0_44 = arith.constant 0 : index
    %c0_45 = arith.constant 0 : index
    %c0_46 = arith.constant 0 : index
    %137 = vector.load %arg11[%c0_44, %c0_45, %c0_46] : memref<1x16x1xf32, #tpu.memory_space<vmem>>, vector<1x16x1xf32>
    %138 = vector.shape_cast %137 : vector<1x16x1xf32> to vector<16x1xf32>
    %c0_47 = arith.constant 0 : index
    %c0_48 = arith.constant 0 : index
    %c0_49 = arith.constant 0 : index
    %139 = vector.load %arg12[%c0_47, %c0_48, %c0_49] : memref<1x16x1xf32, #tpu.memory_space<vmem>>, vector<1x16x1xf32>
    %140 = vector.shape_cast %139 : vector<1x16x1xf32> to vector<16x1xf32>
    %cst_50 = arith.constant 0.000000e+00 : f32
    %141 = vector.broadcast %cst_50 : f32 to vector<16x17xf32>
    %142 = vector.extract_strided_slice %134 {offsets = [0, 0], sizes = [16, 495], strides = [1, 1]} : vector<16x512xf32> to vector<16x495xf32>
    %143 = tpu.concatenate %141, %142 in 1 : vector<16x17xf32>, vector<16x495xf32> -> vector<16x512xf32>
    %144 = vector.extract_strided_slice %2 {offsets = [0, 0], sizes = [1, 512], strides = [1, 1]} : vector<9x512xf32> to vector<1x512xf32>
    %145 = vector.broadcast %144 : vector<1x512xf32> to vector<16x512xf32>
    %146 = arith.mulf %143, %145 : vector<16x512xf32>
    %cst_51 = arith.constant 0.000000e+00 : f32
    %147 = vector.broadcast %cst_51 : f32 to vector<16x16xf32>
    %148 = vector.extract_strided_slice %134 {offsets = [0, 0], sizes = [16, 496], strides = [1, 1]} : vector<16x512xf32> to vector<16x496xf32>
    %149 = tpu.concatenate %147, %148 in 1 : vector<16x16xf32>, vector<16x496xf32> -> vector<16x512xf32>
    %150 = vector.extract_strided_slice %2 {offsets = [1, 0], sizes = [1, 512], strides = [1, 1]} : vector<9x512xf32> to vector<1x512xf32>
    %151 = vector.broadcast %150 : vector<1x512xf32> to vector<16x512xf32>
    %152 = arith.mulf %149, %151 : vector<16x512xf32>
    %cst_52 = arith.constant 0.000000e+00 : f32
    %153 = vector.broadcast %cst_52 : f32 to vector<16x15xf32>
    %154 = vector.extract_strided_slice %134 {offsets = [0, 0], sizes = [16, 497], strides = [1, 1]} : vector<16x512xf32> to vector<16x497xf32>
    %155 = tpu.concatenate %153, %154 in 1 : vector<16x15xf32>, vector<16x497xf32> -> vector<16x512xf32>
    %156 = vector.extract_strided_slice %2 {offsets = [2, 0], sizes = [1, 512], strides = [1, 1]} : vector<9x512xf32> to vector<1x512xf32>
    %157 = vector.broadcast %156 : vector<1x512xf32> to vector<16x512xf32>
    %158 = arith.mulf %155, %157 : vector<16x512xf32>
    %cst_53 = arith.constant 0.000000e+00 : f32
    %159 = vector.broadcast %cst_53 : f32 to vector<16x1xf32>
    %160 = vector.extract_strided_slice %134 {offsets = [0, 0], sizes = [16, 511], strides = [1, 1]} : vector<16x512xf32> to vector<16x511xf32>
    %161 = tpu.concatenate %159, %160 in 1 : vector<16x1xf32>, vector<16x511xf32> -> vector<16x512xf32>
    %162 = vector.extract_strided_slice %2 {offsets = [3, 0], sizes = [1, 512], strides = [1, 1]} : vector<9x512xf32> to vector<1x512xf32>
    %163 = vector.broadcast %162 : vector<1x512xf32> to vector<16x512xf32>
    %164 = arith.mulf %161, %163 : vector<16x512xf32>
    %165 = vector.extract_strided_slice %2 {offsets = [4, 0], sizes = [1, 512], strides = [1, 1]} : vector<9x512xf32> to vector<1x512xf32>
    %166 = vector.broadcast %165 : vector<1x512xf32> to vector<16x512xf32>
    %167 = arith.mulf %134, %166 : vector<16x512xf32>
    %168 = vector.extract_strided_slice %134 {offsets = [0, 1], sizes = [16, 511], strides = [1, 1]} : vector<16x512xf32> to vector<16x511xf32>
    %cst_54 = arith.constant 0.000000e+00 : f32
    %169 = vector.broadcast %cst_54 : f32 to vector<16x1xf32>
    %170 = tpu.concatenate %168, %169 in 1 : vector<16x511xf32>, vector<16x1xf32> -> vector<16x512xf32>
    %171 = vector.extract_strided_slice %2 {offsets = [5, 0], sizes = [1, 512], strides = [1, 1]} : vector<9x512xf32> to vector<1x512xf32>
    %172 = vector.broadcast %171 : vector<1x512xf32> to vector<16x512xf32>
    %173 = arith.mulf %170, %172 : vector<16x512xf32>
    %174 = vector.extract_strided_slice %134 {offsets = [0, 15], sizes = [16, 497], strides = [1, 1]} : vector<16x512xf32> to vector<16x497xf32>
    %cst_55 = arith.constant 0.000000e+00 : f32
    %175 = vector.broadcast %cst_55 : f32 to vector<16x15xf32>
    %176 = tpu.concatenate %174, %175 in 1 : vector<16x497xf32>, vector<16x15xf32> -> vector<16x512xf32>
    %177 = vector.extract_strided_slice %2 {offsets = [6, 0], sizes = [1, 512], strides = [1, 1]} : vector<9x512xf32> to vector<1x512xf32>
    %178 = vector.broadcast %177 : vector<1x512xf32> to vector<16x512xf32>
    %179 = arith.mulf %176, %178 : vector<16x512xf32>
    %180 = vector.extract_strided_slice %134 {offsets = [0, 16], sizes = [16, 496], strides = [1, 1]} : vector<16x512xf32> to vector<16x496xf32>
    %cst_56 = arith.constant 0.000000e+00 : f32
    %181 = vector.broadcast %cst_56 : f32 to vector<16x16xf32>
    %182 = tpu.concatenate %180, %181 in 1 : vector<16x496xf32>, vector<16x16xf32> -> vector<16x512xf32>
    %183 = vector.extract_strided_slice %2 {offsets = [7, 0], sizes = [1, 512], strides = [1, 1]} : vector<9x512xf32> to vector<1x512xf32>
    %184 = vector.broadcast %183 : vector<1x512xf32> to vector<16x512xf32>
    %185 = arith.mulf %182, %184 : vector<16x512xf32>
    %186 = vector.extract_strided_slice %134 {offsets = [0, 17], sizes = [16, 495], strides = [1, 1]} : vector<16x512xf32> to vector<16x495xf32>
    %cst_57 = arith.constant 0.000000e+00 : f32
    %187 = vector.broadcast %cst_57 : f32 to vector<16x17xf32>
    %188 = tpu.concatenate %186, %187 in 1 : vector<16x495xf32>, vector<16x17xf32> -> vector<16x512xf32>
    %189 = vector.extract_strided_slice %2 {offsets = [8, 0], sizes = [1, 512], strides = [1, 1]} : vector<9x512xf32> to vector<1x512xf32>
    %190 = vector.broadcast %189 : vector<1x512xf32> to vector<16x512xf32>
    %191 = arith.mulf %188, %190 : vector<16x512xf32>
    %192 = tpu.concatenate %146, %152, %158, %164, %167, %173, %179, %185, %191 in 0 : vector<16x512xf32>, vector<16x512xf32>, vector<16x512xf32>, vector<16x512xf32>, vector<16x512xf32>, vector<16x512xf32>, vector<16x512xf32>, vector<16x512xf32>, vector<16x512xf32> -> vector<144x512xf32>
    %193 = arith.truncf %192 : vector<144x512xf32> to vector<144x512xbf16>
    %cst_58 = arith.constant dense<0.000000e+00> : vector<16x512xf32>
    %194 = tpu.matmul %136, %193, %cst_58 {dimension_numbers = #tpu.dot_dimension_numbers<[1], [0], [0], [1], [0, 0, 1, 1], [], []>} : vector<16x144xbf16>, vector<144x512xbf16>, vector<16x512xf32> -> vector<16x512xf32>
    %195 = vector.broadcast %138 : vector<16x1xf32> to vector<16x512xf32>
    %196 = arith.mulf %194, %195 : vector<16x512xf32>
    %197 = vector.broadcast %140 : vector<16x1xf32> to vector<16x512xf32>
    %198 = arith.addf %196, %197 : vector<16x512xf32>
    %199 = arith.addf %198, %68 : vector<16x512xf32>
    %cst_59 = arith.constant 0.000000e+00 : f32
    %200 = vector.broadcast %cst_59 : f32 to vector<16x512xf32>
    %201 = arith.maximumf %199, %200 : vector<16x512xf32>
    %c0_60 = arith.constant 0 : index
    %c0_61 = arith.constant 0 : index
    %202 = vector.load %arg3[%c0_60, %c0_61] : memref<2x512xf32, #tpu.memory_space<vmem>>, vector<2x512xf32>
    %203 = arith.truncf %202 : vector<2x512xf32> to vector<2x512xbf16>
    %204 = arith.truncf %201 : vector<16x512xf32> to vector<16x512xbf16>
    %cst_62 = arith.constant dense<0.000000e+00> : vector<2x16xf32>
    %205 = tpu.matmul %203, %204, %cst_62 {dimension_numbers = #tpu.dot_dimension_numbers<[1], [1], [0], [0], [0, 0, 1, 0], [], []>} : vector<2x512xbf16>, vector<16x512xbf16>, vector<2x16xf32> -> vector<2x16xf32>
    %c0_63 = arith.constant 0 : index
    %c0_64 = arith.constant 0 : index
    %c0_65 = arith.constant 0 : index
    %206 = vector.load %arg13[%c0_63, %c0_64, %c0_65] : memref<1x16x32xbf16, #tpu.memory_space<vmem>>, vector<1x16x32xbf16>
    %207 = vector.shape_cast %206 : vector<1x16x32xbf16> to vector<16x32xbf16>
    %208 = arith.truncf %205 : vector<2x16xf32> to vector<2x16xbf16>
    %cst_66 = arith.constant dense<0.000000e+00> : vector<2x32xf32>
    %209 = tpu.matmul %208, %207, %cst_66 {dimension_numbers = #tpu.dot_dimension_numbers<[1], [0], [0], [1], [0, 0, 1, 1], [], []>} : vector<2x16xbf16>, vector<16x32xbf16>, vector<2x32xf32> -> vector<2x32xf32>
    %c0_67 = arith.constant 0 : index
    %c0_68 = arith.constant 0 : index
    %c0_69 = arith.constant 0 : index
    %210 = vector.load %arg14[%c0_67, %c0_68, %c0_69] : memref<1x1x32xf32, #tpu.memory_space<vmem>>, vector<1x1x32xf32>
    %211 = vector.shape_cast %210 : vector<1x1x32xf32> to vector<1x32xf32>
    %212 = vector.broadcast %211 : vector<1x32xf32> to vector<2x32xf32>
    %213 = arith.addf %209, %212 : vector<2x32xf32>
    %c0_70 = arith.constant 0 : index
    %c0_71 = arith.constant 0 : index
    %c0_72 = arith.constant 0 : index
    %214 = vector.load %arg15[%c0_70, %c0_71, %c0_72] : memref<1x2x32xf32, #tpu.memory_space<vmem>>, vector<1x2x32xf32>
    %215 = vector.shape_cast %214 : vector<1x2x32xf32> to vector<2x32xf32>
    %216 = vector.shape_cast %213 : vector<2x32xf32> to vector<1x2x32xf32>
    tpu.vector_store %arg15[%c0_70, %c0_71, %c0_72], %216 {strides = array<i32>} : memref<1x2x32xf32, #tpu.memory_space<vmem>>, vector<1x2x32xf32>,
    return
  }
  func.func @transform_0(%arg0: i32) -> (i32, i32, i32) {
    %c0_i32 = arith.constant 0 : i32
    %c0_i32_0 = arith.constant 0 : i32
    %c0_i32_1 = arith.constant 0 : i32
    return %arg0, %c0_i32, %c0_i32_0 : i32, i32, i32
  }
  func.func @transform_1(%arg0: i32) -> (i32, i32) {
    %c0_i32 = arith.constant 0 : i32
    %c0_i32_0 = arith.constant 0 : i32
    %c0_i32_1 = arith.constant 0 : i32
    return %c0_i32, %c0_i32_0 : i32, i32
  }
  func.func @transform_2(%arg0: i32) -> (i32, i32) {
    %c0_i32 = arith.constant 0 : i32
    %c0_i32_0 = arith.constant 0 : i32
    %c0_i32_1 = arith.constant 0 : i32
    return %c0_i32, %c0_i32_0 : i32, i32
  }
  func.func @transform_3(%arg0: i32) -> (i32, i32, i32) {
    %c0_i32 = arith.constant 0 : i32
    %c0_i32_0 = arith.constant 0 : i32
    %c0_i32_1 = arith.constant 0 : i32
    return %arg0, %c0_i32, %c0_i32_0 : i32, i32, i32
  }
  func.func @transform_4(%arg0: i32) -> (i32, i32, i32) {
    %c0_i32 = arith.constant 0 : i32
    %c0_i32_0 = arith.constant 0 : i32
    %c0_i32_1 = arith.constant 0 : i32
    return %arg0, %c0_i32, %c0_i32_0 : i32, i32, i32
  }
  func.func @transform_5(%arg0: i32) -> (i32, i32, i32) {
    %c0_i32 = arith.constant 0 : i32
    %c0_i32_0 = arith.constant 0 : i32
    %c0_i32_1 = arith.constant 0 : i32
    return %arg0, %c0_i32, %c0_i32_0 : i32, i32, i32
  }
  func.func @transform_6(%arg0: i32) -> (i32, i32, i32) {
    %c0_i32 = arith.constant 0 : i32
    %c0_i32_0 = arith.constant 0 : i32
    %c0_i32_1 = arith.constant 0 : i32
    return %arg0, %c0_i32, %c0_i32_0 : i32, i32, i32
  }
  func.func @transform_7(%arg0: i32) -> (i32, i32, i32) {
    %c0_i32 = arith.constant 0 : i32
    %c0_i32_0 = arith.constant 0 : i32
    %c0_i32_1 = arith.constant 0 : i32
    return %arg0, %c0_i32, %c0_i32_0 : i32, i32, i32
  }
  func.func @transform_8(%arg0: i32) -> (i32, i32, i32) {
    %c0_i32 = arith.constant 0 : i32
    %c0_i32_0 = arith.constant 0 : i32
    %c0_i32_1 = arith.constant 0 : i32
    return %arg0, %c0_i32, %c0_i32_0 : i32, i32, i32
  }
  func.func @transform_9(%arg0: i32) -> (i32, i32, i32) {
    %c0_i32 = arith.constant 0 : i32
    %c0_i32_0 = arith.constant 0 : i32
    %c0_i32_1 = arith.constant 0 : i32
    return %arg0, %c0_i32, %c0_i32_0 : i32, i32, i32
  }
  func.func @transform_10(%arg0: i32) -> (i32, i32, i32) {
    %c0_i32 = arith.constant 0 : i32
    %c0_i32_0 = arith.constant 0 : i32
    %c0_i32_1 = arith.constant 0 : i32
    return %arg0, %c0_i32, %c0_i32_0 : i32, i32, i32
  }
  func.func @transform_11(%arg0: i32) -> (i32, i32, i32) {
    %c0_i32 = arith.constant 0 : i32
    %c0_i32_0 = arith.constant 0 : i32
    %c0_i32_1 = arith.constant 0 : i32
    return %arg0, %c0_i32, %c0_i32_0 : i32, i32, i32
  }
  func.func @transform_12(%arg0: i32) -> (i32, i32, i32) {
    %c0_i32 = arith.constant 0 : i32
    %c0_i32_0 = arith.constant 0 : i32
    %c0_i32_1 = arith.constant 0 : i32
    return %arg0, %c0_i32, %c0_i32_0 : i32, i32, i32
  }
  func.func @transform_13(%arg0: i32) -> (i32, i32, i32) {
    %c0_i32 = arith.constant 0 : i32
    %c0_i32_0 = arith.constant 0 : i32
    %c0_i32_1 = arith.constant 0 : i32
    return %arg0, %c0_i32, %c0_i32_0 : i32, i32, i32
  }
  func.func @transform_14(%arg0: i32) -> (i32, i32, i32) {
    %c0_i32 = arith.constant 0 : i32
    %c0_i32_0 = arith.constant 0 : i32
    %c0_i32_1 = arith.constant 0 : i32
    return %arg0, %c0_i32, %c0_i32_0 : i32, i32, i32
  }
}

module attributes {stable_mosaic.version = 11 : i64} {
  func.func @_head_kernel(%arg0: memref<2x32xf32, #tpu.memory_space<vmem>>, %arg1: memref<2x16xf32, #tpu.memory_space<vmem>>, %arg2: memref<2x2x32xf32, #tpu.memory_space<vmem>>, %arg3: memref<16x64xbf16, #tpu.memory_space<vmem>>, %arg4: memref<1x64xf32, #tpu.memory_space<vmem>>, %arg5: memref<64x16xbf16, #tpu.memory_space<vmem>>, %arg6: memref<1x16xf32, #tpu.memory_space<vmem>>, %arg7: memref<112x64xbf16, #tpu.memory_space<vmem>>, %arg8: memref<1x64xf32, #tpu.memory_space<vmem>>, %arg9: memref<64x1xbf16, #tpu.memory_space<vmem>>, %arg10: memref<1x1xf32, #tpu.memory_space<vmem>>, %arg11: memref<2x1xf32, #tpu.memory_space<vmem>>) attributes {dimension_semantics = [], scalar_prefetch = 0 : i64, scratch_operands = 0 : i64, tpu.core_type = #tpu.core_type<tc>} {
    %c0 = arith.constant 0 : index
    %c0_0 = arith.constant 0 : index
    %0 = vector.load %arg1[%c0, %c0_0] : memref<2x16xf32, #tpu.memory_space<vmem>>, vector<2x16xf32>
    %c0_1 = arith.constant 0 : index
    %c0_2 = arith.constant 0 : index
    %1 = vector.load %arg3[%c0_1, %c0_2] : memref<16x64xbf16, #tpu.memory_space<vmem>>, vector<16x64xbf16>
    %2 = arith.truncf %0 : vector<2x16xf32> to vector<2x16xbf16>
    %cst = arith.constant dense<0.000000e+00> : vector<2x64xf32>
    %3 = tpu.matmul %2, %1, %cst {dimension_numbers = #tpu.dot_dimension_numbers<[1], [0], [0], [1], [0, 0, 1, 1], [], []>} : vector<2x16xbf16>, vector<16x64xbf16>, vector<2x64xf32> -> vector<2x64xf32>
    %c0_3 = arith.constant 0 : index
    %c0_4 = arith.constant 0 : index
    %4 = vector.load %arg4[%c0_3, %c0_4] : memref<1x64xf32, #tpu.memory_space<vmem>>, vector<1x64xf32>
    %5 = vector.broadcast %4 : vector<1x64xf32> to vector<2x64xf32>
    %6 = arith.addf %3, %5 : vector<2x64xf32>
    %cst_5 = arith.constant 0.000000e+00 : f32
    %7 = vector.broadcast %cst_5 : f32 to vector<2x64xf32>
    %8 = arith.maximumf %6, %7 : vector<2x64xf32>
    %c0_6 = arith.constant 0 : index
    %c0_7 = arith.constant 0 : index
    %9 = vector.load %arg5[%c0_6, %c0_7] : memref<64x16xbf16, #tpu.memory_space<vmem>>, vector<64x16xbf16>
    %10 = arith.truncf %8 : vector<2x64xf32> to vector<2x64xbf16>
    %cst_8 = arith.constant dense<0.000000e+00> : vector<2x16xf32>
    %11 = tpu.matmul %10, %9, %cst_8 {dimension_numbers = #tpu.dot_dimension_numbers<[1], [0], [0], [1], [0, 0, 1, 1], [], []>} : vector<2x64xbf16>, vector<64x16xbf16>, vector<2x16xf32> -> vector<2x16xf32>
    %c0_9 = arith.constant 0 : index
    %c0_10 = arith.constant 0 : index
    %12 = vector.load %arg6[%c0_9, %c0_10] : memref<1x16xf32, #tpu.memory_space<vmem>>, vector<1x16xf32>
    %13 = vector.broadcast %12 : vector<1x16xf32> to vector<2x16xf32>
    %14 = arith.addf %11, %13 : vector<2x16xf32>
    %c0_11 = arith.constant 0 : index
    %c0_12 = arith.constant 0 : index
    %15 = vector.load %arg0[%c0_11, %c0_12] : memref<2x32xf32, #tpu.memory_space<vmem>>, vector<2x32xf32>
    %c0_13 = arith.constant 0 : index
    %c0_14 = arith.constant 0 : index
    %c0_15 = arith.constant 0 : index
    %16 = vector.load %arg2[%c0_13, %c0_14, %c0_15] : memref<2x2x32xf32, #tpu.memory_space<vmem>>, vector<1x2x32xf32>
    %17 = vector.shape_cast %16 : vector<1x2x32xf32> to vector<2x32xf32>
    %c1 = arith.constant 1 : index
    %c0_16 = arith.constant 0 : index
    %c0_17 = arith.constant 0 : index
    %18 = vector.load %arg2[%c1, %c0_16, %c0_17] : memref<2x2x32xf32, #tpu.memory_space<vmem>>, vector<1x2x32xf32>
    %19 = vector.shape_cast %18 : vector<1x2x32xf32> to vector<2x32xf32>
    %20 = tpu.concatenate %15, %14, %17, %19 in 1 : vector<2x32xf32>, vector<2x16xf32>, vector<2x32xf32>, vector<2x32xf32> -> vector<2x112xf32>
    %c0_18 = arith.constant 0 : index
    %c0_19 = arith.constant 0 : index
    %21 = vector.load %arg7[%c0_18, %c0_19] : memref<112x64xbf16, #tpu.memory_space<vmem>>, vector<112x64xbf16>
    %22 = arith.truncf %20 : vector<2x112xf32> to vector<2x112xbf16>
    %cst_20 = arith.constant dense<0.000000e+00> : vector<2x64xf32>
    %23 = tpu.matmul %22, %21, %cst_20 {dimension_numbers = #tpu.dot_dimension_numbers<[1], [0], [0], [1], [0, 0, 1, 1], [], []>} : vector<2x112xbf16>, vector<112x64xbf16>, vector<2x64xf32> -> vector<2x64xf32>
    %c0_21 = arith.constant 0 : index
    %c0_22 = arith.constant 0 : index
    %24 = vector.load %arg8[%c0_21, %c0_22] : memref<1x64xf32, #tpu.memory_space<vmem>>, vector<1x64xf32>
    %25 = vector.broadcast %24 : vector<1x64xf32> to vector<2x64xf32>
    %26 = arith.addf %23, %25 : vector<2x64xf32>
    %cst_23 = arith.constant 0.000000e+00 : f32
    %27 = vector.broadcast %cst_23 : f32 to vector<2x64xf32>
    %28 = arith.maximumf %26, %27 : vector<2x64xf32>
    %c0_24 = arith.constant 0 : index
    %c0_25 = arith.constant 0 : index
    %29 = vector.load %arg9[%c0_24, %c0_25] : memref<64x1xbf16, #tpu.memory_space<vmem>>, vector<64x1xbf16>
    %30 = arith.truncf %28 : vector<2x64xf32> to vector<2x64xbf16>
    %cst_26 = arith.constant dense<0.000000e+00> : vector<2x1xf32>
    %31 = tpu.matmul %30, %29, %cst_26 {dimension_numbers = #tpu.dot_dimension_numbers<[1], [0], [0], [1], [0, 0, 1, 1], [], []>} : vector<2x64xbf16>, vector<64x1xbf16>, vector<2x1xf32> -> vector<2x1xf32>
    %c0_27 = arith.constant 0 : index
    %c0_28 = arith.constant 0 : index
    %32 = vector.load %arg10[%c0_27, %c0_28] : memref<1x1xf32, #tpu.memory_space<vmem>>, vector<1x1xf32>
    %33 = vector.broadcast %32 : vector<1x1xf32> to vector<2x1xf32>
    %34 = arith.addf %31, %33 : vector<2x1xf32>
    %c0_29 = arith.constant 0 : index
    %c0_30 = arith.constant 0 : index
    %35 = vector.load %arg11[%c0_29, %c0_30] : memref<2x1xf32, #tpu.memory_space<vmem>>, vector<2x1xf32>
    tpu.vector_store %arg11[%c0_29, %c0_30], %34 {strides = array<i32>} : memref<2x1xf32, #tpu.memory_space<vmem>>, vector<2x1xf32>,
    return
  }
}

module attributes {stable_mosaic.version = 11 : i64} {
  func.func @_ts_kernel(%arg0: i32, %arg1: memref<16x1xf32, #tpu.memory_space<vmem>>, %arg2: memref<8x64xf32, #tpu.memory_space<vmem>>, %arg3: memref<1x64xf32, #tpu.memory_space<vmem>>, %arg4: memref<1x64xf32, #tpu.memory_space<vmem>>, %arg5: memref<1x64x64xbf16, #tpu.memory_space<vmem>>, %arg6: memref<1x1x64xf32, #tpu.memory_space<vmem>>, %arg7: memref<1x64x64xbf16, #tpu.memory_space<vmem>>, %arg8: memref<1x1x64xf32, #tpu.memory_space<vmem>>, %arg9: memref<1x64x64xbf16, #tpu.memory_space<vmem>>, %arg10: memref<1x1x64xf32, #tpu.memory_space<vmem>>, %arg11: memref<1x64x64xbf16, #tpu.memory_space<vmem>>, %arg12: memref<1x1x64xf32, #tpu.memory_space<vmem>>, %arg13: memref<1x1x64xf32, #tpu.memory_space<vmem>>, %arg14: memref<1x1x64xf32, #tpu.memory_space<vmem>>, %arg15: memref<1x64x128xbf16, #tpu.memory_space<vmem>>, %arg16: memref<1x1x128xf32, #tpu.memory_space<vmem>>, %arg17: memref<1x128x64xbf16, #tpu.memory_space<vmem>>, %arg18: memref<1x1x64xf32, #tpu.memory_space<vmem>>, %arg19: memref<1x1x64xf32, #tpu.memory_space<vmem>>, %arg20: memref<1x1x64xf32, #tpu.memory_space<vmem>>, %arg21: memref<64x32xbf16, #tpu.memory_space<vmem>>, %arg22: memref<1x32xf32, #tpu.memory_space<vmem>>, %arg23: memref<2x32xf32, #tpu.memory_space<vmem>>, %arg24: memref<16x64xf32, #tpu.memory_space<vmem>>) attributes {dimension_semantics = [#tpu.dimension_semantics<arbitrary>], iteration_bounds = array<i64: 3>, scalar_prefetch = 0 : i64, scratch_operands = 1 : i64, tpu.core_type = #tpu.core_type<tc>, window_params = [{pipeline_mode = #tpu.pipeline_mode<synchronous>, transform_indices = @transform_0, window_bounds = array<i64: 16, 1>}, {pipeline_mode = #tpu.pipeline_mode<synchronous>, transform_indices = @transform_1, window_bounds = array<i64: 8, 64>}, {pipeline_mode = #tpu.pipeline_mode<synchronous>, transform_indices = @transform_2, window_bounds = array<i64: 1, 64>}, {pipeline_mode = #tpu.pipeline_mode<synchronous>, transform_indices = @transform_3, window_bounds = array<i64: 1, 64>}, {transform_indices = @transform_4, window_bounds = array<i64: 1, 64, 64>}, {transform_indices = @transform_5, window_bounds = array<i64: 1, 1, 64>}, {transform_indices = @transform_6, window_bounds = array<i64: 1, 64, 64>}, {transform_indices = @transform_7, window_bounds = array<i64: 1, 1, 64>}, {transform_indices = @transform_8, window_bounds = array<i64: 1, 64, 64>}, {transform_indices = @transform_9, window_bounds = array<i64: 1, 1, 64>}, {transform_indices = @transform_10, window_bounds = array<i64: 1, 64, 64>}, {transform_indices = @transform_11, window_bounds = array<i64: 1, 1, 64>}, {transform_indices = @transform_12, window_bounds = array<i64: 1, 1, 64>}, {transform_indices = @transform_13, window_bounds = array<i64: 1, 1, 64>}, {transform_indices = @transform_14, window_bounds = array<i64: 1, 64, 128>}, {transform_indices = @transform_15, window_bounds = array<i64: 1, 1, 128>}, {transform_indices = @transform_16, window_bounds = array<i64: 1, 128, 64>}, {transform_indices = @transform_17, window_bounds = array<i64: 1, 1, 64>}, {transform_indices = @transform_18, window_bounds = array<i64: 1, 1, 64>}, {transform_indices = @transform_19, window_bounds = array<i64: 1, 1, 64>}, {pipeline_mode = #tpu.pipeline_mode<synchronous>, transform_indices = @transform_20, window_bounds = array<i64: 64, 32>}, {pipeline_mode = #tpu.pipeline_mode<synchronous>, transform_indices = @transform_21, window_bounds = array<i64: 1, 32>}, {pipeline_mode = #tpu.pipeline_mode<synchronous>, transform_indices = @transform_22, window_bounds = array<i64: 2, 32>}]} {
    %c0_i32 = arith.constant 0 : i32
    %0 = arith.cmpi eq, %arg0, %c0_i32 : i32
    %1 = arith.extui %0 : i1 to i32
    %c0_i32_0 = arith.constant 0 : i32
    %2 = arith.cmpi ne, %1, %c0_i32_0 : i32
    scf.if %2 {
      %c0_109 = arith.constant 0 : index
      %c0_110 = arith.constant 0 : index
      %285 = vector.load %arg1[%c0_109, %c0_110] : memref<16x1xf32, #tpu.memory_space<vmem>>, vector<16x1xf32>
      %c0_111 = arith.constant 0 : index
      %c0_112 = arith.constant 0 : index
      %286 = vector.load %arg3[%c0_111, %c0_112] : memref<1x64xf32, #tpu.memory_space<vmem>>, vector<1x64xf32>
      %287 = vector.broadcast %285 : vector<16x1xf32> to vector<16x64xf32>
      %288 = vector.broadcast %286 : vector<1x64xf32> to vector<16x64xf32>
      %289 = arith.mulf %287, %288 : vector<16x64xf32>
      %c0_113 = arith.constant 0 : index
      %c0_114 = arith.constant 0 : index
      %290 = vector.load %arg4[%c0_113, %c0_114] : memref<1x64xf32, #tpu.memory_space<vmem>>, vector<1x64xf32>
      %291 = vector.broadcast %290 : vector<1x64xf32> to vector<16x64xf32>
      %292 = arith.addf %289, %291 : vector<16x64xf32>
      %293 = vector.shape_cast %292 : vector<16x64xf32> to vector<2x8x64xf32>
      %c0_115 = arith.constant 0 : index
      %c0_116 = arith.constant 0 : index
      %294 = vector.load %arg2[%c0_115, %c0_116] : memref<8x64xf32, #tpu.memory_space<vmem>>, vector<8x64xf32>
      %295 = vector.shape_cast %294 : vector<8x64xf32> to vector<1x8x64xf32>
      %296 = vector.broadcast %295 : vector<1x8x64xf32> to vector<2x8x64xf32>
      %297 = arith.addf %293, %296 : vector<2x8x64xf32>
      %298 = vector.shape_cast %297 : vector<2x8x64xf32> to vector<16x64xf32>
      %c0_117 = arith.constant 0 : index
      %c0_118 = arith.constant 0 : index
      %299 = vector.load %arg24[%c0_117, %c0_118] : memref<16x64xf32, #tpu.memory_space<vmem>>, vector<16x64xf32>
      tpu.vector_store %arg24[%c0_117, %c0_118], %298 {strides = array<i32>} : memref<16x64xf32, #tpu.memory_space<vmem>>, vector<16x64xf32>,
    } else {
    }
    %c0 = arith.constant 0 : index
    %c0_1 = arith.constant 0 : index
    %3 = vector.load %arg24[%c0, %c0_1] : memref<16x64xf32, #tpu.memory_space<vmem>>, vector<16x64xf32>
    %c0_2 = arith.constant 0 : index
    %c0_3 = arith.constant 0 : index
    %c0_4 = arith.constant 0 : index
    %4 = vector.load %arg5[%c0_2, %c0_3, %c0_4] : memref<1x64x64xbf16, #tpu.memory_space<vmem>>, vector<1x64x64xbf16>
    %5 = vector.shape_cast %4 : vector<1x64x64xbf16> to vector<64x64xbf16>
    %6 = arith.truncf %3 : vector<16x64xf32> to vector<16x64xbf16>
    %cst = arith.constant dense<0.000000e+00> : vector<16x64xf32>
    %7 = tpu.matmul %6, %5, %cst {dimension_numbers = #tpu.dot_dimension_numbers<[1], [0], [0], [1], [0, 0, 1, 1], [], []>} : vector<16x64xbf16>, vector<64x64xbf16>, vector<16x64xf32> -> vector<16x64xf32>
    %c0_5 = arith.constant 0 : index
    %c0_6 = arith.constant 0 : index
    %c0_7 = arith.constant 0 : index
    %8 = vector.load %arg6[%c0_5, %c0_6, %c0_7] : memref<1x1x64xf32, #tpu.memory_space<vmem>>, vector<1x1x64xf32>
    %9 = vector.shape_cast %8 : vector<1x1x64xf32> to vector<1x64xf32>
    %10 = vector.broadcast %9 : vector<1x64xf32> to vector<16x64xf32>
    %11 = arith.addf %7, %10 : vector<16x64xf32>
    %c0_8 = arith.constant 0 : index
    %c0_9 = arith.constant 0 : index
    %c0_10 = arith.constant 0 : index
    %12 = vector.load %arg7[%c0_8, %c0_9, %c0_10] : memref<1x64x64xbf16, #tpu.memory_space<vmem>>, vector<1x64x64xbf16>
    %13 = vector.shape_cast %12 : vector<1x64x64xbf16> to vector<64x64xbf16>
    %14 = arith.truncf %3 : vector<16x64xf32> to vector<16x64xbf16>
    %cst_11 = arith.constant dense<0.000000e+00> : vector<16x64xf32>
    %15 = tpu.matmul %14, %13, %cst_11 {dimension_numbers = #tpu.dot_dimension_numbers<[1], [0], [0], [1], [0, 0, 1, 1], [], []>} : vector<16x64xbf16>, vector<64x64xbf16>, vector<16x64xf32> -> vector<16x64xf32>
    %c0_12 = arith.constant 0 : index
    %c0_13 = arith.constant 0 : index
    %c0_14 = arith.constant 0 : index
    %16 = vector.load %arg8[%c0_12, %c0_13, %c0_14] : memref<1x1x64xf32, #tpu.memory_space<vmem>>, vector<1x1x64xf32>
    %17 = vector.shape_cast %16 : vector<1x1x64xf32> to vector<1x64xf32>
    %18 = vector.broadcast %17 : vector<1x64xf32> to vector<16x64xf32>
    %19 = arith.addf %15, %18 : vector<16x64xf32>
    %c0_15 = arith.constant 0 : index
    %c0_16 = arith.constant 0 : index
    %c0_17 = arith.constant 0 : index
    %20 = vector.load %arg9[%c0_15, %c0_16, %c0_17] : memref<1x64x64xbf16, #tpu.memory_space<vmem>>, vector<1x64x64xbf16>
    %21 = vector.shape_cast %20 : vector<1x64x64xbf16> to vector<64x64xbf16>
    %22 = arith.truncf %3 : vector<16x64xf32> to vector<16x64xbf16>
    %cst_18 = arith.constant dense<0.000000e+00> : vector<16x64xf32>
    %23 = tpu.matmul %22, %21, %cst_18 {dimension_numbers = #tpu.dot_dimension_numbers<[1], [0], [0], [1], [0, 0, 1, 1], [], []>} : vector<16x64xbf16>, vector<64x64xbf16>, vector<16x64xf32> -> vector<16x64xf32>
    %c0_19 = arith.constant 0 : index
    %c0_20 = arith.constant 0 : index
    %c0_21 = arith.constant 0 : index
    %24 = vector.load %arg10[%c0_19, %c0_20, %c0_21] : memref<1x1x64xf32, #tpu.memory_space<vmem>>, vector<1x1x64xf32>
    %25 = vector.shape_cast %24 : vector<1x1x64xf32> to vector<1x64xf32>
    %26 = vector.broadcast %25 : vector<1x64xf32> to vector<16x64xf32>
    %27 = arith.addf %23, %26 : vector<16x64xf32>
    %28 = vector.shape_cast %11 : vector<16x64xf32> to vector<2x8x64xf32>
    %29 = vector.shape_cast %19 : vector<16x64xf32> to vector<2x8x64xf32>
    %30 = vector.shape_cast %27 : vector<16x64xf32> to vector<2x8x64xf32>
    %31 = vector.extract_strided_slice %28 {offsets = [0, 0, 0], sizes = [2, 8, 8], strides = [1, 1, 1]} : vector<2x8x64xf32> to vector<2x8x8xf32>
    %32 = vector.extract_strided_slice %29 {offsets = [0, 0, 0], sizes = [2, 8, 8], strides = [1, 1, 1]} : vector<2x8x64xf32> to vector<2x8x8xf32>
    %33 = vector.extract_strided_slice %30 {offsets = [0, 0, 0], sizes = [2, 8, 8], strides = [1, 1, 1]} : vector<2x8x64xf32> to vector<2x8x8xf32>
    %34 = arith.truncf %31 : vector<2x8x8xf32> to vector<2x8x8xbf16>
    %35 = arith.truncf %32 : vector<2x8x8xf32> to vector<2x8x8xbf16>
    "tpu.trace_start"() <{level = 10 : i32, message = "bqd,bkd->bqk"}> : () -> ()
    %cst_22 = arith.constant dense<0.000000e+00> : vector<2x8x8xf32>
    %36 = tpu.matmul %34, %35, %cst_22 {dimension_numbers = #tpu.dot_dimension_numbers<[2], [2], [1], [1], [0, 0, 0, 1, 1, 1], [0], [0]>} : vector<2x8x8xbf16>, vector<2x8x8xbf16>, vector<2x8x8xf32> -> vector<2x8x8xf32>
    "tpu.trace_stop"() : () -> ()
    %cst_23 = arith.constant 0.353553385 : f32
    %37 = vector.broadcast %cst_23 : f32 to vector<2x8x8xf32>
    %38 = arith.mulf %36, %37 : vector<2x8x8xf32>
    %cst_24 = arith.constant dense<0xFF800000> : vector<2x8xf32>
    %39 = vector.multi_reduction <maximumf>, %38, %cst_24 [2] : vector<2x8x8xf32> to vector<2x8xf32>
    %40 = vector.shape_cast %39 : vector<2x8xf32> to vector<2x8x1xf32>
    %41 = vector.broadcast %40 : vector<2x8x1xf32> to vector<2x8x8xf32>
    %42 = arith.subf %38, %41 : vector<2x8x8xf32>
    %43 = math.exp %42 : vector<2x8x8xf32>
    %cst_25 = arith.constant dense<0.000000e+00> : vector<2x8xf32>
    %44 = vector.multi_reduction <add>, %43, %cst_25 [2] : vector<2x8x8xf32> to vector<2x8xf32>
    %45 = vector.shape_cast %44 : vector<2x8xf32> to vector<2x8x1xf32>
    %46 = tpu.reciprocal %45 {approx = true} : vector<2x8x1xf32> -> vector<2x8x1xf32>
    %47 = vector.broadcast %46 : vector<2x8x1xf32> to vector<2x8x8xf32>
    %48 = arith.mulf %43, %47 : vector<2x8x8xf32>
    %49 = arith.truncf %48 : vector<2x8x8xf32> to vector<2x8x8xbf16>
    %50 = arith.truncf %33 : vector<2x8x8xf32> to vector<2x8x8xbf16>
    "tpu.trace_start"() <{level = 10 : i32, message = "bqk,bkd->bqd"}> : () -> ()
    %cst_26 = arith.constant dense<0.000000e+00> : vector<2x8x8xf32>
    %51 = tpu.matmul %49, %50, %cst_26 {dimension_numbers = #tpu.dot_dimension_numbers<[2], [1], [1], [2], [0, 0, 0, 1, 1, 2], [0], [0]>} : vector<2x8x8xbf16>, vector<2x8x8xbf16>, vector<2x8x8xf32> -> vector<2x8x8xf32>
    "tpu.trace_stop"() : () -> ()
    %52 = vector.extract_strided_slice %28 {offsets = [0, 0, 8], sizes = [2, 8, 8], strides = [1, 1, 1]} : vector<2x8x64xf32> to vector<2x8x8xf32>
    %53 = vector.extract_strided_slice %29 {offsets = [0, 0, 8], sizes = [2, 8, 8], strides = [1, 1, 1]} : vector<2x8x64xf32> to vector<2x8x8xf32>
    %54 = vector.extract_strided_slice %30 {offsets = [0, 0, 8], sizes = [2, 8, 8], strides = [1, 1, 1]} : vector<2x8x64xf32> to vector<2x8x8xf32>
    %55 = arith.truncf %52 : vector<2x8x8xf32> to vector<2x8x8xbf16>
    %56 = arith.truncf %53 : vector<2x8x8xf32> to vector<2x8x8xbf16>
    "tpu.trace_start"() <{level = 10 : i32, message = "bqd,bkd->bqk"}> : () -> ()
    %cst_27 = arith.constant dense<0.000000e+00> : vector<2x8x8xf32>
    %57 = tpu.matmul %55, %56, %cst_27 {dimension_numbers = #tpu.dot_dimension_numbers<[2], [2], [1], [1], [0, 0, 0, 1, 1, 1], [0], [0]>} : vector<2x8x8xbf16>, vector<2x8x8xbf16>, vector<2x8x8xf32> -> vector<2x8x8xf32>
    "tpu.trace_stop"() : () -> ()
    %cst_28 = arith.constant 0.353553385 : f32
    %58 = vector.broadcast %cst_28 : f32 to vector<2x8x8xf32>
    %59 = arith.mulf %57, %58 : vector<2x8x8xf32>
    %cst_29 = arith.constant dense<0xFF800000> : vector<2x8xf32>
    %60 = vector.multi_reduction <maximumf>, %59, %cst_29 [2] : vector<2x8x8xf32> to vector<2x8xf32>
    %61 = vector.shape_cast %60 : vector<2x8xf32> to vector<2x8x1xf32>
    %62 = vector.broadcast %61 : vector<2x8x1xf32> to vector<2x8x8xf32>
    %63 = arith.subf %59, %62 : vector<2x8x8xf32>
    %64 = math.exp %63 : vector<2x8x8xf32>
    %cst_30 = arith.constant dense<0.000000e+00> : vector<2x8xf32>
    %65 = vector.multi_reduction <add>, %64, %cst_30 [2] : vector<2x8x8xf32> to vector<2x8xf32>
    %66 = vector.shape_cast %65 : vector<2x8xf32> to vector<2x8x1xf32>
    %67 = tpu.reciprocal %66 {approx = true} : vector<2x8x1xf32> -> vector<2x8x1xf32>
    %68 = vector.broadcast %67 : vector<2x8x1xf32> to vector<2x8x8xf32>
    %69 = arith.mulf %64, %68 : vector<2x8x8xf32>
    %70 = arith.truncf %69 : vector<2x8x8xf32> to vector<2x8x8xbf16>
    %71 = arith.truncf %54 : vector<2x8x8xf32> to vector<2x8x8xbf16>
    "tpu.trace_start"() <{level = 10 : i32, message = "bqk,bkd->bqd"}> : () -> ()
    %cst_31 = arith.constant dense<0.000000e+00> : vector<2x8x8xf32>
    %72 = tpu.matmul %70, %71, %cst_31 {dimension_numbers = #tpu.dot_dimension_numbers<[2], [1], [1], [2], [0, 0, 0, 1, 1, 2], [0], [0]>} : vector<2x8x8xbf16>, vector<2x8x8xbf16>, vector<2x8x8xf32> -> vector<2x8x8xf32>
    "tpu.trace_stop"() : () -> ()
    %73 = vector.extract_strided_slice %28 {offsets = [0, 0, 16], sizes = [2, 8, 8], strides = [1, 1, 1]} : vector<2x8x64xf32> to vector<2x8x8xf32>
    %74 = vector.extract_strided_slice %29 {offsets = [0, 0, 16], sizes = [2, 8, 8], strides = [1, 1, 1]} : vector<2x8x64xf32> to vector<2x8x8xf32>
    %75 = vector.extract_strided_slice %30 {offsets = [0, 0, 16], sizes = [2, 8, 8], strides = [1, 1, 1]} : vector<2x8x64xf32> to vector<2x8x8xf32>
    %76 = arith.truncf %73 : vector<2x8x8xf32> to vector<2x8x8xbf16>
    %77 = arith.truncf %74 : vector<2x8x8xf32> to vector<2x8x8xbf16>
    "tpu.trace_start"() <{level = 10 : i32, message = "bqd,bkd->bqk"}> : () -> ()
    %cst_32 = arith.constant dense<0.000000e+00> : vector<2x8x8xf32>
    %78 = tpu.matmul %76, %77, %cst_32 {dimension_numbers = #tpu.dot_dimension_numbers<[2], [2], [1], [1], [0, 0, 0, 1, 1, 1], [0], [0]>} : vector<2x8x8xbf16>, vector<2x8x8xbf16>, vector<2x8x8xf32> -> vector<2x8x8xf32>
    "tpu.trace_stop"() : () -> ()
    %cst_33 = arith.constant 0.353553385 : f32
    %79 = vector.broadcast %cst_33 : f32 to vector<2x8x8xf32>
    %80 = arith.mulf %78, %79 : vector<2x8x8xf32>
    %cst_34 = arith.constant dense<0xFF800000> : vector<2x8xf32>
    %81 = vector.multi_reduction <maximumf>, %80, %cst_34 [2] : vector<2x8x8xf32> to vector<2x8xf32>
    %82 = vector.shape_cast %81 : vector<2x8xf32> to vector<2x8x1xf32>
    %83 = vector.broadcast %82 : vector<2x8x1xf32> to vector<2x8x8xf32>
    %84 = arith.subf %80, %83 : vector<2x8x8xf32>
    %85 = math.exp %84 : vector<2x8x8xf32>
    %cst_35 = arith.constant dense<0.000000e+00> : vector<2x8xf32>
    %86 = vector.multi_reduction <add>, %85, %cst_35 [2] : vector<2x8x8xf32> to vector<2x8xf32>
    %87 = vector.shape_cast %86 : vector<2x8xf32> to vector<2x8x1xf32>
    %88 = tpu.reciprocal %87 {approx = true} : vector<2x8x1xf32> -> vector<2x8x1xf32>
    %89 = vector.broadcast %88 : vector<2x8x1xf32> to vector<2x8x8xf32>
    %90 = arith.mulf %85, %89 : vector<2x8x8xf32>
    %91 = arith.truncf %90 : vector<2x8x8xf32> to vector<2x8x8xbf16>
    %92 = arith.truncf %75 : vector<2x8x8xf32> to vector<2x8x8xbf16>
    "tpu.trace_start"() <{level = 10 : i32, message = "bqk,bkd->bqd"}> : () -> ()
    %cst_36 = arith.constant dense<0.000000e+00> : vector<2x8x8xf32>
    %93 = tpu.matmul %91, %92, %cst_36 {dimension_numbers = #tpu.dot_dimension_numbers<[2], [1], [1], [2], [0, 0, 0, 1, 1, 2], [0], [0]>} : vector<2x8x8xbf16>, vector<2x8x8xbf16>, vector<2x8x8xf32> -> vector<2x8x8xf32>
    "tpu.trace_stop"() : () -> ()
    %94 = vector.extract_strided_slice %28 {offsets = [0, 0, 24], sizes = [2, 8, 8], strides = [1, 1, 1]} : vector<2x8x64xf32> to vector<2x8x8xf32>
    %95 = vector.extract_strided_slice %29 {offsets = [0, 0, 24], sizes = [2, 8, 8], strides = [1, 1, 1]} : vector<2x8x64xf32> to vector<2x8x8xf32>
    %96 = vector.extract_strided_slice %30 {offsets = [0, 0, 24], sizes = [2, 8, 8], strides = [1, 1, 1]} : vector<2x8x64xf32> to vector<2x8x8xf32>
    %97 = arith.truncf %94 : vector<2x8x8xf32> to vector<2x8x8xbf16>
    %98 = arith.truncf %95 : vector<2x8x8xf32> to vector<2x8x8xbf16>
    "tpu.trace_start"() <{level = 10 : i32, message = "bqd,bkd->bqk"}> : () -> ()
    %cst_37 = arith.constant dense<0.000000e+00> : vector<2x8x8xf32>
    %99 = tpu.matmul %97, %98, %cst_37 {dimension_numbers = #tpu.dot_dimension_numbers<[2], [2], [1], [1], [0, 0, 0, 1, 1, 1], [0], [0]>} : vector<2x8x8xbf16>, vector<2x8x8xbf16>, vector<2x8x8xf32> -> vector<2x8x8xf32>
    "tpu.trace_stop"() : () -> ()
    %cst_38 = arith.constant 0.353553385 : f32
    %100 = vector.broadcast %cst_38 : f32 to vector<2x8x8xf32>
    %101 = arith.mulf %99, %100 : vector<2x8x8xf32>
    %cst_39 = arith.constant dense<0xFF800000> : vector<2x8xf32>
    %102 = vector.multi_reduction <maximumf>, %101, %cst_39 [2] : vector<2x8x8xf32> to vector<2x8xf32>
    %103 = vector.shape_cast %102 : vector<2x8xf32> to vector<2x8x1xf32>
    %104 = vector.broadcast %103 : vector<2x8x1xf32> to vector<2x8x8xf32>
    %105 = arith.subf %101, %104 : vector<2x8x8xf32>
    %106 = math.exp %105 : vector<2x8x8xf32>
    %cst_40 = arith.constant dense<0.000000e+00> : vector<2x8xf32>
    %107 = vector.multi_reduction <add>, %106, %cst_40 [2] : vector<2x8x8xf32> to vector<2x8xf32>
    %108 = vector.shape_cast %107 : vector<2x8xf32> to vector<2x8x1xf32>
    %109 = tpu.reciprocal %108 {approx = true} : vector<2x8x1xf32> -> vector<2x8x1xf32>
    %110 = vector.broadcast %109 : vector<2x8x1xf32> to vector<2x8x8xf32>
    %111 = arith.mulf %106, %110 : vector<2x8x8xf32>
    %112 = arith.truncf %111 : vector<2x8x8xf32> to vector<2x8x8xbf16>
    %113 = arith.truncf %96 : vector<2x8x8xf32> to vector<2x8x8xbf16>
    "tpu.trace_start"() <{level = 10 : i32, message = "bqk,bkd->bqd"}> : () -> ()
    %cst_41 = arith.constant dense<0.000000e+00> : vector<2x8x8xf32>
    %114 = tpu.matmul %112, %113, %cst_41 {dimension_numbers = #tpu.dot_dimension_numbers<[2], [1], [1], [2], [0, 0, 0, 1, 1, 2], [0], [0]>} : vector<2x8x8xbf16>, vector<2x8x8xbf16>, vector<2x8x8xf32> -> vector<2x8x8xf32>
    "tpu.trace_stop"() : () -> ()
    %115 = vector.extract_strided_slice %28 {offsets = [0, 0, 32], sizes = [2, 8, 8], strides = [1, 1, 1]} : vector<2x8x64xf32> to vector<2x8x8xf32>
    %116 = vector.extract_strided_slice %29 {offsets = [0, 0, 32], sizes = [2, 8, 8], strides = [1, 1, 1]} : vector<2x8x64xf32> to vector<2x8x8xf32>
    %117 = vector.extract_strided_slice %30 {offsets = [0, 0, 32], sizes = [2, 8, 8], strides = [1, 1, 1]} : vector<2x8x64xf32> to vector<2x8x8xf32>
    %118 = arith.truncf %115 : vector<2x8x8xf32> to vector<2x8x8xbf16>
    %119 = arith.truncf %116 : vector<2x8x8xf32> to vector<2x8x8xbf16>
    "tpu.trace_start"() <{level = 10 : i32, message = "bqd,bkd->bqk"}> : () -> ()
    %cst_42 = arith.constant dense<0.000000e+00> : vector<2x8x8xf32>
    %120 = tpu.matmul %118, %119, %cst_42 {dimension_numbers = #tpu.dot_dimension_numbers<[2], [2], [1], [1], [0, 0, 0, 1, 1, 1], [0], [0]>} : vector<2x8x8xbf16>, vector<2x8x8xbf16>, vector<2x8x8xf32> -> vector<2x8x8xf32>
    "tpu.trace_stop"() : () -> ()
    %cst_43 = arith.constant 0.353553385 : f32
    %121 = vector.broadcast %cst_43 : f32 to vector<2x8x8xf32>
    %122 = arith.mulf %120, %121 : vector<2x8x8xf32>
    %cst_44 = arith.constant dense<0xFF800000> : vector<2x8xf32>
    %123 = vector.multi_reduction <maximumf>, %122, %cst_44 [2] : vector<2x8x8xf32> to vector<2x8xf32>
    %124 = vector.shape_cast %123 : vector<2x8xf32> to vector<2x8x1xf32>
    %125 = vector.broadcast %124 : vector<2x8x1xf32> to vector<2x8x8xf32>
    %126 = arith.subf %122, %125 : vector<2x8x8xf32>
    %127 = math.exp %126 : vector<2x8x8xf32>
    %cst_45 = arith.constant dense<0.000000e+00> : vector<2x8xf32>
    %128 = vector.multi_reduction <add>, %127, %cst_45 [2] : vector<2x8x8xf32> to vector<2x8xf32>
    %129 = vector.shape_cast %128 : vector<2x8xf32> to vector<2x8x1xf32>
    %130 = tpu.reciprocal %129 {approx = true} : vector<2x8x1xf32> -> vector<2x8x1xf32>
    %131 = vector.broadcast %130 : vector<2x8x1xf32> to vector<2x8x8xf32>
    %132 = arith.mulf %127, %131 : vector<2x8x8xf32>
    %133 = arith.truncf %132 : vector<2x8x8xf32> to vector<2x8x8xbf16>
    %134 = arith.truncf %117 : vector<2x8x8xf32> to vector<2x8x8xbf16>
    "tpu.trace_start"() <{level = 10 : i32, message = "bqk,bkd->bqd"}> : () -> ()
    %cst_46 = arith.constant dense<0.000000e+00> : vector<2x8x8xf32>
    %135 = tpu.matmul %133, %134, %cst_46 {dimension_numbers = #tpu.dot_dimension_numbers<[2], [1], [1], [2], [0, 0, 0, 1, 1, 2], [0], [0]>} : vector<2x8x8xbf16>, vector<2x8x8xbf16>, vector<2x8x8xf32> -> vector<2x8x8xf32>
    "tpu.trace_stop"() : () -> ()
    %136 = vector.extract_strided_slice %28 {offsets = [0, 0, 40], sizes = [2, 8, 8], strides = [1, 1, 1]} : vector<2x8x64xf32> to vector<2x8x8xf32>
    %137 = vector.extract_strided_slice %29 {offsets = [0, 0, 40], sizes = [2, 8, 8], strides = [1, 1, 1]} : vector<2x8x64xf32> to vector<2x8x8xf32>
    %138 = vector.extract_strided_slice %30 {offsets = [0, 0, 40], sizes = [2, 8, 8], strides = [1, 1, 1]} : vector<2x8x64xf32> to vector<2x8x8xf32>
    %139 = arith.truncf %136 : vector<2x8x8xf32> to vector<2x8x8xbf16>
    %140 = arith.truncf %137 : vector<2x8x8xf32> to vector<2x8x8xbf16>
    "tpu.trace_start"() <{level = 10 : i32, message = "bqd,bkd->bqk"}> : () -> ()
    %cst_47 = arith.constant dense<0.000000e+00> : vector<2x8x8xf32>
    %141 = tpu.matmul %139, %140, %cst_47 {dimension_numbers = #tpu.dot_dimension_numbers<[2], [2], [1], [1], [0, 0, 0, 1, 1, 1], [0], [0]>} : vector<2x8x8xbf16>, vector<2x8x8xbf16>, vector<2x8x8xf32> -> vector<2x8x8xf32>
    "tpu.trace_stop"() : () -> ()
    %cst_48 = arith.constant 0.353553385 : f32
    %142 = vector.broadcast %cst_48 : f32 to vector<2x8x8xf32>
    %143 = arith.mulf %141, %142 : vector<2x8x8xf32>
    %cst_49 = arith.constant dense<0xFF800000> : vector<2x8xf32>
    %144 = vector.multi_reduction <maximumf>, %143, %cst_49 [2] : vector<2x8x8xf32> to vector<2x8xf32>
    %145 = vector.shape_cast %144 : vector<2x8xf32> to vector<2x8x1xf32>
    %146 = vector.broadcast %145 : vector<2x8x1xf32> to vector<2x8x8xf32>
    %147 = arith.subf %143, %146 : vector<2x8x8xf32>
    %148 = math.exp %147 : vector<2x8x8xf32>
    %cst_50 = arith.constant dense<0.000000e+00> : vector<2x8xf32>
    %149 = vector.multi_reduction <add>, %148, %cst_50 [2] : vector<2x8x8xf32> to vector<2x8xf32>
    %150 = vector.shape_cast %149 : vector<2x8xf32> to vector<2x8x1xf32>
    %151 = tpu.reciprocal %150 {approx = true} : vector<2x8x1xf32> -> vector<2x8x1xf32>
    %152 = vector.broadcast %151 : vector<2x8x1xf32> to vector<2x8x8xf32>
    %153 = arith.mulf %148, %152 : vector<2x8x8xf32>
    %154 = arith.truncf %153 : vector<2x8x8xf32> to vector<2x8x8xbf16>
    %155 = arith.truncf %138 : vector<2x8x8xf32> to vector<2x8x8xbf16>
    "tpu.trace_start"() <{level = 10 : i32, message = "bqk,bkd->bqd"}> : () -> ()
    %cst_51 = arith.constant dense<0.000000e+00> : vector<2x8x8xf32>
    %156 = tpu.matmul %154, %155, %cst_51 {dimension_numbers = #tpu.dot_dimension_numbers<[2], [1], [1], [2], [0, 0, 0, 1, 1, 2], [0], [0]>} : vector<2x8x8xbf16>, vector<2x8x8xbf16>, vector<2x8x8xf32> -> vector<2x8x8xf32>
    "tpu.trace_stop"() : () -> ()
    %157 = vector.extract_strided_slice %28 {offsets = [0, 0, 48], sizes = [2, 8, 8], strides = [1, 1, 1]} : vector<2x8x64xf32> to vector<2x8x8xf32>
    %158 = vector.extract_strided_slice %29 {offsets = [0, 0, 48], sizes = [2, 8, 8], strides = [1, 1, 1]} : vector<2x8x64xf32> to vector<2x8x8xf32>
    %159 = vector.extract_strided_slice %30 {offsets = [0, 0, 48], sizes = [2, 8, 8], strides = [1, 1, 1]} : vector<2x8x64xf32> to vector<2x8x8xf32>
    %160 = arith.truncf %157 : vector<2x8x8xf32> to vector<2x8x8xbf16>
    %161 = arith.truncf %158 : vector<2x8x8xf32> to vector<2x8x8xbf16>
    "tpu.trace_start"() <{level = 10 : i32, message = "bqd,bkd->bqk"}> : () -> ()
    %cst_52 = arith.constant dense<0.000000e+00> : vector<2x8x8xf32>
    %162 = tpu.matmul %160, %161, %cst_52 {dimension_numbers = #tpu.dot_dimension_numbers<[2], [2], [1], [1], [0, 0, 0, 1, 1, 1], [0], [0]>} : vector<2x8x8xbf16>, vector<2x8x8xbf16>, vector<2x8x8xf32> -> vector<2x8x8xf32>
    "tpu.trace_stop"() : () -> ()
    %cst_53 = arith.constant 0.353553385 : f32
    %163 = vector.broadcast %cst_53 : f32 to vector<2x8x8xf32>
    %164 = arith.mulf %162, %163 : vector<2x8x8xf32>
    %cst_54 = arith.constant dense<0xFF800000> : vector<2x8xf32>
    %165 = vector.multi_reduction <maximumf>, %164, %cst_54 [2] : vector<2x8x8xf32> to vector<2x8xf32>
    %166 = vector.shape_cast %165 : vector<2x8xf32> to vector<2x8x1xf32>
    %167 = vector.broadcast %166 : vector<2x8x1xf32> to vector<2x8x8xf32>
    %168 = arith.subf %164, %167 : vector<2x8x8xf32>
    %169 = math.exp %168 : vector<2x8x8xf32>
    %cst_55 = arith.constant dense<0.000000e+00> : vector<2x8xf32>
    %170 = vector.multi_reduction <add>, %169, %cst_55 [2] : vector<2x8x8xf32> to vector<2x8xf32>
    %171 = vector.shape_cast %170 : vector<2x8xf32> to vector<2x8x1xf32>
    %172 = tpu.reciprocal %171 {approx = true} : vector<2x8x1xf32> -> vector<2x8x1xf32>
    %173 = vector.broadcast %172 : vector<2x8x1xf32> to vector<2x8x8xf32>
    %174 = arith.mulf %169, %173 : vector<2x8x8xf32>
    %175 = arith.truncf %174 : vector<2x8x8xf32> to vector<2x8x8xbf16>
    %176 = arith.truncf %159 : vector<2x8x8xf32> to vector<2x8x8xbf16>
    "tpu.trace_start"() <{level = 10 : i32, message = "bqk,bkd->bqd"}> : () -> ()
    %cst_56 = arith.constant dense<0.000000e+00> : vector<2x8x8xf32>
    %177 = tpu.matmul %175, %176, %cst_56 {dimension_numbers = #tpu.dot_dimension_numbers<[2], [1], [1], [2], [0, 0, 0, 1, 1, 2], [0], [0]>} : vector<2x8x8xbf16>, vector<2x8x8xbf16>, vector<2x8x8xf32> -> vector<2x8x8xf32>
    "tpu.trace_stop"() : () -> ()
    %178 = vector.extract_strided_slice %28 {offsets = [0, 0, 56], sizes = [2, 8, 8], strides = [1, 1, 1]} : vector<2x8x64xf32> to vector<2x8x8xf32>
    %179 = vector.extract_strided_slice %29 {offsets = [0, 0, 56], sizes = [2, 8, 8], strides = [1, 1, 1]} : vector<2x8x64xf32> to vector<2x8x8xf32>
    %180 = vector.extract_strided_slice %30 {offsets = [0, 0, 56], sizes = [2, 8, 8], strides = [1, 1, 1]} : vector<2x8x64xf32> to vector<2x8x8xf32>
    %181 = arith.truncf %178 : vector<2x8x8xf32> to vector<2x8x8xbf16>
    %182 = arith.truncf %179 : vector<2x8x8xf32> to vector<2x8x8xbf16>
    "tpu.trace_start"() <{level = 10 : i32, message = "bqd,bkd->bqk"}> : () -> ()
    %cst_57 = arith.constant dense<0.000000e+00> : vector<2x8x8xf32>
    %183 = tpu.matmul %181, %182, %cst_57 {dimension_numbers = #tpu.dot_dimension_numbers<[2], [2], [1], [1], [0, 0, 0, 1, 1, 1], [0], [0]>} : vector<2x8x8xbf16>, vector<2x8x8xbf16>, vector<2x8x8xf32> -> vector<2x8x8xf32>
    "tpu.trace_stop"() : () -> ()
    %cst_58 = arith.constant 0.353553385 : f32
    %184 = vector.broadcast %cst_58 : f32 to vector<2x8x8xf32>
    %185 = arith.mulf %183, %184 : vector<2x8x8xf32>
    %cst_59 = arith.constant dense<0xFF800000> : vector<2x8xf32>
    %186 = vector.multi_reduction <maximumf>, %185, %cst_59 [2] : vector<2x8x8xf32> to vector<2x8xf32>
    %187 = vector.shape_cast %186 : vector<2x8xf32> to vector<2x8x1xf32>
    %188 = vector.broadcast %187 : vector<2x8x1xf32> to vector<2x8x8xf32>
    %189 = arith.subf %185, %188 : vector<2x8x8xf32>
    %190 = math.exp %189 : vector<2x8x8xf32>
    %cst_60 = arith.constant dense<0.000000e+00> : vector<2x8xf32>
    %191 = vector.multi_reduction <add>, %190, %cst_60 [2] : vector<2x8x8xf32> to vector<2x8xf32>
    %192 = vector.shape_cast %191 : vector<2x8xf32> to vector<2x8x1xf32>
    %193 = tpu.reciprocal %192 {approx = true} : vector<2x8x1xf32> -> vector<2x8x1xf32>
    %194 = vector.broadcast %193 : vector<2x8x1xf32> to vector<2x8x8xf32>
    %195 = arith.mulf %190, %194 : vector<2x8x8xf32>
    %196 = arith.truncf %195 : vector<2x8x8xf32> to vector<2x8x8xbf16>
    %197 = arith.truncf %180 : vector<2x8x8xf32> to vector<2x8x8xbf16>
    "tpu.trace_start"() <{level = 10 : i32, message = "bqk,bkd->bqd"}> : () -> ()
    %cst_61 = arith.constant dense<0.000000e+00> : vector<2x8x8xf32>
    %198 = tpu.matmul %196, %197, %cst_61 {dimension_numbers = #tpu.dot_dimension_numbers<[2], [1], [1], [2], [0, 0, 0, 1, 1, 2], [0], [0]>} : vector<2x8x8xbf16>, vector<2x8x8xbf16>, vector<2x8x8xf32> -> vector<2x8x8xf32>
    "tpu.trace_stop"() : () -> ()
    %199 = tpu.concatenate %51, %72, %93, %114, %135, %156, %177, %198 in 2 : vector<2x8x8xf32>, vector<2x8x8xf32>, vector<2x8x8xf32>, vector<2x8x8xf32>, vector<2x8x8xf32>, vector<2x8x8xf32>, vector<2x8x8xf32>, vector<2x8x8xf32> -> vector<2x8x64xf32>
    %200 = vector.shape_cast %199 : vector<2x8x64xf32> to vector<16x64xf32>
    %c0_62 = arith.constant 0 : index
    %c0_63 = arith.constant 0 : index
    %c0_64 = arith.constant 0 : index
    %201 = vector.load %arg11[%c0_62, %c0_63, %c0_64] : memref<1x64x64xbf16, #tpu.memory_space<vmem>>, vector<1x64x64xbf16>
    %202 = vector.shape_cast %201 : vector<1x64x64xbf16> to vector<64x64xbf16>
    %203 = arith.truncf %200 : vector<16x64xf32> to vector<16x64xbf16>
    %cst_65 = arith.constant dense<0.000000e+00> : vector<16x64xf32>
    %204 = tpu.matmul %203, %202, %cst_65 {dimension_numbers = #tpu.dot_dimension_numbers<[1], [0], [0], [1], [0, 0, 1, 1], [], []>} : vector<16x64xbf16>, vector<64x64xbf16>, vector<16x64xf32> -> vector<16x64xf32>
    %c0_66 = arith.constant 0 : index
    %c0_67 = arith.constant 0 : index
    %c0_68 = arith.constant 0 : index
    %205 = vector.load %arg12[%c0_66, %c0_67, %c0_68] : memref<1x1x64xf32, #tpu.memory_space<vmem>>, vector<1x1x64xf32>
    %206 = vector.shape_cast %205 : vector<1x1x64xf32> to vector<1x64xf32>
    %207 = vector.broadcast %206 : vector<1x64xf32> to vector<16x64xf32>
    %208 = arith.addf %204, %207 : vector<16x64xf32>
    %209 = arith.addf %3, %208 : vector<16x64xf32>
    %c0_69 = arith.constant 0 : index
    %c0_70 = arith.constant 0 : index
    %c0_71 = arith.constant 0 : index
    %210 = vector.load %arg13[%c0_69, %c0_70, %c0_71] : memref<1x1x64xf32, #tpu.memory_space<vmem>>, vector<1x1x64xf32>
    %211 = vector.shape_cast %210 : vector<1x1x64xf32> to vector<1x64xf32>
    %c0_72 = arith.constant 0 : index
    %c0_73 = arith.constant 0 : index
    %c0_74 = arith.constant 0 : index
    %212 = vector.load %arg14[%c0_72, %c0_73, %c0_74] : memref<1x1x64xf32, #tpu.memory_space<vmem>>, vector<1x1x64xf32>
    %213 = vector.shape_cast %212 : vector<1x1x64xf32> to vector<1x64xf32>
    %cst_75 = arith.constant dense<0.000000e+00> : vector<16xf32>
    %214 = vector.multi_reduction <add>, %209, %cst_75 [1] : vector<16x64xf32> to vector<16xf32>
    %215 = vector.shape_cast %214 : vector<16xf32> to vector<16x1xf32>
    %cst_76 = arith.constant 6.400000e+01 : f32
    %216 = vector.broadcast %cst_76 : f32 to vector<16x1xf32>
    %217 = arith.divf %215, %216 : vector<16x1xf32>
    %218 = vector.broadcast %217 : vector<16x1xf32> to vector<16x64xf32>
    %219 = arith.subf %209, %218 : vector<16x64xf32>
    %220 = arith.mulf %219, %219 : vector<16x64xf32>
    %cst_77 = arith.constant dense<0.000000e+00> : vector<16xf32>
    %221 = vector.multi_reduction <add>, %220, %cst_77 [1] : vector<16x64xf32> to vector<16xf32>
    %222 = vector.shape_cast %221 : vector<16xf32> to vector<16x1xf32>
    %cst_78 = arith.constant 6.400000e+01 : f32
    %223 = vector.broadcast %cst_78 : f32 to vector<16x1xf32>
    %224 = arith.divf %222, %223 : vector<16x1xf32>
    %225 = vector.broadcast %217 : vector<16x1xf32> to vector<16x64xf32>
    %226 = arith.subf %209, %225 : vector<16x64xf32>
    %cst_79 = arith.constant 9.99999974E-6 : f32
    %227 = vector.broadcast %cst_79 : f32 to vector<16x1xf32>
    %228 = arith.addf %224, %227 : vector<16x1xf32>
    %229 = math.rsqrt %228 : vector<16x1xf32>
    %230 = vector.broadcast %229 : vector<16x1xf32> to vector<16x64xf32>
    %231 = arith.mulf %226, %230 : vector<16x64xf32>
    %232 = vector.broadcast %211 : vector<1x64xf32> to vector<16x64xf32>
    %233 = arith.mulf %231, %232 : vector<16x64xf32>
    %234 = vector.broadcast %213 : vector<1x64xf32> to vector<16x64xf32>
    %235 = arith.addf %233, %234 : vector<16x64xf32>
    %c0_80 = arith.constant 0 : index
    %c0_81 = arith.constant 0 : index
    %c0_82 = arith.constant 0 : index
    %236 = vector.load %arg15[%c0_80, %c0_81, %c0_82] : memref<1x64x128xbf16, #tpu.memory_space<vmem>>, vector<1x64x128xbf16>
    %237 = vector.shape_cast %236 : vector<1x64x128xbf16> to vector<64x128xbf16>
    %238 = arith.truncf %235 : vector<16x64xf32> to vector<16x64xbf16>
    %cst_83 = arith.constant dense<0.000000e+00> : vector<16x128xf32>
    %239 = tpu.matmul %238, %237, %cst_83 {dimension_numbers = #tpu.dot_dimension_numbers<[1], [0], [0], [1], [0, 0, 1, 1], [], []>} : vector<16x64xbf16>, vector<64x128xbf16>, vector<16x128xf32> -> vector<16x128xf32>
    %c0_84 = arith.constant 0 : index
    %c0_85 = arith.constant 0 : index
    %c0_86 = arith.constant 0 : index
    %240 = vector.load %arg16[%c0_84, %c0_85, %c0_86] : memref<1x1x128xf32, #tpu.memory_space<vmem>>, vector<1x1x128xf32>
    %241 = vector.shape_cast %240 : vector<1x1x128xf32> to vector<1x128xf32>
    %242 = vector.broadcast %241 : vector<1x128xf32> to vector<16x128xf32>
    %243 = arith.addf %239, %242 : vector<16x128xf32>
    %cst_87 = arith.constant 0.000000e+00 : f32
    %244 = vector.broadcast %cst_87 : f32 to vector<16x128xf32>
    %245 = arith.maximumf %243, %244 : vector<16x128xf32>
    %c0_88 = arith.constant 0 : index
    %c0_89 = arith.constant 0 : index
    %c0_90 = arith.constant 0 : index
    %246 = vector.load %arg17[%c0_88, %c0_89, %c0_90] : memref<1x128x64xbf16, #tpu.memory_space<vmem>>, vector<1x128x64xbf16>
    %247 = vector.shape_cast %246 : vector<1x128x64xbf16> to vector<128x64xbf16>
    %248 = arith.truncf %245 : vector<16x128xf32> to vector<16x128xbf16>
    %cst_91 = arith.constant dense<0.000000e+00> : vector<16x64xf32>
    %249 = tpu.matmul %248, %247, %cst_91 {dimension_numbers = #tpu.dot_dimension_numbers<[1], [0], [0], [1], [0, 0, 1, 1], [], []>} : vector<16x128xbf16>, vector<128x64xbf16>, vector<16x64xf32> -> vector<16x64xf32>
    %c0_92 = arith.constant 0 : index
    %c0_93 = arith.constant 0 : index
    %c0_94 = arith.constant 0 : index
    %250 = vector.load %arg18[%c0_92, %c0_93, %c0_94] : memref<1x1x64xf32, #tpu.memory_space<vmem>>, vector<1x1x64xf32>
    %251 = vector.shape_cast %250 : vector<1x1x64xf32> to vector<1x64xf32>
    %252 = vector.broadcast %251 : vector<1x64xf32> to vector<16x64xf32>
    %253 = arith.addf %249, %252 : vector<16x64xf32>
    %254 = arith.addf %235, %253 : vector<16x64xf32>
    %c0_95 = arith.constant 0 : index
    %c0_96 = arith.constant 0 : index
    %c0_97 = arith.constant 0 : index
    %255 = vector.load %arg19[%c0_95, %c0_96, %c0_97] : memref<1x1x64xf32, #tpu.memory_space<vmem>>, vector<1x1x64xf32>
    %256 = vector.shape_cast %255 : vector<1x1x64xf32> to vector<1x64xf32>
    %c0_98 = arith.constant 0 : index
    %c0_99 = arith.constant 0 : index
    %c0_100 = arith.constant 0 : index
    %257 = vector.load %arg20[%c0_98, %c0_99, %c0_100] : memref<1x1x64xf32, #tpu.memory_space<vmem>>, vector<1x1x64xf32>
    %258 = vector.shape_cast %257 : vector<1x1x64xf32> to vector<1x64xf32>
    %cst_101 = arith.constant dense<0.000000e+00> : vector<16xf32>
    %259 = vector.multi_reduction <add>, %254, %cst_101 [1] : vector<16x64xf32> to vector<16xf32>
    %260 = vector.shape_cast %259 : vector<16xf32> to vector<16x1xf32>
    %cst_102 = arith.constant 6.400000e+01 : f32
    %261 = vector.broadcast %cst_102 : f32 to vector<16x1xf32>
    %262 = arith.divf %260, %261 : vector<16x1xf32>
    %263 = vector.broadcast %262 : vector<16x1xf32> to vector<16x64xf32>
    %264 = arith.subf %254, %263 : vector<16x64xf32>
    %265 = arith.mulf %264, %264 : vector<16x64xf32>
    %cst_103 = arith.constant dense<0.000000e+00> : vector<16xf32>
    %266 = vector.multi_reduction <add>, %265, %cst_103 [1] : vector<16x64xf32> to vector<16xf32>
    %267 = vector.shape_cast %266 : vector<16xf32> to vector<16x1xf32>
    %cst_104 = arith.constant 6.400000e+01 : f32
    %268 = vector.broadcast %cst_104 : f32 to vector<16x1xf32>
    %269 = arith.divf %267, %268 : vector<16x1xf32>
    %270 = vector.broadcast %262 : vector<16x1xf32> to vector<16x64xf32>
    %271 = arith.subf %254, %270 : vector<16x64xf32>
    %cst_105 = arith.constant 9.99999974E-6 : f32
    %272 = vector.broadcast %cst_105 : f32 to vector<16x1xf32>
    %273 = arith.addf %269, %272 : vector<16x1xf32>
    %274 = math.rsqrt %273 : vector<16x1xf32>
    %275 = vector.broadcast %274 : vector<16x1xf32> to vector<16x64xf32>
    %276 = arith.mulf %271, %275 : vector<16x64xf32>
    %277 = vector.broadcast %256 : vector<1x64xf32> to vector<16x64xf32>
    %278 = arith.mulf %276, %277 : vector<16x64xf32>
    %279 = vector.broadcast %258 : vector<1x64xf32> to vector<16x64xf32>
    %280 = arith.addf %278, %279 : vector<16x64xf32>
    %c0_106 = arith.constant 0 : index
    %c0_107 = arith.constant 0 : index
    %281 = vector.load %arg24[%c0_106, %c0_107] : memref<16x64xf32, #tpu.memory_space<vmem>>, vector<16x64xf32>
    tpu.vector_store %arg24[%c0_106, %c0_107], %280 {strides = array<i32>} : memref<16x64xf32, #tpu.memory_space<vmem>>, vector<16x64xf32>,
    %c2_i32 = arith.constant 2 : i32
    %282 = arith.cmpi eq, %arg0, %c2_i32 : i32
    %283 = arith.extui %282 : i1 to i32
    %c0_i32_108 = arith.constant 0 : i32
    %284 = arith.cmpi ne, %283, %c0_i32_108 : i32
    scf.if %284 {
      %285 = vector.shape_cast %280 : vector<16x64xf32> to vector<2x8x64xf32>
      %cst_109 = arith.constant dense<0.000000e+00> : vector<2x64xf32>
      %286 = vector.multi_reduction <add>, %285, %cst_109 [1] : vector<2x8x64xf32> to vector<2x64xf32>
      %cst_110 = arith.constant 8.000000e+00 : f32
      %287 = vector.broadcast %cst_110 : f32 to vector<2x64xf32>
      %288 = arith.divf %286, %287 : vector<2x64xf32>
      %c0_111 = arith.constant 0 : index
      %c0_112 = arith.constant 0 : index
      %289 = vector.load %arg21[%c0_111, %c0_112] : memref<64x32xbf16, #tpu.memory_space<vmem>>, vector<64x32xbf16>
      %290 = arith.truncf %288 : vector<2x64xf32> to vector<2x64xbf16>
      %cst_113 = arith.constant dense<0.000000e+00> : vector<2x32xf32>
      %291 = tpu.matmul %290, %289, %cst_113 {dimension_numbers = #tpu.dot_dimension_numbers<[1], [0], [0], [1], [0, 0, 1, 1], [], []>} : vector<2x64xbf16>, vector<64x32xbf16>, vector<2x32xf32> -> vector<2x32xf32>
      %c0_114 = arith.constant 0 : index
      %c0_115 = arith.constant 0 : index
      %292 = vector.load %arg22[%c0_114, %c0_115] : memref<1x32xf32, #tpu.memory_space<vmem>>, vector<1x32xf32>
      %293 = vector.broadcast %292 : vector<1x32xf32> to vector<2x32xf32>
      %294 = arith.addf %291, %293 : vector<2x32xf32>
      %c0_116 = arith.constant 0 : index
      %c0_117 = arith.constant 0 : index
      %295 = vector.load %arg23[%c0_116, %c0_117] : memref<2x32xf32, #tpu.memory_space<vmem>>, vector<2x32xf32>
      tpu.vector_store %arg23[%c0_116, %c0_117], %294 {strides = array<i32>} : memref<2x32xf32, #tpu.memory_space<vmem>>, vector<2x32xf32>,
    } else {
    }
    return
  }
  func.func @transform_0(%arg0: i32) -> (i32, i32) {
    %c0_i32 = arith.constant 0 : i32
    %c0_i32_0 = arith.constant 0 : i32
    %c0_i32_1 = arith.constant 0 : i32
    return %c0_i32, %c0_i32_0 : i32, i32
  }
  func.func @transform_1(%arg0: i32) -> (i32, i32) {
    %c0_i32 = arith.constant 0 : i32
    %c0_i32_0 = arith.constant 0 : i32
    %c0_i32_1 = arith.constant 0 : i32
    return %c0_i32, %c0_i32_0 : i32, i32
  }
  func.func @transform_2(%arg0: i32) -> (i32, i32) {
    %c0_i32 = arith.constant 0 : i32
    %c0_i32_0 = arith.constant 0 : i32
    %c0_i32_1 = arith.constant 0 : i32
    return %c0_i32, %c0_i32_0 : i32, i32
  }
  func.func @transform_3(%arg0: i32) -> (i32, i32) {
    %c0_i32 = arith.constant 0 : i32
    %c0_i32_0 = arith.constant 0 : i32
    %c0_i32_1 = arith.constant 0 : i32
    return %c0_i32, %c0_i32_0 : i32, i32
  }
  func.func @transform_4(%arg0: i32) -> (i32, i32, i32) {
    %c0_i32 = arith.constant 0 : i32
    %c0_i32_0 = arith.constant 0 : i32
    %c0_i32_1 = arith.constant 0 : i32
    return %arg0, %c0_i32, %c0_i32_0 : i32, i32, i32
  }
  func.func @transform_5(%arg0: i32) -> (i32, i32, i32) {
    %c0_i32 = arith.constant 0 : i32
    %c0_i32_0 = arith.constant 0 : i32
    %c0_i32_1 = arith.constant 0 : i32
    return %arg0, %c0_i32, %c0_i32_0 : i32, i32, i32
  }
  func.func @transform_6(%arg0: i32) -> (i32, i32, i32) {
    %c0_i32 = arith.constant 0 : i32
    %c0_i32_0 = arith.constant 0 : i32
    %c0_i32_1 = arith.constant 0 : i32
    return %arg0, %c0_i32, %c0_i32_0 : i32, i32, i32
  }
  func.func @transform_7(%arg0: i32) -> (i32, i32, i32) {
    %c0_i32 = arith.constant 0 : i32
    %c0_i32_0 = arith.constant 0 : i32
    %c0_i32_1 = arith.constant 0 : i32
    return %arg0, %c0_i32, %c0_i32_0 : i32, i32, i32
  }
  func.func @transform_8(%arg0: i32) -> (i32, i32, i32) {
    %c0_i32 = arith.constant 0 : i32
    %c0_i32_0 = arith.constant 0 : i32
    %c0_i32_1 = arith.constant 0 : i32
    return %arg0, %c0_i32, %c0_i32_0 : i32, i32, i32
  }
  func.func @transform_9(%arg0: i32) -> (i32, i32, i32) {
    %c0_i32 = arith.constant 0 : i32
    %c0_i32_0 = arith.constant 0 : i32
    %c0_i32_1 = arith.constant 0 : i32
    return %arg0, %c0_i32, %c0_i32_0 : i32, i32, i32
  }
  func.func @transform_10(%arg0: i32) -> (i32, i32, i32) {
    %c0_i32 = arith.constant 0 : i32
    %c0_i32_0 = arith.constant 0 : i32
    %c0_i32_1 = arith.constant 0 : i32
    return %arg0, %c0_i32, %c0_i32_0 : i32, i32, i32
  }
  func.func @transform_11(%arg0: i32) -> (i32, i32, i32) {
    %c0_i32 = arith.constant 0 : i32
    %c0_i32_0 = arith.constant 0 : i32
    %c0_i32_1 = arith.constant 0 : i32
    return %arg0, %c0_i32, %c0_i32_0 : i32, i32, i32
  }
  func.func @transform_12(%arg0: i32) -> (i32, i32, i32) {
    %c0_i32 = arith.constant 0 : i32
    %c0_i32_0 = arith.constant 0 : i32
    %c0_i32_1 = arith.constant 0 : i32
    return %arg0, %c0_i32, %c0_i32_0 : i32, i32, i32
  }
  func.func @transform_13(%arg0: i32) -> (i32, i32, i32) {
    %c0_i32 = arith.constant 0 : i32
    %c0_i32_0 = arith.constant 0 : i32
    %c0_i32_1 = arith.constant 0 : i32
    return %arg0, %c0_i32, %c0_i32_0 : i32, i32, i32
  }
  func.func @transform_14(%arg0: i32) -> (i32, i32, i32) {
    %c0_i32 = arith.constant 0 : i32
    %c0_i32_0 = arith.constant 0 : i32
    %c0_i32_1 = arith.constant 0 : i32
    return %arg0, %c0_i32, %c0_i32_0 : i32, i32, i32
  }
  func.func @transform_15(%arg0: i32) -> (i32, i32, i32) {
    %c0_i32 = arith.constant 0 : i32
    %c0_i32_0 = arith.constant 0 : i32
    %c0_i32_1 = arith.constant 0 : i32
    return %arg0, %c0_i32, %c0_i32_0 : i32, i32, i32
  }
  func.func @transform_16(%arg0: i32) -> (i32, i32, i32) {
    %c0_i32 = arith.constant 0 : i32
    %c0_i32_0 = arith.constant 0 : i32
    %c0_i32_1 = arith.constant 0 : i32
    return %arg0, %c0_i32, %c0_i32_0 : i32, i32, i32
  }
  func.func @transform_17(%arg0: i32) -> (i32, i32, i32) {
    %c0_i32 = arith.constant 0 : i32
    %c0_i32_0 = arith.constant 0 : i32
    %c0_i32_1 = arith.constant 0 : i32
    return %arg0, %c0_i32, %c0_i32_0 : i32, i32, i32
  }
  func.func @transform_18(%arg0: i32) -> (i32, i32, i32) {
    %c0_i32 = arith.constant 0 : i32
    %c0_i32_0 = arith.constant 0 : i32
    %c0_i32_1 = arith.constant 0 : i32
    return %arg0, %c0_i32, %c0_i32_0 : i32, i32, i32
  }
  func.func @transform_19(%arg0: i32) -> (i32, i32, i32) {
    %c0_i32 = arith.constant 0 : i32
    %c0_i32_0 = arith.constant 0 : i32
    %c0_i32_1 = arith.constant 0 : i32
    return %arg0, %c0_i32, %c0_i32_0 : i32, i32, i32
  }
  func.func @transform_20(%arg0: i32) -> (i32, i32) {
    %c0_i32 = arith.constant 0 : i32
    %c0_i32_0 = arith.constant 0 : i32
    %c0_i32_1 = arith.constant 0 : i32
    return %c0_i32, %c0_i32_0 : i32, i32
  }
  func.func @transform_21(%arg0: i32) -> (i32, i32) {
    %c0_i32 = arith.constant 0 : i32
    %c0_i32_0 = arith.constant 0 : i32
    %c0_i32_1 = arith.constant 0 : i32
    return %c0_i32, %c0_i32_0 : i32, i32
  }
  func.func @transform_22(%arg0: i32) -> (i32, i32) {
    %c0_i32 = arith.constant 0 : i32
    %c0_i32_0 = arith.constant 0 : i32
    %c0_i32_1 = arith.constant 0 : i32
    return %c0_i32, %c0_i32_0 : i32, i32
  }
}

</mosaic_0001>

<bundles_post_ra>
// kernel: forward.5
= control target key start
LH: loop header
LB: loop body
LE: loop exit
PB: predicated region body
PF: predicated region fallthrough
CT: control target
= control target key end

     0   :  { %v521_v0 = vmov 0.0   ;;  %vm522_vm0 = vmmov 0   ;;  %vm58_vm1 = vcmask 130048   ;;  %vm143_vm2 = vcmask 523264   ;;  %s523_s30 = smov 80   ;;  %s687_s3 = inlined_call_operand.vmem [shape: bf16[16,64], index: 3, kind: input, shape index: {}]   ;;  %s688_s1 = inlined_call_operand.vmem [shape: f32[2,16], index: 1, kind: input, shape index: {}]   ;;  %s689_s5 = inlined_call_operand.vmem [shape: bf16[64,16], index: 5, kind: input, shape index: {}]   ;;  %s690_s4 = inlined_call_operand.vmem [shape: f32[1,64], index: 4, kind: input, shape index: {}]   ;;  %s691_s2 = inlined_call_operand.vmem [shape: f32[2,2,32], index: 2, kind: input, shape index: {}]   ;;  %s692_s7 = inlined_call_operand.vmem [shape: bf16[112,64], index: 7, kind: input, shape index: {}]   ;;  %s693_s6 = inlined_call_operand.vmem [shape: f32[1,16], index: 6, kind: input, shape index: {}]   ;;  %s694_s9 = inlined_call_operand.vmem [shape: bf16[64,1], index: 9, kind: input, shape index: {}]   ;;  %s695_s0 = inlined_call_operand.vmem [shape: f32[2,32], index: 0, kind: input, shape index: {}]   ;;  %s696_s10 = inlined_call_operand.<no memory space> [shape: f32[1,1], index: 10, kind: input, shape index: {}]   ;;  %s697_s8 = inlined_call_operand.vmem [shape: f32[1,64], index: 8, kind: input, shape index: {}]   ;;  %s698_s11 = inlined_call_operand.vmem [shape: f32[2,1], index: 11, kind: output, shape index: {}]  }
   0x1   :  { %452 = vmatprep.subr.bf16.mxu0 %v521_v0  ;;  %v505_v1 = vld [vmem:[%s687_s3] sm:$0xff]   ;;  %454 = vmatprep.mubr.msk.bf16.mxu0 %vm522_vm0, %v521_v0  ;;  %v506_v4 = vld [vmem:[%s689_s5 + $0x18] sm:$0xff]   ;;  %v507_v5 = vld [vmem:[%s689_s5 + $0x10] sm:$0xff]   ;;  %vm203_vm3 = vcmask 261120   ;;  %vm205_vm4 = vcmask 392192   ;;  %vm207_vm5 = vcmask 654336   ;;  %v16_v43 = vstv %s696_s10 }
   0x2   :  { %v41_v2 = vld [vmem:[%s688_s1] sm:$0x3]  ;;  %458 = vmatprep.subr.bf16.mxu1 %v521_v0  ;;  %466 = vmatprep.mubr.msk.bf16.mxu1 %vm522_vm0, %v521_v0  ;;  %v508_v6 = vld [vmem:[%s689_s5 + $0x8] sm:$0xff]   ;;  %v416_v16 = vld [vmem:[%s691_s2 + $0x2] sm:$0x3]  ;;  %vm273_vm6 = vcmask 916480  }
   0x3   :  { %453 = vmatpush3.bf16.msra.mxu0 %v505_v1  ;;  %v44_v3 = vpack.c.bf16 %v41_v2, %v41_v2  ;;  %459 = vmatpush3.bf16.msra.mxu1 %v506_v4  ;;  %v509_v7 = vld [vmem:[%s689_s5] sm:$0xff]   ;;  %v510_v17 = vld [vmem:[%s692_s7 + $0x30] sm:$0xff]   ;;  %v511_v18 = vld [vmem:[%s692_s7 + $0x28] sm:$0xff]   ;;  %17 = vst [vmem:[#allocation2] sm:$0x1] %v16_v43  ;;  %vm401_vm7 = vcmask 1024  }
   0x4   :  { %470 = vmatprep.subr.bf16.mxu0 %v521_v0  ;;  %460 = vmatprep.subr.bf16.mxu1 %v521_v0  ;;  %v407_v8 = vld [vmem:[%s690_s4] ss:$0 sm:$0xff]  ;;  %v513_v20 = vld [vmem:[%s692_s7 + $0x18] sm:$0xff]   ;;  %v514_v21 = vld [vmem:[%s692_s7 + $0x10] sm:$0xff]  }
   0x5   :  { %200 = vrot.lane.b32.xlu1 %v416_v16, %s523_s30  ;;  %v512_v19 = vld [vmem:[%s692_s7 + $0x20] sm:$0xff]   ;;  %v515_v22 = vld [vmem:[%s692_s7 + $0x8] sm:$0xff]   ;;  %v517_v25 = vld [vmem:[%s694_s9 + $0x18] sm:$0xff]  }
   0x6   :  { %455 = vmatmul.mubr.msk.bf16.vlgmr.msra.gmra.mxu0 %vm58_vm1, %v44_v3  ;;  %v516_v23 = vld [vmem:[%s692_s7] sm:$0xff]   ;;  %v518_v28 = vld [vmem:[%s694_s9 + $0x10] sm:$0xff]   ;;  %s524_s7 = smov 32   ;;  %v519_v41 = vld [vmem:[%s694_s9 + $0x8] sm:$0xff]  }
   0x7   :  { %484 = vmatprep.mubr.msk.bf16.mxu0 %vm522_vm0, %v521_v0  ;;  %461 = vmatpush3.bf16.msra.mxu1 %v507_v5  ;;  %v410_v24 = vld [vmem:[%s693_s6] ss:$0 sm:$0xff]  ;;  %s525_s6 = smov 48  }
   0x8   :  { %462 = vmatprep.subr.bf16.mxu1 %v521_v0  ;;  %471 = vmatpush3.bf16.msra.mxu0 %v510_v17  ;;  %v188_v31 = vld [vmem:[%s691_s2] sm:$0x3] }
   0x9   :  { %472 = vmatprep.subr.bf16.mxu0 %v521_v0  ;;  %v187_v34 = vld [vmem:[%s695_s0] sm:$0x3] }
   0xa   :  { %v520_v42 = vld [vmem:[%s694_s9] sm:$0xff]  }
   0xb   :  { %463 = vmatpush3.bf16.msra.mxu1 %v508_v6  ;;  %v417_v44 = vld [vmem:[%s697_s8] ss:$0 sm:$0xff] }
   0xc   :  { %464 = vmatprep.subr.bf16.mxu1 %v521_v0  ;;  %473 = vmatpush3.bf16.msra.mxu0 %v511_v18  ;;  %v426_v52 = vld [vmem:[#allocation2] ss:$0 sm:$0xff] }
   0xd   :  { %474 = vmatprep.subr.bf16.mxu0 %v521_v0 }
   0xf   :  { %465 = vmatpush3.bf16.msra.mxu1 %v509_v7 }
  0x10   :  { %488 = vmatprep.subr.bf16.mxu1 %v521_v0  ;;  %475 = vmatpush3.bf16.msra.mxu0 %v512_v19 }
  0x11   :  { %476 = vmatprep.subr.bf16.mxu0 %v521_v0 }
  0x14   :  { %477 = vmatpush3.bf16.msra.mxu0 %v513_v20 }
  0x15   :  { %478 = vmatprep.subr.bf16.mxu0 %v521_v0 }
  0x18   :  { %479 = vmatpush3.bf16.msra.mxu0 %v514_v21 }
  0x19   :  { %480 = vmatprep.subr.bf16.mxu0 %v521_v0 }
  0x1c   :  { %481 = vmatpush3.bf16.msra.mxu0 %v515_v22 }
  0x1d   :  { %482 = vmatprep.subr.bf16.mxu0 %v521_v0 }
  0x20   :  { %483 = vmatpush3.bf16.msra.mxu0 %v516_v23 }
  0x77   :  { %v201_v35 = vpop.permute.xlu1 %200 }
  0xc6   :  { %v96_v9 = vpop.f32.mrf.mxu0 }
  0xc7   :  { %v97_v10 = vadd.f32 %v407_v8, %v96_v9 }
  0xc8   :  { %v456_v11 = vpop.f32.mrf.mxu0 }
  0xc9   :  { %v102_v12 = vmax.f32 %v97_v10, 0.0 }
  0xca   :  { %v99_v13 = vpop.f32.mrf.mxu0 }
  0xcb   :  { %v111_v14 = vpack.c.bf16 %v102_v12, %v102_v12 }
  0xcc   :  { %v457_v15 = vpop.f32.mrf.mxu0 }
  0xcd   :  { %467 = vmatmul.mubr.msk.bf16.vlgmr.msra.gmra.mxu1 %vm143_vm2, %v111_v14 }
  0xce   :  { %496 = vmatprep.mubr.msk.bf16.mxu1 %vm522_vm0, %v521_v0  ;;  %489 = vmatpush3.bf16.msra.mxu1 %v517_v25 }
  0xcf   :  { %490 = vmatprep.subr.bf16.mxu1 %v521_v0 }
  0xd2   :  { %491 = vmatpush3.bf16.msra.mxu1 %v518_v28 }
  0xd3   :  { %492 = vmatprep.subr.bf16.mxu1 %v521_v0 }
  0xd6   :  { %493 = vmatpush3.bf16.msra.mxu1 %v519_v41 }
  0xd7   :  { %494 = vmatprep.subr.bf16.mxu1 %v521_v0 }
  0xda   :  { %495 = vmatpush3.bf16.msra.mxu1 %v520_v42 }
 0x18d   :  { %v181_v26 = vpop.f32.mrf.mxu1 }
 0x18e   :  { %v182_v27 = vadd.f32 %v410_v24, %v181_v26 }
 0x18f   :  { %v468_v29 = vpop.f32.mrf.mxu1 }
 0x190   :  { %192 = vrot.lane.b32.xlu0 %v182_v27, %s524_s7 }
 0x191   :  { %v184_v30 = vpop.f32.mrf.mxu1 }
 0x193   :  { %v469_v32 = vpop.f32.mrf.mxu1 }
 0x194   :  { %196 = vrot.lane.b32.xlu0 %v188_v31, %s525_s6 }
 0x202   :  { %v193_v33 = vpop.permute.xlu0 %192 }
 0x203   :  { %v204_v36 = vsel %vm203_vm3, %v187_v34, %v193_v33 }
 0x206   :  { %v197_v37 = vpop.permute.xlu0 %196 }
 0x207   :  { %v206_v38 = vsel %vm205_vm4, %v204_v36, %v197_v37 }
 0x208   :  { %v208_v39 = vsel %vm207_vm5, %v206_v38, %v201_v35 }
 0x209   :  { %v223_v40 = vpack.c.bf16 %v208_v39, %v208_v39 }
 0x20b   :  { %485 = vmatmul.mubr.msk.bf16.vlgmr.msra.gmra.mxu0 %vm273_vm6, %v223_v40 }
 0x2cb   :  { %v311_v45 = vpop.f32.mrf.mxu0 }
 0x2cc   :  { %v312_v46 = vadd.f32 %v417_v44, %v311_v45 }
 0x2cd   :  { %v486_v47 = vpop.f32.mrf.mxu0 }
 0x2ce   :  { %v317_v48 = vmax.f32 %v312_v46, 0.0 }
 0x2cf   :  { %v314_v49 = vpop.f32.mrf.mxu0 }
 0x2d0   :  { %v326_v50 = vpack.c.bf16 %v317_v48, %v317_v48 }
 0x2d1   :  { %v487_v51 = vpop.f32.mrf.mxu0 }
 0x2d2   :  { %497 = vmatmul.mubr.msk.bf16.vlgmr.msra.gmra.mxu1 %vm143_vm2, %v326_v50 }
 0x392   :  { %v395_v53 = vpop.f32.mrf.mxu1 }
 0x393   :  { %v396_v54 = vadd.f32 %v426_v52, %v395_v53 }
 0x394   :  { %v498_v55 = vpop.f32.mrf.mxu1 }
 0x395   :  { %402 = vst.msk [vmem:[%s698_s11] sm:$0x3] %vm401_vm7, %v396_v54 }
 0x396   :  { %v398_v56 = vpop.f32.mrf.mxu1 }
 0x398   :  { %v499_v57 = vpop.f32.mrf.mxu1 }

// kernel: forward.4
= control target key start
LH: loop header
LB: loop body
LE: loop exit
PB: predicated region body
PF: predicated region fallthrough
CT: control target
= control target key end

     0   :  { %s2900_s29 = smov 0   ;;  %s4190_s0 = inlined_call_operand.vmem [shape: f32[2,3,512], index: 0, kind: input, shape index: {}]   ;;  %s4191_s1 = inlined_call_operand.vmem [shape: f32[9,512], index: 1, kind: input, shape index: {}]   ;;  %s4192_s2 = inlined_call_operand.vmem [shape: f32[2,512], index: 2, kind: input, shape index: {}]   ;;  %s4193_s3 = inlined_call_operand.vmem [shape: bf16[2,16,27], index: 3, kind: input, shape index: {}]   ;;  %s4194_s4 = inlined_call_operand.vmem [shape: f32[2,16,1], index: 4, kind: input, shape index: {}]   ;;  %s4195_s5 = inlined_call_operand.vmem [shape: f32[2,16,1], index: 5, kind: input, shape index: {}]   ;;  %s4196_s6 = inlined_call_operand.vmem [shape: bf16[2,16,144], index: 6, kind: input, shape index: {}]   ;;  %s4197_s7 = inlined_call_operand.vmem [shape: f32[2,16,1], index: 7, kind: input, shape index: {}]   ;;  %s4198_s8 = inlined_call_operand.vmem [shape: f32[2,16,1], index: 8, kind: input, shape index: {}]   ;;  %s4199_s9 = inlined_call_operand.vmem [shape: bf16[2,16,144], index: 9, kind: input, shape index: {}]   ;;  %s4200_s10 = inlined_call_operand.vmem [shape: f32[2,16,1], index: 10, kind: input, shape index: {}]   ;;  %s4201_s11 = inlined_call_operand.vmem [shape: f32[2,16,1], index: 11, kind: input, shape index: {}]   ;;  %s4202_s12 = inlined_call_operand.vmem [shape: bf16[2,16,32], index: 12, kind: input, shape index: {}]   ;;  %s4203_s13 = inlined_call_operand.vmem [shape: f32[2,1,32], index: 13, kind: input, shape index: {}]   ;;  %s4204_s14 = inlined_call_operand.vmem [shape: f32[2,2,32], index: 14, kind: output, shape index: {}]  }
   0x1 LB: > { %s2699_s30 = sadd.s32 4294967295, %s2810_s29   ;;  %p2703_p0 = scmp.ge.s32.totalorder %s2810_s29, 1  ;;  %s2810_s29 = sphi %s2900_s29, %s24_s29  }
   0x2   : > { %p520_p1 = scmp.lt.s32.totalorder %s2810_s29, 3 }
   0x4   : > { %p521_p2 = pnand %p2703_p0, %p520_p1 }
   0x6   : > { %524 = sbr.rel (%p521_p2) target bundleno = 1710 (0x6ae), region = 76 }
   0xb   : > { %p618_p3 = scmp.lt.s32.totalorder %s2699_s30, 1  ;;  %s2812_s19 = smov 127   ;;  %v2819_v4 = vmov 0   ;;  %v718_v12 = vlaneseq  ;;  %v3006_v20 = vld [vmem:[%s4191_s1 + $0x18] sm:$0xff]  ;;  %v3016_v23 = vld [vmem:[%s4191_s1 + $0x8] sm:$0xff]  ;;  %vm883_vm0 = vcmask 1039360  }
   0xc   : > { %s2813_s20 = smov 113   ;;  %s2814_s21 = smov 112   ;;  %1199 = vmatprep.mubr.bf16.mxu0 %v2819_v4  ;;  %1242 = vmatprep.mubr.bf16.mxu1 %v2819_v4  ;;  %vm920_vm1 = vcmask 924672   ;;  %vm957_vm2 = vcmask 916480   ;;  %v3027_v26 = vld [vmem:[%s4191_s1 + $0x10] sm:$0xff]  ;;  %vm1126_vm3 = vcmask 1041408  }
   0xd   : > { %s4428_s30 = smov (!%p618_p3, %s2699_s30), 1  ;;  %s2815_s22 = smov 111   ;;  %2788 = vset.pattern.permute.xlu1 %v2819_v4  ;;  %2787 = vset.pattern.permute.xlu0 %v2819_v4  ;;  %v2993_v15 = vshrl.u32 %v718_v12, 7  ;;  %vm994_vm4 = vcmask 908288   ;;  %vm1131_vm5 = vcmask 1044480   ;;  %vm1106_vm6 = vcmask 1045504  }
   0xe   : > { %s2911_s15 = sshll.u32 %s4428_s30, 4  ;;  %s4208_s23 = smov 15   ;;  %v2728_v60 = vld [vmem:[%s4191_s1 + $0x28] ss:$0 sm:$0xff]  ;;  %v2821_v61 = vmov 65535   ;;  %vm783_vm7 = vcmask 121856  }
   0xf   : > { %s622_s18 = scalar_lea.vmem %s4190_s0, %s2911_s15  ;;  %s4221_s24 = smov 1   ;;  %4294 = vst [vmem:[#allocation2_spill] sm:$0xff] %v2993_v15  ;;  %v2998_v18 = vsub.s32 5, %v2993_v15  ;;  %v3001_v19 = vsub.s32 7, %v2993_v15  ;;  %v3009_v21 = vsub.s32 6, %v2993_v15  ;;  %v1153_v62 = vsel %vm1131_vm5, 4294967295, %v2821_v61 }
  0x10   : > { %v2917_v0 = vld [vmem:[%s622_s18 + $0x8] sm:$0x77]  ;;  %v2919_v1 = vld [vmem:[%s622_s18] sm:$0x77]  ;;  %s4206_s25 = smov 16   ;;  %s4205_s26 = sshll.u32 %s4428_s30, 3 }
  0x11   : > { %879 = vrot.lane.b32.xlu0 %v2917_v0, %s2812_s19  ;;  %v700_v2 = vcombine.high %v2917_v0, %v2917_v0  ;;  %v699_v3 = vcombine.high %v2919_v1, %v2919_v1  ;;  %s2972_s16 = scalar_lea.vmem %s4193_s3, %s4205_s26  ;;  %s4219_s17 = smov 17   ;;  %v3020_v24 = vrot.slane %v3016_v23, %v2998_v18  ;;  %v3031_v27 = vrot.slane %v3006_v20, %v2998_v18  ;;  %v2729_v4 = vld [vmem:[%s4191_s1 + $0x30] ss:$0 sm:$0xff] }
  0x12   : > { %s632_s28 = scalar_lea.vmem %s4194_s4, %s2911_s15  ;;  %v3037_v29 = vrot.slane %v3006_v20, %v3009_v21  ;;  %v3041_v30 = vrot.slane %v3016_v23, %v3001_v19  ;;  %v3045_v31 = vrot.slane %v3016_v23, %v3009_v21  ;;  %v3049_v32 = vrot.slane %v3027_v26, %v3009_v21  ;;  %s4323_s27 = smov 16  }
  0x13   : > { %881 = vrot.lane.b32.xlu1 %v700_v2, %s2812_s19  ;;  %v693_v5 = vld [vmem:[%s632_s28] sm:$0xff]  ;;  %v694_v6 = vld [vmem:[%s632_s28 + $0x8] sm:$0xff]  ;;  %v3054_v35 = vrot.slane %v3027_v26, %v3001_v19  ;;  %v3063_v39 = vrot.slane %v3006_v20, %v3001_v19  ;;  %v3067_v40 = vrot.slane %v3027_v26, %v2998_v18  ;;  %vm820_vm8 = vcmask 7168   ;;  %s647_s28 = scalar_lea.vmem %s4197_s7, %s2911_s15  ;;  %s2726_s26 = sshll.u32 %s4428_s30, 1 }
  0x14   : > { %4295 = vst [vmem:[#allocation3_spill] sm:$0xff] %v3037_v29  ;;  %4296 = vst [vmem:[#allocation4_spill] sm:$0xff] %v3041_v30  ;;  %vm1111_vm9 = vcmask 1040384   ;;  %vm746_vm10 = vcmask 130048   ;;  %vm1116_vm11 = vcmask 1043456   ;;  %vm1121_vm12 = vcmask 1046528  }
  0x15   : > { %916 = vrot.lane.b32.xlu0 %v2917_v0, %s2813_s20  ;;  %4297 = vst [vmem:[#allocation5_spill] sm:$0xff] %v3054_v35  ;;  %vm709_vm13 = vcmask 138240   ;;  %vm1101_vm14 = vcmask 1042432   ;;  %vm1149_vm15 = vcmask 220160  }
  0x17   : > { %914 = vrot.lane.b32.xlu1 %v699_v3, %s2813_s20 }
  0x19   : > { %877 = vrot.lane.b32.xlu0 %v699_v3, %s2812_s19 }
  0x1b   : > { %918 = vrot.lane.b32.xlu1 %v700_v2, %s2813_s20 }
  0x1d   : > { %875 = vrot.lane.b32.xlu0 %v2919_v1, %s2812_s19 }
  0x1f   : > { %912 = vrot.lane.b32.xlu1 %v2919_v1, %s2813_s20 }
  0x21   : > { %951 = vrot.lane.b32.xlu0 %v699_v3, %s2814_s21 }
  0x23   : > { %953 = vrot.lane.b32.xlu1 %v2917_v0, %s2814_s21 }
  0x25   : > { %955 = vrot.lane.b32.xlu0 %v700_v2, %s2814_s21 }
  0x27   : > { %949 = vrot.lane.b32.xlu1 %v2919_v1, %s2814_s21 }
  0x29   : > { %988 = vrot.lane.b32.xlu0 %v699_v3, %s2815_s22 }
  0x2b   : > { %990 = vrot.lane.b32.xlu1 %v2917_v0, %s2815_s22 }
  0x2d   : > { %992 = vrot.lane.b32.xlu0 %v700_v2, %s2815_s22 }
  0x2f   : > { %775 = vrot.lane.b32.xlu1 %v2919_v1, %s4208_s23 }
  0x31   : > { %777 = vrot.lane.b32.xlu0 %v699_v3, %s4208_s23 }
  0x33   : > { %779 = vrot.lane.b32.xlu1 %v2917_v0, %s4208_s23 }
  0x35   : > { %781 = vrot.lane.b32.xlu0 %v700_v2, %s4208_s23  ;;  %s637_s23 = scalar_lea.vmem %s4195_s5, %s2911_s15 }
  0x36   : > { %v696_v7 = vld [vmem:[%s637_s23 + $0x8] sm:$0xff]  ;;  %v695_v8 = vld [vmem:[%s637_s23] sm:$0xff] }
  0x37   : > { %812 = vrot.lane.b32.xlu1 %v2919_v1, %s4221_s24 }
  0x39   : > { %814 = vrot.lane.b32.xlu0 %v699_v3, %s4221_s24 }
  0x3b   : > { %816 = vrot.lane.b32.xlu1 %v2917_v0, %s4221_s24 }
  0x3d   : > { %818 = vrot.lane.b32.xlu0 %v700_v2, %s4221_s24 }
  0x3f   : > { %986 = vrot.lane.b32.xlu1 %v2919_v1, %s2815_s22 }
  0x41   : > { %738 = vrot.lane.b32.xlu0 %v2919_v1, %s4206_s25 }
  0x43   : > { %740 = vrot.lane.b32.xlu1 %v699_v3, %s4206_s25 }
  0x45   : > { %742 = vrot.lane.b32.xlu0 %v2917_v0, %s4206_s25 }
  0x47   : > { %744 = vrot.lane.b32.xlu1 %v700_v2, %s4206_s25  ;;  %s3482_s25 = scalar_lea.vmem %s4196_s6, %s2911_s15 }
  0x49   : > { %701 = vrot.lane.b32.xlu0 %v2919_v1, %s4219_s17 }
  0x4b   : > { %703 = vrot.lane.b32.xlu1 %v699_v3, %s4219_s17 }
  0x4d   : > { %705 = vrot.lane.b32.xlu0 %v2917_v0, %s4219_s17 }
  0x4f   : > { %707 = vrot.lane.b32.xlu1 %v700_v2, %s4219_s17 }
  0x51   : > { %1255 = vperm.xlu0 %2787, %v693_v5   ;;  %v851_v5 = vsub.s32 4, %v2993_v15 }
  0x53   : > { %1260 = vperm.xlu1 %2788, %v694_v6  }
  0x55   : > { %1278 = vperm.xlu0 %2787, %v696_v7  }
  0x57   : > { %1273 = vperm.xlu1 %2788, %v695_v8  }
  0x83   : > { %v880_v9 = vpop.permute.xlu0 %879 }
  0x85   : > { %v882_v10 = vpop.permute.xlu1 %881 }
  0x86   : > { %v886_v41 = vsel %vm883_vm0, %v880_v9, %v882_v10  ;;  %v891_v42 = vsel %vm883_vm0, %v882_v10, 0.0  ;;  %v2730_v10 = vld [vmem:[%s4191_s1 + $0x38] ss:$0 sm:$0xff] }
  0x87   : > { %v917_v11 = vpop.permute.xlu0 %916  ;;  %v3083_v52 = vmul.f32 %v3031_v27, %v891_v42  ;;  %v3088_v55 = vmul.f32 %v3067_v40, %v886_v41  ;;  %v3123_v41 = vld [vmem:[%s4191_s1] sm:$0xff] }
  0x89   : > { %v2989_v13 = vpop.permute.xlu1 %914  ;;  %v4211_v6 = vrot.slane %v3083_v52, 1 }
  0x8a   : > { %v922_v36 = vsel %vm920_vm1, %v2989_v13, %v917_v11 }
  0x8b   : > { %v2991_v14 = vpop.permute.xlu0 %877  ;;  %v946_v49 = vmul.f32 %v3045_v31, %v922_v36 }
  0x8c   : > { %v885_v28 = vsel %vm883_vm0, %v2991_v14, %v880_v9 }
  0x8d   : > { %v919_v16 = vpop.permute.xlu1 %918  ;;  %v3072_v43 = vmul.f32 %v3020_v24, %v885_v28  ;;  %v1082_v63 = vrot.slane %v946_v49, 6 }
  0x8e   : > { %v928_v33 = vsel %vm920_vm1, %v919_v16, 0.0  ;;  %v923_v37 = vsel %vm920_vm1, %v917_v11, %v919_v16  ;;  %v4210_v11 = vrot.slane %v3088_v55, 1 }
  0x8f   : > { %v2995_v17 = vpop.permute.xlu0 %875  ;;  %v948_v45 = vmul.f32 %v3037_v29, %v928_v33  ;;  %v947_v50 = vmul.f32 %v3049_v32, %v923_v37  ;;  %v4212_v56 = vrot.slane %v3072_v43, 1  ;;  %v3112_v33 = vsel %vm1106_vm6, %v1153_v62, 0 }
  0x91   : > { %v3011_v22 = vpop.permute.xlu1 %912  ;;  %v1084_v58 = vrot.slane %v948_v45, 6  ;;  %v1083_v2 = vrot.slane %v947_v50, 6  ;;  %v1128_v28 = vsel %vm1126_vm3, %v4212_v56, %v1082_v63  ;;  %v3133_v50 = vrot.slane %v3123_v41, %v851_v5 }
  0x93   : > { %v3022_v25 = vpop.permute.xlu0 %951 }
  0x95   : > { %v954_v34 = vpop.permute.xlu1 %953 }
  0x96   : > { %v959_v38 = vsel %vm957_vm2, %v3022_v25, %v954_v34 }
  0x97   : > { %v956_v44 = vpop.permute.xlu0 %955  ;;  %v983_v46 = vmul.f32 %v3041_v30, %v959_v38  ;;  %v1130_v38 = vsel %vm1126_vm3, %v4211_v6, %v1084_v58 }
  0x98   : > { %v960_v47 = vsel %vm957_vm2, %v954_v34, %v956_v44  ;;  %v965_v48 = vsel %vm957_vm2, %v956_v44, 0.0 }
  0x99   : > { %v3080_v51 = vpop.permute.xlu1 %949  ;;  %v984_v53 = vmul.f32 %v3054_v35, %v960_v47  ;;  %v985_v54 = vmul.f32 %v3063_v39, %v965_v48  ;;  %v1094_v59 = vrot.slane %v983_v46, 3  ;;  %v1129_v47 = vsel %vm1126_vm3, %v4210_v11, %v1083_v2 }
  0x9a   : > { %v3147_v2 = vrot.slane %v3123_v41, %v3009_v21  ;;  %v3163_v21 = vrot.slane %v3006_v20, %v851_v5 }
  0x9b   : > { %v3091_v57 = vpop.permute.xlu0 %988  ;;  %v1095_v7 = vrot.slane %v984_v53, 3  ;;  %v1096_v8 = vrot.slane %v985_v54, 3  ;;  %v1133_v37 = vsel %vm1131_vm5, %v1128_v28, %v1094_v59 }
  0x9d   : > { %v991_v3 = vpop.permute.xlu1 %990  ;;  %v1135_v48 = vsel %vm1131_vm5, %v1130_v38, %v1096_v8  ;;  %v1134_v49 = vsel %vm1131_vm5, %v1129_v47, %v1095_v7  ;;  %v921_v8 = vsel %vm920_vm1, %v3011_v22, %v2989_v13  ;;  %v884_v13 = vsel %vm883_vm0, %v2995_v17, %v2991_v14 }
  0x9e   : > { %v996_v9 = vsel %vm994_vm4, %v3091_v57, %v991_v3  ;;  %v831_v22 = vsub.s32 3, %v2993_v15  ;;  %v945_v28 = vmul.f32 %v3147_v2, %v921_v8 }
  0x9f   : > { %v993_v12 = vpop.permute.xlu0 %992  ;;  %v1020_v16 = vmul.f32 %v2728_v60, %v996_v9  ;;  %v3139_v60 = vrot.slane %v3016_v23, %v851_v5  ;;  %v794_v9 = vsub.s32 2, %v2993_v15 }
  0xa0   : > { %v997_v34 = vsel %vm994_vm4, %v991_v3, %v993_v12  ;;  %v1002_v36 = vsel %vm994_vm4, %v993_v12, 0.0  ;;  %v3151_v3 = vrot.slane %v3123_v41, %v3001_v19  ;;  %v3167_v19 = vrot.slane %v3123_v41, %v2998_v18 }
  0xa1   : > { %v1021_v42 = vmul.f32 %v2729_v4, %v997_v34  ;;  %v3125_v44 = vpop.permute.xlu1 %775  ;;  %v1141_v45 = vpack.c.bf16 %v1020_v16, %v1133_v37  ;;  %v1022_v46 = vmul.f32 %v2730_v10, %v1002_v36  ;;  %4298 = vst [vmem:[#allocation6_spill] sm:$0xff] %v3139_v60  ;;  %v869_v7 = vcombine.low %v3133_v50, %v3139_v60 }
  0xa2   : > { %4299 = vst [vmem:[#allocation7_spill] sm:$0xff] %v3151_v3  ;;  %v3160_v10 = vrot.slane %v3027_v26, %v851_v5  ;;  %v958_v12 = vsel %vm957_vm2, %v3080_v51, %v3022_v25  ;;  %v3182_v36 = vrot.slane %v3123_v41, %v794_v9  ;;  %v3187_v14 = vmul.f32 %v3167_v19, %v884_v13 }
  0xa3   : > { %v3135_v53 = vpop.permute.xlu0 %777  ;;  %v1159_v54 = vand.u32 %v3112_v33, %v1141_v45  ;;  %v1143_v58 = vpack.c.bf16 %v1022_v46, %v1135_v48  ;;  %v1142_v59 = vpack.c.bf16 %v1021_v42, %v1134_v49  ;;  %v3178_v34 = vmul.f32 %v869_v7, %v2919_v1 }
  0xa4   : > { %v982_v18 = vmul.f32 %v3151_v3, %v958_v12  ;;  %4300 = vst [vmem:[#allocation8_spill] sm:$0xff] %v3182_v36  ;;  %v870_v25 = vcombine.low %v3160_v10, %v3163_v21  ;;  %v3190_v17 = vrot.slane %v3016_v23, %v794_v9  ;;  %v3193_v51 = vrot.slane %v3027_v26, %v794_v9 }
  0xa5   : > { %v3141_v61 = vpop.permute.xlu1 %779  ;;  %1179 = vmatprep.subr.bf16.mxu0 %v1159_v54  ;;  %v1165_v62 = vand.u32 %v3112_v33, %v1143_v58  ;;  %v1162_v63 = vand.u32 %v3112_v33, %v1142_v59  ;;  %v757_v37 = vsub.s32 1, %v2993_v15  ;;  %v3197_v38 = vrot.slane %v3006_v20, %v794_v9 }
  0xa6   : > { %4301 = vst [vmem:[#allocation9_spill] sm:$0xff] %v3190_v17  ;;  %4302 = vst [vmem:[#allocation10_spill] sm:$0xff] %v3193_v51  ;;  %v3200_v42 = vrot.slane %v3123_v41, %v831_v22  ;;  %v3203_v45 = vrot.slane %v3016_v23, %v831_v22  ;;  %v3206_v46 = vrot.slane %v3027_v26, %v831_v22  ;;  %v1081_v47 = vrot.slane %v945_v28, 6 }
  0xa7   : > { %1222 = vmatprep.subr.bf16.mxu1 %v1165_v62  ;;  %v782_v4 = vpop.permute.xlu0 %781  ;;  %4303 = vst [vmem:[#allocation11_spill] sm:$0xff] %v3197_v38  ;;  %v3210_v49 = vrot.slane %v3006_v20, %v831_v22  ;;  %v1093_v59 = vrot.slane %v982_v18, 3  ;;  %v3221_v7 = vmul.f32 %v870_v25, %v2917_v0  ;;  %v4213_v8 = vrot.slane %v3187_v14, 1 }
  0xa8   : > { %1223 = vmatpush1.bf16.msra.mxu1 %v1162_v63  ;;  %v3218_v63 = vld [vmem:[%s4191_s1 + $0x20] ss:$0 sm:$0xff]  ;;  %v791_v9 = vsel %vm783_vm7, 0.0, %v3125_v44  ;;  %v3227_v13 = vrot.slane %v3123_v41, %v757_v37  ;;  %v784_v22 = vsel %vm783_vm7, %v3125_v44, %v3135_v53  ;;  %v720_v18 = vsub.s32 0, %v2993_v15 }
  0xa9   : > { %v813_v16 = vpop.permute.xlu1 %812  ;;  %4304 = vst [vmem:[#allocation12_spill] sm:$0xff] %v3218_v63  ;;  %v1127_v58 = vsel %vm1126_vm3, %v4213_v8, %v1081_v47  ;;  %v3246_v44 = vmul.f32 %v3182_v36, %v791_v9 }
  0xaa   : > { %v828_v48 = vsel %vm820_vm8, 0.0, %v813_v16  ;;  %4305 = vst [vmem:[#allocation13_spill] sm:$0xff] %v3227_v13 }
  0xab   : > { %v815_v5 = vpop.permute.xlu0 %814  ;;  %v845_v28 = vmul.f32 %v3200_v42, %v828_v48  ;;  %v3249_v48 = vrot.slane %v3027_v26, %v757_v37 }
  0xac   : > { %v821_v62 = vsel %vm820_vm8, %v813_v16, %v815_v5  ;;  %v3230_v16 = vrot.slane %v3016_v23, %v757_v37 }
  0xad   : > { %v817_v1 = vpop.permute.xlu1 %816  ;;  %v846_v25 = vmul.f32 %v3203_v45, %v821_v62  ;;  %4307 = vst [vmem:[#allocation15_spill] sm:$0xff] %v3249_v48  ;;  %v1132_v62 = vsel %vm1131_vm5, %v1127_v58, %v1093_v59  ;;  %v1051_v9 = vrot.slane %v845_v28, 7 }
  0xae   : > { %4306 = vst [vmem:[#allocation14_spill] sm:$0xff] %v3230_v16 }
  0xaf   : > { %v819_v54 = vpop.permute.xlu0 %818  ;;  %v1052_v58 = vrot.slane %v846_v25, 7 }
  0xb0   : > { %v823_v11 = vsel %vm820_vm8, %v817_v1, %v819_v54  ;;  %v3256_v54 = vmul.f32 %v3190_v17, %v784_v22 }
  0xb1   : > { %v987_v12 = vpop.permute.xlu1 %986  ;;  %v848_v15 = vmul.f32 %v3210_v49, %v823_v11 }
  0xb2   : > { %v995_v0 = vsel %vm994_vm4, %v987_v12, %v3091_v57  ;;  %v3252_v57 = vrot.slane %v3006_v20, %v757_v37  ;;  %v786_v12 = vsel %vm783_vm7, %v3141_v61, %v782_v4  ;;  %v785_v37 = vsel %vm783_vm7, %v3135_v53, %v3141_v61 }
  0xb3   : > { %v1019_v6 = vmul.f32 %v3218_v63, %v995_v0  ;;  %v739_v56 = vpop.permute.xlu0 %738  ;;  %v822_v0 = vsel %vm820_vm8, %v815_v5, %v817_v1  ;;  %v3268_v4 = vrot.slane %v3123_v41, %v720_v18  ;;  %v3272_v5 = vmul.f32 %v3197_v38, %v786_v12 }
  0xb4   : > { %4308 = vst [vmem:[#allocation16_spill] sm:$0xff] %v3252_v57  ;;  %v754_v63 = vsel %vm746_vm10, 0.0, %v739_v56  ;;  %v847_v11 = vmul.f32 %v3206_v46, %v822_v0  ;;  %v1040_v28 = vrot.slane %v3256_v54, 2  ;;  %v810_v41 = vmul.f32 %v3193_v51, %v785_v37 }
  0xb5   : > { %v741_v47 = vpop.permute.xlu1 %740  ;;  %v1140_v8 = vpack.c.bf16 %v1019_v6, %v1132_v62  ;;  %4309 = vst [vmem:[#allocation17_spill] sm:$0xff] %v3268_v4  ;;  %v1039_v6 = vrot.slane %v3246_v44, 2  ;;  %v771_v53 = vmul.f32 %v3227_v13, %v754_v63  ;;  %v3286_v54 = vrot.slane %v3027_v26, %v720_v18 }
  0xb6   : > { %v747_v1 = vsel %vm746_vm10, %v739_v56, %v741_v47  ;;  %v3289_v63 = vrot.slane %v3006_v20, %v720_v18  ;;  %v1042_v12 = vrot.slane %v3272_v5, 2  ;;  %v1053_v0 = vrot.slane %v847_v11, 7 }
  0xb7   : > { %v743_v59 = vpop.permute.xlu0 %742  ;;  %v1156_v22 = vand.u32 %v3112_v33, %v1140_v8  ;;  %v3279_v33 = vrot.slane %v3016_v23, %v720_v18  ;;  %v1054_v8 = vrot.slane %v848_v15, 7  ;;  %v1112_v44 = vsel %vm1111_vm9, %v1039_v6, %v1051_v9  ;;  %4311 = vst [vmem:[#allocation19_spill] sm:$0xff] %v3286_v54 }
  0xb8   : > { %v748_v25 = vsel %vm746_vm10, %v741_v47, %v743_v59  ;;  %v772_v62 = vmul.f32 %v3230_v16, %v747_v1  ;;  %4312 = vst [vmem:[#allocation20_spill] sm:$0xff] %v3289_v63  ;;  %v1113_v23 = vsel %vm1111_vm9, %v1040_v28, %v1052_v58  ;;  %v1027_v37 = vrot.slane %v771_v53, 5 }
  0xb9   : > { %v745_v61 = vpop.permute.xlu1 %744  ;;  %1180 = vmatpush1.bf16.msra.mxu0 %v1156_v22  ;;  %4310 = vst [vmem:[#allocation18_spill] sm:$0xff] %v3279_v33  ;;  %v773_v9 = vmul.f32 %v3249_v48, %v748_v25  ;;  %v4313_v26 = vcombine.low %v3178_v34, %v3178_v34  ;;  %v1041_v18 = vrot.slane %v810_v41, 2  ;;  %v1115_v58 = vsel %vm1111_vm9, %v1042_v12, %v1054_v8 }
  0xba   : > { %v749_v15 = vsel %vm746_vm10, %v743_v59, %v745_v61  ;;  %v1118_v59 = vsel %vm1116_vm11, %v1113_v23, %v3178_v34  ;;  %v1028_v11 = vrot.slane %v772_v62, 5  ;;  %v1062_v8 = vcombine.low %v3221_v7, %v3221_v7 }
  0xbb   : > { %v702_v56 = vpop.permute.xlu0 %701  ;;  %v1117_v20 = vsel %vm1116_vm11, %v1112_v44, %v4313_v26  ;;  %v774_v53 = vmul.f32 %v3252_v57, %v749_v15  ;;  %v4314_v44 = vrot.slane %v3187_v14, 1  ;;  %v1029_v34 = vrot.slane %v773_v9, 5 }
  0xbc   : > { %v717_v47 = vsel %vm709_vm13, 0.0, %v702_v56 }
  0xbd   : > { %v734_v22 = vmul.f32 %v3268_v4, %v717_v47  ;;  %v704_v1 = vpop.permute.xlu1 %703  ;;  %v1122_v41 = vsel %vm1121_vm12, %v1117_v20, %v4314_v44  ;;  %v1030_v9 = vrot.slane %v774_v53, 5 }
  0xbe   : > { %v710_v5 = vsel %vm709_vm13, %v702_v56, %v704_v1  ;;  %v1114_v56 = vsel %vm1111_vm9, %v1041_v18, %v1053_v0  ;;  %v1120_v0 = vsel %vm1116_vm11, %v1115_v58, %v3221_v7  ;;  %v4316_v7 = vrot.slane %v3083_v52, 1 }
  0xbf   : > { %v735_v61 = vmul.f32 %v3279_v33, %v710_v5  ;;  %v706_v25 = vpop.permute.xlu0 %705  ;;  %v1102_v47 = vsel %vm1101_vm14, %v734_v22, %v1027_v37 }
  0xc0   : > { %v711_v4 = vsel %vm709_vm13, %v704_v1, %v706_v25  ;;  %v1107_v37 = vsel %vm1106_vm6, %v1102_v47, %v1039_v6  ;;  %v4315_v1 = vrot.slane %v3072_v43, 1  ;;  %v1119_v6 = vsel %vm1116_vm11, %v1114_v56, %v1062_v8 }
  0xc1   : > { %v736_v62 = vmul.f32 %v3286_v54, %v711_v4  ;;  %v708_v23 = vpop.permute.xlu1 %707  ;;  %v1103_v15 = vsel %vm1101_vm14, %v735_v61, %v1028_v11  ;;  %v1136_v11 = vpack.c.bf16 %v1122_v41, %v1107_v37  ;;  %v2791_v61 = vld [vmem:[%s2972_s16] sm:$0xff]   ;;  %v1125_v58 = vsel %vm1121_vm12, %v1120_v0, %v4316_v7  ;;  %s4321_s16 = smov 15  }
  0xc2   : > { %v712_v22 = vsel %vm709_vm13, %v706_v25, %v708_v23  ;;  %v1108_v14 = vsel %vm1106_vm6, %v1103_v15, %v1040_v28  ;;  %v1123_v26 = vsel %vm1121_vm12, %v1118_v59, %v4315_v1  ;;  %v4317_v25 = vrot.slane %v3088_v55, 1 }
  0xc3   : > { %v737_v20 = vmul.f32 %v3289_v63, %v712_v22  ;;  %v1137_v4 = vpack.c.bf16 %v1123_v26, %v1108_v14  ;;  %v1104_v5 = vsel %vm1101_vm14, %v736_v62, %v1029_v34 }
  0xc4   : > { %v1109_v43 = vsel %vm1106_vm6, %v1104_v5, %v1041_v18  ;;  %v1124_v47 = vsel %vm1121_vm12, %v1119_v6, %v4317_v25 }
  0xc5   : > { %1181 = vmatprep.subr.bf16.mxu0 %v1137_v4  ;;  %v1105_v28 = vsel %vm1101_vm14, %v737_v20, %v1030_v9  ;;  %v1138_v44 = vpack.c.bf16 %v1124_v47, %v1109_v43 }
  0xc6   : > { %1182 = vmatpush1.bf16.msra.mxu0 %v1136_v11  ;;  %v1110_v59 = vsel %vm1106_vm6, %v1105_v28, %v1042_v12 }
  0xc7   : > { %v1139_v53 = vpack.c.bf16 %v1125_v58, %v1110_v59 }
  0xc9   : > { %2732 = vmatmul.mubr.msk.bf16.vlgmr.msra.gmra.mxu0 %vm1149_vm15, %v2791_v61  ;;  %1224 = vmatprep.subr.bf16.mxu1 %v1139_v53 }
  0xca   : > { %1225 = vmatpush1.bf16.msra.mxu1 %v1138_v44 }
  0xcc   : > { %v1256_v18 = vpop.permute.xlu0 %1255 }
  0xcd   : > { %2733 = vmatmul.mubr.msk.bf16.vlgmr.msra.gmra.mxu1 %vm1149_vm15, %v2791_v61 }
  0xce   : > { %v3338_v41 = vpop.permute.xlu1 %1260 }
  0xd0   : > { %v1279_v11 = vpop.permute.xlu0 %1278 }
  0xd2   : > { %v1274_v56 = vpop.permute.xlu1 %1273 }
 0x189   : > { %v1201_v8 = vpop.f32.mrf.mxu0 }
 0x18a   : > { %v1263_v12 = vmul.f32 %v1256_v18, %v1201_v8 }
 0x18b   : > { %v1203_v37 = vpop.f32.mrf.mxu0 }
 0x18c   : > { %v1281_v34 = vadd.f32 %v1274_v56, %v1263_v12  ;;  %v1264_v22 = vmul.f32 %v1256_v18, %v1203_v37  ;;  %v1299_v37 = vld [vmem:[%s647_s28] sm:$0xff] }
 0x18d   : > { %v1244_v52 = vpop.f32.mrf.mxu1  ;;  %v1205_v4 = vpop.f32.mrf.mxu0 }
 0x18e   : > { %v3340_v62 = vmax.f32 %v1281_v34, 0.0  ;;  %v1265_v23 = vmul.f32 %v1256_v18, %v1244_v52  ;;  %v1282_v1 = vadd.f32 %v1274_v56, %v1264_v22  ;;  %v1267_v5 = vmul.f32 %v3338_v41, %v1205_v4  ;;  %v2792_v52 = vld [vmem:[%s3482_s25 + $0x4] ss:$8 sps:$4 sm:$0xff]  }
 0x18f   : > { %v1246_v14 = vpop.f32.mrf.mxu1  ;;  %v1207_v28 = vpop.f32.mrf.mxu0  ;;  %2737 = vmatprep.mubr.msk.bf16.mxu1 %vm746_vm10, %v2792_v52  ;;  %2736 = vmatprep.mubr.msk.bf16.mxu0 %vm746_vm10, %v2792_v52 }
 0x190   : > { %4318 = vst [vmem:[#allocation21_spill] sm:$0xff] %v3340_v62  ;;  %v1283_v15 = vadd.f32 %v1274_v56, %v1265_v23  ;;  %1559 = vrot.lane.b32.xlu1 %v3340_v62, %s2814_s21  ;;  %v1266_v26 = vmul.f32 %v1256_v18, %v1246_v14  ;;  %v3362_v0 = vmax.f32 %v1282_v1, 0.0  ;;  %v1285_v6 = vadd.f32 %v1279_v11, %v1267_v5 }
 0x191   : > { %v1248_v43 = vpop.f32.mrf.mxu1  ;;  %v1268_v59 = vmul.f32 %v3338_v41, %v1207_v28 }
 0x192   : > { %v3344_v55 = vmax.f32 %v1283_v15, 0.0  ;;  %4320 = vst [vmem:[#allocation23_spill] sm:$0xff] %v3362_v0  ;;  %v1284_v9 = vadd.f32 %v1274_v56, %v1266_v26  ;;  %v3399_v61 = vmax.f32 %v1285_v6, 0.0  ;;  %v1269_v44 = vmul.f32 %v3338_v41, %v1248_v43  ;;  %v1300_v26 = vld [vmem:[%s647_s28 + $0x8] sm:$0xff]  ;;  %s667_s28 = scalar_lea.vmem %s4201_s11, %s2911_s15 }
 0x193   : > { %v1250_v7 = vpop.f32.mrf.mxu1  ;;  %v1286_v58 = vadd.f32 %v1279_v11, %v1268_v59 }
 0x194   : > { %4319 = vst [vmem:[#allocation22_spill] sm:$0xff] %v3344_v55  ;;  %1563 = vrot.lane.b32.xlu0 %v3344_v55, %s2814_s21  ;;  %1519 = vrot.lane.b32.xlu1 %v3340_v62, %s2813_s20  ;;  %v3368_v20 = vmax.f32 %v1284_v9, 0.0  ;;  %4324 = vst [vmem:[#allocation25_spill] sm:$0xff] %v3399_v61  ;;  %v1270_v53 = vmul.f32 %v3338_v41, %v1250_v7  ;;  %v1287_v8 = vadd.f32 %v1279_v11, %v1269_v44 }
 0x195   : > { %v3415_v25 = vmax.f32 %v1286_v58, 0.0 }
 0x196   : > { %4322 = vst [vmem:[#allocation24_spill] sm:$0xff] %v3368_v20  ;;  %v1288_v47 = vadd.f32 %v1279_v11, %v1270_v53  ;;  %v3432_v56 = vmax.f32 %v1287_v8, 0.0 }
 0x197   : > { %4325 = vst [vmem:[#allocation26_spill] sm:$0xff] %v3415_v25 }
 0x198   : > { %1523 = vrot.lane.b32.xlu0 %v3344_v55, %s2813_s20  ;;  %1479 = vrot.lane.b32.xlu1 %v3340_v62, %s2812_s19  ;;  %v3422_v18 = vmax.f32 %v1288_v47, 0.0  ;;  %4327 = vst [vmem:[#allocation28_spill] sm:$0xff] %v3432_v56 }
 0x19a   : > { %4326 = vst [vmem:[#allocation27_spill] sm:$0xff] %v3422_v18 }
 0x19c   : > { %1483 = vrot.lane.b32.xlu0 %v3344_v55, %s2812_s19  ;;  %1431 = vrot.lane.b32.xlu1 %v3340_v62, %s4221_s24 }
 0x1a0   : > { %1603 = vrot.lane.b32.xlu0 %v3344_v55, %s2815_s22  ;;  %1435 = vrot.lane.b32.xlu1 %v3344_v55, %s4221_s24 }
 0x1a4   : > { %1433 = vrot.lane.b32.xlu0 %v3362_v0, %s4221_s24  ;;  %1391 = vrot.lane.b32.xlu1 %v3340_v62, %s4321_s16 }
 0x1a8   : > { %1437 = vrot.lane.b32.xlu0 %v3368_v20, %s4221_s24  ;;  %1395 = vrot.lane.b32.xlu1 %v3344_v55, %s4321_s16 }
 0x1ac   : > { %1393 = vrot.lane.b32.xlu0 %v3362_v0, %s4321_s16  ;;  %1351 = vrot.lane.b32.xlu1 %v3340_v62, %s4323_s27 }
 0x1b0   : > { %1397 = vrot.lane.b32.xlu0 %v3368_v20, %s4321_s16  ;;  %1355 = vrot.lane.b32.xlu1 %v3344_v55, %s4323_s27 }
 0x1b4   : > { %1353 = vrot.lane.b32.xlu0 %v3362_v0, %s4323_s27  ;;  %1311 = vrot.lane.b32.xlu1 %v3340_v62, %s4219_s17 }
 0x1b8   : > { %1357 = vrot.lane.b32.xlu0 %v3368_v20, %s4323_s27  ;;  %1315 = vrot.lane.b32.xlu1 %v3344_v55, %s4219_s17 }
 0x1bc   : > { %1313 = vrot.lane.b32.xlu0 %v3362_v0, %s4219_s17  ;;  %1561 = vrot.lane.b32.xlu1 %v3362_v0, %s2814_s21 }
 0x1c0   : > { %1317 = vrot.lane.b32.xlu0 %v3368_v20, %s4219_s17  ;;  %1565 = vrot.lane.b32.xlu1 %v3368_v20, %s2814_s21 }
 0x1c4   : > { %1521 = vrot.lane.b32.xlu1 %v3362_v0, %s2813_s20  ;;  %1567 = vrot.lane.b32.xlu0 %v3399_v61, %s2814_s21 }
 0x1c8   : > { %1525 = vrot.lane.b32.xlu1 %v3368_v20, %s2813_s20  ;;  %1527 = vrot.lane.b32.xlu0 %v3399_v61, %s2813_s20 }
 0x1cc   : > { %1481 = vrot.lane.b32.xlu1 %v3362_v0, %s2812_s19  ;;  %1487 = vrot.lane.b32.xlu0 %v3399_v61, %s2812_s19 }
 0x1d0   : > { %1485 = vrot.lane.b32.xlu1 %v3368_v20, %s2812_s19  ;;  %1569 = vrot.lane.b32.xlu0 %v3415_v25, %s2814_s21 }
 0x1d4   : > { %1601 = vrot.lane.b32.xlu1 %v3362_v0, %s2815_s22  ;;  %1573 = vrot.lane.b32.xlu0 %v3422_v18, %s2814_s21 }
 0x1d8   : > { %1605 = vrot.lane.b32.xlu1 %v3368_v20, %s2815_s22  ;;  %1529 = vrot.lane.b32.xlu0 %v3415_v25, %s2813_s20 }
 0x1dc   : > { %1571 = vrot.lane.b32.xlu1 %v3432_v56, %s2814_s21  ;;  %1533 = vrot.lane.b32.xlu0 %v3422_v18, %s2813_s20 }
 0x1e0   : > { %1531 = vrot.lane.b32.xlu1 %v3432_v56, %s2813_s20  ;;  %1489 = vrot.lane.b32.xlu0 %v3415_v25, %s2812_s19 }
 0x1e4   : > { %1491 = vrot.lane.b32.xlu1 %v3432_v56, %s2812_s19  ;;  %1493 = vrot.lane.b32.xlu0 %v3422_v18, %s2812_s19 }
 0x1e8   : > { %1439 = vrot.lane.b32.xlu1 %v3399_v61, %s4221_s24  ;;  %1441 = vrot.lane.b32.xlu0 %v3415_v25, %s4221_s24 }
 0x1ec   : > { %1443 = vrot.lane.b32.xlu1 %v3432_v56, %s4221_s24  ;;  %1445 = vrot.lane.b32.xlu0 %v3422_v18, %s4221_s24  ;;  %s652_s24 = scalar_lea.vmem %s4198_s8, %s2911_s15 }
 0x1ed   : > { %v1301_v1 = vld [vmem:[%s652_s24] sm:$0xff]  ;;  %v1302_v5 = vld [vmem:[%s652_s24 + $0x8] sm:$0xff]  ;;  %s4368_s24 = smov 17  }
 0x1f0   : > { %1399 = vrot.lane.b32.xlu1 %v3399_v61, %s4321_s16  ;;  %1401 = vrot.lane.b32.xlu0 %v3415_v25, %s4321_s16 }
 0x1f4   : > { %1403 = vrot.lane.b32.xlu1 %v3432_v56, %s4321_s16  ;;  %1405 = vrot.lane.b32.xlu0 %v3422_v18, %s4321_s16 }
 0x1f8   : > { %1359 = vrot.lane.b32.xlu1 %v3399_v61, %s4323_s27  ;;  %1361 = vrot.lane.b32.xlu0 %v3415_v25, %s4323_s27 }
 0x1fc   : > { %1363 = vrot.lane.b32.xlu1 %v3432_v56, %s4323_s27  ;;  %1365 = vrot.lane.b32.xlu0 %v3422_v18, %s4323_s27 }
 0x200   : > { %1319 = vrot.lane.b32.xlu1 %v3399_v61, %s4219_s17  ;;  %1321 = vrot.lane.b32.xlu0 %v3415_v25, %s4219_s17 }
 0x202   : > { %v1560_v41 = vpop.permute.xlu1 %1559 }
 0x204   : > { %1323 = vrot.lane.b32.xlu1 %v3432_v56, %s4219_s17  ;;  %1325 = vrot.lane.b32.xlu0 %v3422_v18, %s4219_s17  ;;  %s662_s17 = scalar_lea.vmem %s4200_s10, %s2911_s15 }
 0x206   : > { %v3484_v12 = vpop.permute.xlu1 %1519  ;;  %v1564_v34 = vpop.permute.xlu0 %1563 }
 0x208   : > { %1611 = vrot.lane.b32.xlu1 %v3432_v56, %s2815_s22  ;;  %1609 = vrot.lane.b32.xlu0 %v3415_v25, %s2815_s22 }
 0x20a   : > { %v3493_v23 = vpop.permute.xlu1 %1479  ;;  %v3495_v15 = vpop.permute.xlu0 %1523 }
 0x20c   : > { %1599 = vrot.lane.b32.xlu1 %v3340_v62, %s2815_s22  ;;  %1613 = vrot.lane.b32.xlu0 %v3422_v18, %s2815_s22 }
 0x20e   : > { %v3505_v22 = vpop.permute.xlu1 %1431  ;;  %v3507_v14 = vpop.permute.xlu0 %1483 }
 0x210   : > { %1775 = vperm.xlu1 %2788, %v1299_v37   ;;  %1607 = vrot.lane.b32.xlu0 %v3399_v61, %s2815_s22 }
 0x212   : > { %v3515_v9 = vpop.permute.xlu1 %1435  ;;  %v3517_v4 = vpop.permute.xlu0 %1603 }
 0x213   : > { %4328 = vst [vmem:[#allocation29_spill] sm:$0xff] %v3517_v4 }
 0x214   : > { %1793 = vperm.xlu1 %2788, %v1301_v1   ;;  %1780 = vperm.xlu0 %2787, %v1300_v26  }
 0x216   : > { %v3519_v11 = vpop.permute.xlu1 %1391  ;;  %v3521_v6 = vpop.permute.xlu0 %1433 }
 0x218   : > { %1798 = vperm.xlu0 %2787, %v1302_v5  }
 0x21a   : > { %v3523_v28 = vpop.permute.xlu1 %1395  ;;  %v3525_v43 = vpop.permute.xlu0 %1437 }
 0x21b   : > { %4329 = vst [vmem:[#allocation30_spill] sm:$0xff] %v3523_v28 }
 0x21e   : > { %v3527_v59 = vpop.permute.xlu1 %1351  ;;  %v3529_v7 = vpop.permute.xlu0 %1393 }
 0x21f   : > { %4330 = vst [vmem:[#allocation31_spill] sm:$0xff] %v3527_v59 }
 0x222   : > { %v3531_v58 = vpop.permute.xlu1 %1355  ;;  %v3533_v53 = vpop.permute.xlu0 %1397 }
 0x223   : > { %4331 = vst [vmem:[#allocation32_spill] sm:$0xff] %v3531_v58  ;;  %4332 = vst [vmem:[#allocation33_spill] sm:$0xff] %v3533_v53 }
 0x226   : > { %v3535_v47 = vpop.permute.xlu1 %1311  ;;  %v3537_v44 = vpop.permute.xlu0 %1353 }
 0x227   : > { %4333 = vst [vmem:[#allocation34_spill] sm:$0xff] %v3535_v47  ;;  %4334 = vst [vmem:[#allocation35_spill] sm:$0xff] %v3537_v44 }
 0x22a   : > { %v3539_v8 = vpop.permute.xlu1 %1315  ;;  %v3541_v52 = vpop.permute.xlu0 %1357 }
 0x22b   : > { %4335 = vst [vmem:[#allocation36_spill] sm:$0xff] %v3539_v8  ;;  %4336 = vst [vmem:[#allocation37_spill] sm:$0xff] %v3541_v52 }
 0x22e   : > { %v1562_v37 = vpop.permute.xlu1 %1561  ;;  %v3543_v1 = vpop.permute.xlu0 %1313 }
 0x22f   : > { %4337 = vst [vmem:[#allocation38_spill] sm:$0xff] %v3543_v1  ;;  %v1576_v59 = vsel %vm957_vm2, %v1562_v37, %v1564_v34 }
 0x232   : > { %v1566_v26 = vpop.permute.xlu1 %1565  ;;  %v3545_v5 = vpop.permute.xlu0 %1317 }
 0x233   : > { %4338 = vst [vmem:[#allocation39_spill] sm:$0xff] %v3545_v5  ;;  %v1589_v16 = vsel %vm957_vm2, %v1566_v26, 0.0  ;;  %v1575_v5 = vsel %vm957_vm2, %v1560_v41, %v1562_v37  ;;  %v1577_v38 = vsel %vm957_vm2, %v1564_v34, %v1566_v26  ;;  %v3567_v41 = vmul.f32 %v3415_v25, %v3139_v60 }
 0x234   : > { %v1594_v1 = vmul.f32 %v1589_v16, %v3063_v39  ;;  %v3563_v16 = vmul.f32 %v3362_v0, %v3139_v60  ;;  %v3571_v34 = vmul.f32 %v3422_v18, %v3163_v21 }
 0x236   : > { %v1522_v4 = vpop.permute.xlu1 %1521  ;;  %v1568_v63 = vpop.permute.xlu0 %1567 }
 0x237   : > { %v1536_v37 = vsel %vm920_vm1, %v1522_v4, %v3495_v15 }
 0x23a   : > { %v1526_v54 = vpop.permute.xlu1 %1525  ;;  %v1528_v33 = vpop.permute.xlu0 %1527 }
 0x23b   : > { %v1537_v26 = vsel %vm920_vm1, %v3495_v15, %v1526_v54 }
 0x23c   : > { %v1553_v15 = vmul.f32 %v1537_v26, %v3049_v32 }
 0x23e   : > { %v1482_v57 = vpop.permute.xlu1 %1481  ;;  %v1488_v48 = vpop.permute.xlu0 %1487 }
 0x242   : > { %v1486_v58 = vpop.permute.xlu1 %1485  ;;  %v1570_v47 = vpop.permute.xlu0 %1569 }
 0x243   : > { %v1578_v17 = vsel %vm957_vm2, %v1568_v63, %v1570_v47  ;;  %v1592_v63 = vmul.f32 %v1576_v59, %v3041_v30 }
 0x244   : > { %v1595_v25 = vmul.f32 %v1578_v17, %v3151_v3  ;;  %v1552_v17 = vmul.f32 %v1536_v37, %v3045_v31 }
 0x246   : > { %v3548_v13 = vpop.permute.xlu1 %1601  ;;  %v1574_v8 = vpop.permute.xlu0 %1573 }
 0x247   : > { %4339 = vst [vmem:[#allocation40_spill] sm:$0xff] %v3548_v13  ;;  %v1590_v52 = vsel %vm957_vm2, %v1574_v8, 0.0  ;;  %v1535_v13 = vsel %vm920_vm1, %v3484_v12, %v1522_v4  ;;  %v1591_v12 = vmul.f32 %v1575_v5, %v3151_v3 }
 0x248   : > { %v1598_v44 = vmul.f32 %v1590_v52, %v3063_v39  ;;  %v1549_v52 = vsel %vm920_vm1, %v1526_v54, 0.0 }
 0x249   : > { %v1554_v60 = vmul.f32 %v1549_v52, %v3037_v29 }
 0x24a   : > { %v3556_v51 = vpop.permute.xlu1 %1605  ;;  %v1530_v53 = vpop.permute.xlu0 %1529  ;;  %v1670_v28 = vpack.c.bf16 %v1598_v44, %v1594_v1  ;;  %v3575_v44 = vmul.f32 %v3340_v62, %v3133_v50  ;;  %v1551_v1 = vmul.f32 %v1535_v13, %v3147_v2 }
 0x24b   : > { %v1538_v5 = vsel %vm920_vm1, %v1528_v33, %v1530_v53  ;;  %v1496_v33 = vsel %vm883_vm0, %v1482_v57, %v3507_v14 }
 0x24c   : > { %1730 = vmatprep.subr.bf16.mxu1 %v1670_v28  ;;  %v1593_v28 = vmul.f32 %v1577_v38, %v3054_v35 }
 0x24e   : > { %v1572_v62 = vpop.permute.xlu1 %1571  ;;  %v1534_v0 = vpop.permute.xlu0 %1533 }
 0x24f   : > { %v1579_v59 = vsel %vm957_vm2, %v1570_v47, %v1572_v62  ;;  %v1580_v38 = vsel %vm957_vm2, %v1572_v62, %v1574_v8  ;;  %v1550_v18 = vsel %vm920_vm1, %v1534_v0, 0.0  ;;  %v1497_v62 = vsel %vm883_vm0, %v3507_v14, %v1486_v58 }
 0x250   : > { %v1596_v4 = vmul.f32 %v1579_v59, %v3041_v30  ;;  %v1597_v13 = vmul.f32 %v1580_v38, %v3054_v35  ;;  %v1558_v54 = vmul.f32 %v1550_v18, %v3037_v29  ;;  %v1555_v47 = vmul.f32 %v1538_v5, %v3147_v2 }
 0x251   : > { %v1509_v38 = vsel %vm883_vm0, %v1486_v58, 0.0  ;;  %v1667_v18 = vpack.c.bf16 %v1595_v25, %v1591_v12  ;;  %v1513_v58 = vmul.f32 %v1497_v62, %v3067_v40 }
 0x252   : > { %v1669_v8 = vpack.c.bf16 %v1597_v13, %v1593_v28  ;;  %v1532_v52 = vpop.permute.xlu1 %1531  ;;  %v1490_v3 = vpop.permute.xlu0 %1489  ;;  %v1668_v59 = vpack.c.bf16 %v1596_v4, %v1592_v63  ;;  %v1666_v30 = vpack.c.bf16 %v1558_v54, %v1554_v60  ;;  %v1495_v28 = vsel %vm883_vm0, %v3493_v23, %v1482_v57 }
 0x253   : > { %v1539_v37 = vsel %vm920_vm1, %v1530_v53, %v1532_v52  ;;  %v1540_v26 = vsel %vm920_vm1, %v1532_v52, %v1534_v0  ;;  %v1498_v14 = vsel %vm883_vm0, %v1488_v48, %v1490_v3  ;;  %v1512_v60 = vmul.f32 %v1496_v33, %v3020_v24 }
 0x254   : > { %v1556_v29 = vmul.f32 %v1539_v37, %v3045_v31  ;;  %v1557_v35 = vmul.f32 %v1540_v26, %v3049_v32  ;;  %1687 = vmatprep.subr.bf16.mxu0 %v1668_v59  ;;  %1731 = vmatpush1.bf16.msra.mxu1 %v1669_v8  ;;  %v1514_v25 = vmul.f32 %v1509_v38, %v3031_v27 }
 0x255   : > { %1688 = vmatpush1.bf16.msra.mxu0 %v1667_v18  ;;  %1732 = vmatprep.subr.bf16.mxu1 %v1666_v30  ;;  %v1663_v0 = vpack.c.bf16 %v1555_v47, %v1551_v1  ;;  %v1515_v48 = vmul.f32 %v1498_v14, %v3167_v19  ;;  %v1473_v1 = vmul.f32 %v3344_v55, %v3160_v10 }
 0x256   : > { %v1665_v53 = vpack.c.bf16 %v1557_v35, %v1553_v15  ;;  %v1492_v12 = vpop.permute.xlu1 %1491  ;;  %v1494_v63 = vpop.permute.xlu0 %1493  ;;  %v1664_v5 = vpack.c.bf16 %v1556_v29, %v1552_v17  ;;  %v1511_v35 = vmul.f32 %v1495_v28, %v3167_v19  ;;  %v1474_v29 = vmul.f32 %v3368_v20, %v3163_v21 }
 0x257   : > { %v1499_v4 = vsel %vm883_vm0, %v1490_v3, %v1492_v12  ;;  %v1500_v13 = vsel %vm883_vm0, %v1492_v12, %v1494_v63  ;;  %v1510_v57 = vsel %vm883_vm0, %v1494_v63, 0.0  ;;  %v1475_v3 = vmul.f32 %v3399_v61, %v3133_v50 }
 0x258   : > { %v1516_v23 = vmul.f32 %v1499_v4, %v3020_v24  ;;  %v1517_v54 = vmul.f32 %v1500_v13, %v3067_v40  ;;  %v1518_v30 = vmul.f32 %v1510_v57, %v3031_v27  ;;  %1689 = vmatprep.subr.bf16.mxu0 %v1664_v5  ;;  %1733 = vmatpush1.bf16.msra.mxu1 %v1665_v53 }
 0x259   : > { %1690 = vmatpush1.bf16.msra.mxu0 %v1663_v0  ;;  %v1477_v8 = vmul.f32 %v3432_v56, %v3160_v10  ;;  %v1447_v52 = vsel %vm820_vm8, %v3505_v22, %v3521_v6  ;;  %v1659_v59 = vpack.c.bf16 %v1515_v48, %v1511_v35  ;;  %v1656_v18 = vpack.c.bf16 %v3567_v41, %v3563_v16 }
 0x25a   : > { %v1661_v17 = vpack.c.bf16 %v1517_v54, %v1513_v58  ;;  %v1440_v15 = vpop.permute.xlu1 %1439  ;;  %v1442_v33 = vpop.permute.xlu0 %1441  ;;  %v1660_v62 = vpack.c.bf16 %v1516_v23, %v1512_v60  ;;  %v1662_v47 = vpack.c.bf16 %v1518_v30, %v1514_v25  ;;  %v1448_v37 = vsel %vm820_vm8, %v3521_v6, %v3515_v9 }
 0x25b   : > { %v1450_v38 = vsel %vm820_vm8, %v1440_v15, %v1442_v33  ;;  %v1462_v26 = vsel %vm820_vm8, 0.0, %v1440_v15  ;;  %v1658_v28 = vpack.c.bf16 %v3571_v34, %v1474_v29  ;;  %v1449_v60 = vsel %vm820_vm8, %v3515_v9, %v3525_v43 }
 0x25c   : > { %v1468_v14 = vmul.f32 %v1450_v38, %v3203_v45  ;;  %1691 = vmatprep.subr.bf16.mxu0 %v1660_v62  ;;  %1734 = vmatprep.subr.bf16.mxu1 %v1662_v47  ;;  %v1461_v16 = vsel %vm820_vm8, 0.0, %v3505_v22  ;;  %v1464_v41 = vmul.f32 %v1447_v52, %v3203_v45  ;;  %v1655_v25 = vpack.c.bf16 %v1475_v3, %v3575_v44  ;;  %v4342_v47 = vld [vmem:[#allocation33_spill] sm:$0xff] }
 0x25d   : > { %1692 = vmatpush1.bf16.msra.mxu0 %v1659_v59  ;;  %1735 = vmatpush1.bf16.msra.mxu1 %v1661_v17  ;;  %v1657_v0 = vpack.c.bf16 %v1477_v8, %v1473_v1  ;;  %v1465_v34 = vmul.f32 %v1448_v37, %v3206_v46  ;;  %v1467_v53 = vmul.f32 %v1462_v26, %v3200_v42  ;;  %v1421_v44 = vsel %vm783_vm7, 0.0, %v3519_v11  ;;  %v4340_v1 = vld [vmem:[#allocation9_spill] sm:$0xff] }
 0x25e   : > { %v1444_v6 = vpop.permute.xlu1 %1443  ;;  %1693 = vmatprep.subr.bf16.mxu0 %v1656_v18  ;;  %1736 = vmatprep.subr.bf16.mxu1 %v1658_v28  ;;  %v1446_v58 = vpop.permute.xlu0 %1445  ;;  %v1466_v12 = vmul.f32 %v1449_v60, %v3210_v49  ;;  %v1652_v5 = vpack.c.bf16 %v1468_v14, %v1464_v41  ;;  %v1463_v48 = vmul.f32 %v1461_v16, %v3200_v42  ;;  %v4343_v14 = vld [vmem:[#allocation10_spill] sm:$0xff]  ;;  %v4344_v60 = vld [vmem:[#allocation11_spill] sm:$0xff] }
 0x25f   : > { %v1451_v9 = vsel %vm820_vm8, %v1442_v33, %v1444_v6  ;;  %v1452_v43 = vsel %vm820_vm8, %v1444_v6, %v1446_v58  ;;  %v1407_v4 = vsel %vm783_vm7, %v3519_v11, %v3529_v7  ;;  %v1423_v3 = vmul.f32 %v1421_v44, %v3182_v36  ;;  %v4341_v33 = vld [vmem:[#allocation30_spill] sm:$0xff]  ;;  %v4345_v6 = vld [vmem:[#allocation31_spill] sm:$0xff] }
 0x260   : > { %v1469_v22 = vmul.f32 %v1451_v9, %v3206_v46  ;;  %v1470_v63 = vmul.f32 %v1452_v43, %v3210_v49  ;;  %v1651_v30 = vpack.c.bf16 %v1467_v53, %v1463_v48  ;;  %v1424_v17 = vmul.f32 %v1407_v4, %v4340_v1  ;;  %v4348_v48 = vld [vmem:[#allocation14_spill] sm:$0xff] }
 0x261   : > { %1694 = vmatpush1.bf16.msra.mxu0 %v1655_v25  ;;  %1737 = vmatpush1.bf16.msra.mxu1 %v1657_v0  ;;  %v1408_v62 = vsel %vm783_vm7, %v3529_v7, %v4341_v33  ;;  %v1409_v8 = vsel %vm783_vm7, %v4341_v33, %v4342_v47  ;;  %v1381_v58 = vsel %vm746_vm10, 0.0, %v4345_v6  ;;  %v4346_v25 = vld [vmem:[#allocation35_spill] sm:$0xff]  ;;  %v4352_v47 = vld [vmem:[#allocation16_spill] sm:$0xff] }
 0x262   : > { %v1653_v13 = vpack.c.bf16 %v1469_v22, %v1465_v34  ;;  %v1400_v57 = vpop.permute.xlu1 %1399  ;;  %1695 = vmatprep.subr.bf16.mxu0 %v1652_v5  ;;  %v1402_v23 = vpop.permute.xlu0 %1401  ;;  %v1654_v54 = vpack.c.bf16 %v1470_v63, %v1466_v12  ;;  %v1425_v28 = vmul.f32 %v1408_v62, %v4343_v14  ;;  %v1426_v16 = vmul.f32 %v1409_v8, %v4344_v60  ;;  %v4347_v63 = vld [vmem:[#allocation13_spill] sm:$0xff]  ;;  %v4351_v33 = vld [vmem:[#allocation15_spill] sm:$0xff] }
 0x263   : > { %v1422_v35 = vsel %vm783_vm7, 0.0, %v1400_v57  ;;  %v1410_v29 = vsel %vm783_vm7, %v1400_v57, %v1402_v23  ;;  %v1367_v0 = vsel %vm746_vm10, %v4345_v6, %v4346_v25  ;;  %v1383_v5 = vmul.f32 %v1381_v58, %v4347_v63  ;;  %v4349_v57 = vld [vmem:[#allocation32_spill] sm:$0xff] }
 0x264   : > { %v1427_v15 = vmul.f32 %v1422_v35, %v3182_v36  ;;  %v1428_v11 = vmul.f32 %v1410_v29, %v4340_v1  ;;  %1738 = vmatprep.subr.bf16.mxu1 %v1654_v54  ;;  %v1384_v44 = vmul.f32 %v1367_v0, %v4348_v48  ;;  %v4350_v54 = vld [vmem:[#allocation37_spill] sm:$0xff] }
 0x265   : > { %1696 = vmatpush1.bf16.msra.mxu0 %v1651_v30  ;;  %1739 = vmatpush1.bf16.msra.mxu1 %v1653_v13  ;;  %v1369_v30 = vsel %vm746_vm10, %v4349_v57, %v4350_v54 }
 0x266   : > { %v1647_v52 = vpack.c.bf16 %v1427_v15, %v1423_v3  ;;  %v1404_v59 = vpop.permute.xlu1 %1403  ;;  %v1406_v38 = vpop.permute.xlu0 %1405  ;;  %v1648_v18 = vpack.c.bf16 %v1428_v11, %v1424_v17  ;;  %v1386_v8 = vmul.f32 %v1369_v30, %v4352_v47 }
 0x267   : > { %v1411_v37 = vsel %vm783_vm7, %v1402_v23, %v1404_v59  ;;  %v1412_v26 = vsel %vm783_vm7, %v1404_v59, %v1406_v38  ;;  %v1368_v23 = vsel %vm746_vm10, %v4346_v25, %v4349_v57  ;;  %v4353_v38 = vld [vmem:[#allocation34_spill] sm:$0xff]  ;;  %v4355_v25 = vld [vmem:[#allocation17_spill] sm:$0xff] }
 0x268   : > { %v1429_v7 = vmul.f32 %v1411_v37, %v4343_v14  ;;  %v1430_v41 = vmul.f32 %v1412_v26, %v4344_v60  ;;  %1697 = vmatprep.subr.bf16.mxu0 %v1648_v18  ;;  %v1385_v62 = vmul.f32 %v1368_v23, %v4351_v33  ;;  %v1341_v18 = vsel %vm709_vm13, 0.0, %v4353_v38  ;;  %v4354_v37 = vld [vmem:[#allocation38_spill] sm:$0xff] }
 0x269   : > { %1698 = vmatpush1.bf16.msra.mxu0 %v1647_v52  ;;  %v1327_v26 = vsel %vm709_vm13, %v4353_v38, %v4354_v37  ;;  %v1343_v0 = vmul.f32 %v1341_v18, %v4355_v25 }
 0x26a   : > { %v1649_v34 = vpack.c.bf16 %v1429_v7, %v1425_v28  ;;  %v1360_v53 = vpop.permute.xlu1 %1359  ;;  %v1362_v9 = vpop.permute.xlu0 %1361  ;;  %v1650_v43 = vpack.c.bf16 %v1430_v41, %v1426_v16 }
 0x26b   : > { %v1382_v12 = vsel %vm746_vm10, 0.0, %v1360_v53  ;;  %v1370_v22 = vsel %vm746_vm10, %v1360_v53, %v1362_v9 }
 0x26c   : > { %v1387_v4 = vmul.f32 %v1382_v12, %v4347_v63  ;;  %v1388_v13 = vmul.f32 %v1370_v22, %v4348_v48  ;;  %1740 = vmatprep.subr.bf16.mxu1 %v1650_v43  ;;  %v4357_v12 = vld [vmem:[#allocation36_spill] sm:$0xff] }
 0x26d   : > { %1741 = vmatpush1.bf16.msra.mxu1 %v1649_v34  ;;  %v4356_v34 = vld [vmem:[#allocation18_spill] sm:$0xff]  ;;  %v1328_v22 = vsel %vm709_vm13, %v4354_v37, %v4357_v12 }
 0x26e   : > { %v1643_v35 = vpack.c.bf16 %v1387_v4, %v1383_v5  ;;  %v1364_v29 = vpop.permute.xlu1 %1363  ;;  %v1366_v3 = vpop.permute.xlu0 %1365  ;;  %v1644_v17 = vpack.c.bf16 %v1388_v13, %v1384_v44  ;;  %v1344_v53 = vmul.f32 %v1327_v26, %v4356_v34  ;;  %v4358_v5 = vld [vmem:[#allocation39_spill] sm:$0xff] }
 0x26f   : > { %v1371_v15 = vsel %vm746_vm10, %v1362_v9, %v1364_v29  ;;  %v1372_v11 = vsel %vm746_vm10, %v1364_v29, %v1366_v3  ;;  %v1329_v44 = vsel %vm709_vm13, %v4357_v12, %v4358_v5  ;;  %v4360_v3 = vld [vmem:[#allocation20_spill] sm:$0xff] }
 0x270   : > { %v1389_v52 = vmul.f32 %v1371_v15, %v4351_v33  ;;  %v1390_v59 = vmul.f32 %v1372_v11, %v4352_v47  ;;  %1699 = vmatprep.subr.bf16.mxu0 %v1644_v17  ;;  %v1346_v17 = vmul.f32 %v1329_v44, %v4360_v3  ;;  %v3746_v12 = vld [vmem:[%s4191_s1 + $0x30] ss:$0 sm:$0xff] }
 0x271   : > { %1700 = vmatpush1.bf16.msra.mxu0 %v1643_v35  ;;  %v4359_v35 = vld [vmem:[#allocation19_spill] sm:$0xff]  ;;  %4364 = vst [vmem:[#allocation33_spill] sm:$0xff] %v3746_v12 }
 0x272   : > { %v1645_v28 = vpack.c.bf16 %v1389_v52, %v1385_v62  ;;  %v1320_v16 = vpop.permute.xlu1 %1319  ;;  %v1322_v7 = vpop.permute.xlu0 %1321  ;;  %v1646_v41 = vpack.c.bf16 %v1390_v59, %v1386_v8  ;;  %v1345_v29 = vmul.f32 %v1328_v22, %v4359_v35  ;;  %v4361_v62 = vld [vmem:[#allocation29_spill] sm:$0xff]  ;;  %v4362_v8 = vld [vmem:[#allocation40_spill] sm:$0xff] }
 0x273   : > { %v1342_v6 = vsel %vm709_vm13, 0.0, %v1320_v16  ;;  %v1330_v58 = vsel %vm709_vm13, %v1320_v16, %v1322_v7  ;;  %v1616_v52 = vsel %vm994_vm4, %v4362_v8, %v4361_v62 }
 0x274   : > { %v1347_v9 = vmul.f32 %v1342_v6, %v4355_v25  ;;  %v1348_v43 = vmul.f32 %v1330_v58, %v4356_v34  ;;  %1742 = vmatprep.subr.bf16.mxu1 %v1646_v41  ;;  %v1617_v41 = vsel %vm994_vm4, %v4361_v62, %v3556_v51  ;;  %v1629_v6 = vsel %vm994_vm4, %v3556_v51, 0.0  ;;  %v3752_v51 = vld [vmem:[%s4191_s1 + $0x38] ss:$0 sm:$0xff] }
 0x275   : > { %1743 = vmatpush1.bf16.msra.mxu1 %v1645_v28  ;;  %v3732_v28 = vld [vmem:[%s4191_s1 + $0x28] ss:$0 sm:$0xff]  ;;  %v1633_v22 = vmul.f32 %v3746_v12, %v1617_v41  ;;  %4365 = vst [vmem:[#allocation31_spill] sm:$0xff] %v3752_v51  ;;  %v1634_v5 = vmul.f32 %v3752_v51, %v1629_v6 }
 0x276   : > { %v1639_v4 = vpack.c.bf16 %v1347_v9, %v1343_v0  ;;  %v1324_v13 = vpop.permute.xlu1 %1323  ;;  %v1326_v57 = vpop.permute.xlu0 %1325  ;;  %v1640_v23 = vpack.c.bf16 %v1348_v43, %v1344_v53  ;;  %4363 = vst [vmem:[#allocation30_spill] sm:$0xff] %v3732_v28  ;;  %v1632_v16 = vmul.f32 %v3732_v28, %v1616_v52 }
 0x277   : > { %v1331_v54 = vsel %vm709_vm13, %v1322_v7, %v1324_v13  ;;  %v1332_v30 = vsel %vm709_vm13, %v1324_v13, %v1326_v57 }
 0x278   : > { %v1349_v15 = vmul.f32 %v1331_v54, %v4359_v35  ;;  %v1350_v11 = vmul.f32 %v1332_v30, %v4360_v3  ;;  %1701 = vmatprep.subr.bf16.mxu0 %v1640_v23 }
 0x279   : > { %1702 = vmatpush1.bf16.msra.mxu0 %v1639_v4 }
 0x27a   : > { %v1641_v59 = vpack.c.bf16 %v1349_v15, %v1345_v29  ;;  %v1612_v38 = vpop.permute.xlu1 %1611  ;;  %v1610_v18 = vpop.permute.xlu0 %1609  ;;  %v1642_v37 = vpack.c.bf16 %v1350_v11, %v1346_v17  ;;  %v4366_v29 = vld [vmem:[#allocation12_spill] sm:$0xff]  ;;  %v2794_v11 = vld [vmem:[%s3482_s25] ss:$8 sps:$4 sm:$0xff]   ;;  %s4367_s25 = smov 1  }
 0x27b   : > { %v1619_v26 = vsel %vm994_vm4, %v1610_v18, %v1612_v38 }
 0x27c   : > { %v1636_v7 = vmul.f32 %v3732_v28, %v1619_v26  ;;  %1744 = vmatprep.subr.bf16.mxu1 %v1642_v37 }
 0x27d   : > { %1745 = vmatpush1.bf16.msra.mxu1 %v1641_v59 }
 0x27e   : > { %v1600_v58 = vpop.permute.xlu1 %1599  ;;  %v1614_v0 = vpop.permute.xlu0 %1613  ;;  %v1672_v53 = vpack.c.bf16 %v1636_v7, %v1632_v16 }
 0x27f   : > { %v1620_v9 = vsel %vm994_vm4, %v1612_v38, %v1614_v0  ;;  %v1630_v43 = vsel %vm994_vm4, %v1614_v0, 0.0  ;;  %v1615_v13 = vsel %vm994_vm4, %v1600_v58, %v4362_v8 }
 0x280   : > { %v1637_v44 = vmul.f32 %v3746_v12, %v1620_v9  ;;  %v1638_v4 = vmul.f32 %v3752_v51, %v1630_v43  ;;  %1717 = vmatprep.subr.bf16.mxu0 %v1672_v53  ;;  %v1631_v17 = vmul.f32 %v4366_v29, %v1615_v13 }
 0x282   : > { %v1673_v57 = vpack.c.bf16 %v1637_v44, %v1633_v22  ;;  %v1608_v23 = vpop.permute.xlu0 %1607  ;;  %v1674_v54 = vpack.c.bf16 %v1638_v4, %v1634_v5 }
 0x283   : > { %v1618_v30 = vsel %vm994_vm4, %v1608_v23, %v1610_v18 }
 0x284   : > { %v1635_v15 = vmul.f32 %v4366_v29, %v1618_v30  ;;  %1760 = vmatprep.subr.bf16.mxu1 %v1674_v54 }
 0x285   : > { %1761 = vmatpush2.bf16.msra.mxu1 %v1673_v57 }
 0x286   : > { %v1671_v62 = vpack.c.bf16 %v1635_v15, %v1631_v17 }
 0x288   : > { %1718 = vmatpush2.bf16.msra.mxu0 %v1671_v62  ;;  %1763 = vmatmul.mubr.bf16.vlgmr.msra.gmra.mxu1 %v2794_v11 }
 0x28b   : > { %1720 = vmatmul.mubr.bf16.vlgmr.msra.gmra.mxu0 %v2794_v11  ;;  %v1776_v52 = vpop.permute.xlu1 %1775 }
 0x28f   : > { %v1794_v8 = vpop.permute.xlu1 %1793  ;;  %v1781_v44 = vpop.permute.xlu0 %1780 }
 0x293   : > { %v1799_v57 = vpop.permute.xlu0 %1798 }
 0x348   : > { %v1764_v59 = vpop.f32.mrf.mxu1 }
 0x349   : > { %v1785_v38 = vmul.f32 %v1776_v52, %v1764_v59 }
 0x34a   : > { %v1766_v0 = vpop.f32.mrf.mxu1 }
 0x34b   : > { %v1803_v37 = vadd.f32 %v1794_v8, %v1785_v38  ;;  %v1721_v26 = vpop.f32.mrf.mxu0  ;;  %v1786_v53 = vmul.f32 %v1776_v52, %v1766_v0 }
 0x34c   : > { %v1783_v16 = vmul.f32 %v1776_v52, %v1721_v26  ;;  %v1768_v30 = vpop.f32.mrf.mxu1 }
 0x34d   : > { %v3763_v7 = vmax.f32 %v1803_v37, 0.0  ;;  %v1723_v6 = vpop.f32.mrf.mxu0  ;;  %v1804_v43 = vadd.f32 %v1794_v8, %v1786_v53 }
 0x34e   : > { %v1801_v18 = vadd.f32 %v1794_v8, %v1783_v16  ;;  %v1784_v58 = vmul.f32 %v1776_v52, %v1723_v6  ;;  %v1770_v15 = vpop.f32.mrf.mxu1 }
 0x34f   : > { %2083 = vrot.lane.b32.xlu0 %v3763_v7, %s2814_s21  ;;  %v3787_v5 = vmax.f32 %v1804_v43, 0.0  ;;  %v1725_v4 = vpop.f32.mrf.mxu0  ;;  %v1790_v11 = vmul.f32 %v1781_v44, %v1770_v15  ;;  %v1820_v43 = vld [vmem:[%s662_s17 + $0x8] sm:$0xff] }
 0x350   : > { %v3767_v41 = vmax.f32 %v1801_v18, 0.0  ;;  %v1802_v9 = vadd.f32 %v1794_v8, %v1784_v58  ;;  %v1787_v13 = vmul.f32 %v1781_v44, %v1725_v4  ;;  %v1789_v8 = vmul.f32 %v1781_v44, %v1768_v30  ;;  %v1819_v4 = vld [vmem:[%s662_s17] sm:$0xff]  ;;  %s675_s17 = scalar_lea.vmem %s4203_s13, %s4428_s30 }
 0x351   : > { %v1727_v29 = vpop.f32.mrf.mxu0  ;;  %v1808_v52 = vadd.f32 %v1799_v57, %v1790_v11 }
 0x352   : > { %2079 = vrot.lane.b32.xlu1 %v3767_v41, %s2814_s21  ;;  %v3781_v22 = vmax.f32 %v1802_v9, 0.0  ;;  %v1805_v23 = vadd.f32 %v1799_v57, %v1787_v13  ;;  %v1788_v17 = vmul.f32 %v1781_v44, %v1727_v29  ;;  %v1807_v37 = vadd.f32 %v1799_v57, %v1789_v8  ;;  %v1821_v29 = vld [vmem:[%s667_s28] sm:$0xff] }
 0x353   : > { %2043 = vrot.lane.b32.xlu0 %v3763_v7, %s2813_s20  ;;  %v3837_v38 = vmax.f32 %v1808_v52, 0.0 }
 0x354   : > { %v3817_v54 = vmax.f32 %v1805_v23, 0.0  ;;  %v1806_v62 = vadd.f32 %v1799_v57, %v1788_v17  ;;  %v3855_v26 = vmax.f32 %v1807_v37, 0.0  ;;  %v1822_v57 = vld [vmem:[%s667_s28 + $0x8] sm:$0xff] }
 0x356   : > { %2039 = vrot.lane.b32.xlu1 %v3767_v41, %s2813_s20  ;;  %v3831_v59 = vmax.f32 %v1806_v62, 0.0 }
 0x357   : > { %2003 = vrot.lane.b32.xlu0 %v3763_v7, %s2812_s19 }
 0x35a   : > { %1999 = vrot.lane.b32.xlu1 %v3767_v41, %s2812_s19 }
 0x35b   : > { %2123 = vrot.lane.b32.xlu0 %v3763_v7, %s2815_s22 }
 0x35e   : > { %1951 = vrot.lane.b32.xlu1 %v3767_v41, %s4367_s25 }
 0x35f   : > { %1953 = vrot.lane.b32.xlu0 %v3781_v22, %s4367_s25 }
 0x362   : > { %1955 = vrot.lane.b32.xlu1 %v3763_v7, %s4367_s25 }
 0x363   : > { %1957 = vrot.lane.b32.xlu0 %v3787_v5, %s4367_s25 }
 0x366   : > { %1911 = vrot.lane.b32.xlu1 %v3767_v41, %s4321_s16 }
 0x367   : > { %1913 = vrot.lane.b32.xlu0 %v3781_v22, %s4321_s16 }
 0x36a   : > { %1915 = vrot.lane.b32.xlu1 %v3763_v7, %s4321_s16 }
 0x36b   : > { %1917 = vrot.lane.b32.xlu0 %v3787_v5, %s4321_s16 }
 0x36e   : > { %1871 = vrot.lane.b32.xlu1 %v3767_v41, %s4323_s27 }
 0x36f   : > { %1873 = vrot.lane.b32.xlu0 %v3781_v22, %s4323_s27 }
 0x372   : > { %1875 = vrot.lane.b32.xlu1 %v3763_v7, %s4323_s27 }
 0x373   : > { %1877 = vrot.lane.b32.xlu0 %v3787_v5, %s4323_s27 }
 0x376   : > { %1831 = vrot.lane.b32.xlu1 %v3767_v41, %s4368_s24 }
 0x377   : > { %1833 = vrot.lane.b32.xlu0 %v3781_v22, %s4368_s24 }
 0x37a   : > { %1835 = vrot.lane.b32.xlu1 %v3763_v7, %s4368_s24 }
 0x37b   : > { %1837 = vrot.lane.b32.xlu0 %v3787_v5, %s4368_s24 }
 0x37e   : > { %2081 = vrot.lane.b32.xlu1 %v3781_v22, %s2814_s21 }
 0x37f   : > { %2087 = vrot.lane.b32.xlu0 %v3817_v54, %s2814_s21 }
 0x382   : > { %2085 = vrot.lane.b32.xlu1 %v3787_v5, %s2814_s21 }
 0x383   : > { %2047 = vrot.lane.b32.xlu0 %v3817_v54, %s2813_s20 }
 0x386   : > { %2041 = vrot.lane.b32.xlu1 %v3781_v22, %s2813_s20 }
 0x387   : > { %2007 = vrot.lane.b32.xlu0 %v3817_v54, %s2812_s19 }
 0x38a   : > { %2045 = vrot.lane.b32.xlu1 %v3787_v5, %s2813_s20 }
 0x38b   : > { %2089 = vrot.lane.b32.xlu0 %v3831_v59, %s2814_s21 }
 0x38e   : > { %2001 = vrot.lane.b32.xlu1 %v3781_v22, %s2812_s19 }
 0x38f   : > { %2093 = vrot.lane.b32.xlu0 %v3837_v38, %s2814_s21 }
 0x392   : > { %2005 = vrot.lane.b32.xlu1 %v3787_v5, %s2812_s19 }
 0x393   : > { %2049 = vrot.lane.b32.xlu0 %v3831_v59, %s2813_s20 }
 0x396   : > { %2121 = vrot.lane.b32.xlu1 %v3781_v22, %s2815_s22 }
 0x397   : > { %2053 = vrot.lane.b32.xlu0 %v3837_v38, %s2813_s20 }
 0x39a   : > { %2125 = vrot.lane.b32.xlu1 %v3787_v5, %s2815_s22 }
 0x39b   : > { %2009 = vrot.lane.b32.xlu0 %v3831_v59, %s2812_s19 }
 0x39e   : > { %2091 = vrot.lane.b32.xlu1 %v3855_v26, %s2814_s21  ;;  %s3903_s21 = scalar_lea.vmem %s4199_s9, %s2911_s15  ;;  %s679_s15 = scalar_lea.vmem %s4204_s14, %s2726_s26 }
 0x39f   : > { %2013 = vrot.lane.b32.xlu0 %v3837_v38, %s2812_s19  ;;  %v2795_v6 = vld [vmem:[%s3903_s21 + $0x4] ss:$8 sps:$4 sm:$0xff]  }
 0x3a0   : > { %2741 = vmatprep.mubr.msk.bf16.mxu1 %vm746_vm10, %v2795_v6  ;;  %2740 = vmatprep.mubr.msk.bf16.mxu0 %vm746_vm10, %v2795_v6 }
 0x3a2   : > { %2051 = vrot.lane.b32.xlu1 %v3855_v26, %s2813_s20 }
 0x3a3   : > { %1961 = vrot.lane.b32.xlu0 %v3831_v59, %s4367_s25 }
 0x3a6   : > { %2011 = vrot.lane.b32.xlu1 %v3855_v26, %s2812_s19 }
 0x3a7   : > { %1965 = vrot.lane.b32.xlu0 %v3837_v38, %s4367_s25 }
 0x3aa   : > { %1959 = vrot.lane.b32.xlu1 %v3817_v54, %s4367_s25 }
 0x3ab   : > { %1921 = vrot.lane.b32.xlu0 %v3831_v59, %s4321_s16 }
 0x3ae   : > { %1963 = vrot.lane.b32.xlu1 %v3855_v26, %s4367_s25 }
 0x3af   : > { %1925 = vrot.lane.b32.xlu0 %v3837_v38, %s4321_s16 }
 0x3b2   : > { %1919 = vrot.lane.b32.xlu1 %v3817_v54, %s4321_s16 }
 0x3b3   : > { %1881 = vrot.lane.b32.xlu0 %v3831_v59, %s4323_s27 }
 0x3b6   : > { %1923 = vrot.lane.b32.xlu1 %v3855_v26, %s4321_s16 }
 0x3b7   : > { %1885 = vrot.lane.b32.xlu0 %v3837_v38, %s4323_s27 }
 0x3ba   : > { %1879 = vrot.lane.b32.xlu1 %v3817_v54, %s4323_s27 }
 0x3bb   : > { %1841 = vrot.lane.b32.xlu0 %v3831_v59, %s4368_s24 }
 0x3be   : > { %1883 = vrot.lane.b32.xlu1 %v3855_v26, %s4323_s27 }
 0x3bf   : > { %1845 = vrot.lane.b32.xlu0 %v3837_v38, %s4368_s24 }
 0x3c1   : > { %v3893_v16 = vpop.permute.xlu0 %2083 }
 0x3c2   : > { %1839 = vrot.lane.b32.xlu1 %v3817_v54, %s4368_s24 }
 0x3c3   : > { %2129 = vrot.lane.b32.xlu0 %v3831_v59, %s2815_s22 }
 0x3c4   : > { %v3905_v18 = vpop.permute.xlu1 %2079 }
 0x3c5   : > { %v3908_v58 = vpop.permute.xlu0 %2043 }
 0x3c6   : > { %1843 = vrot.lane.b32.xlu1 %v3855_v26, %s4368_s24  ;;  %s4426_s24 = sshll.u32 %s4428_s30, 3 }
 0x3c7   : > { %2133 = vrot.lane.b32.xlu0 %v3837_v38, %s2815_s22 }
 0x3c8   : > { %v3916_v0 = vpop.permute.xlu1 %2039 }
 0x3c9   : > { %v3918_v53 = vpop.permute.xlu0 %2003 }
 0x3ca   : > { %2131 = vrot.lane.b32.xlu1 %v3855_v26, %s2815_s22 }
 0x3cb   : > { %2127 = vrot.lane.b32.xlu0 %v3817_v54, %s2815_s22 }
 0x3cc   : > { %v3928_v9 = vpop.permute.xlu1 %1999 }
 0x3cd   : > { %v3930_v44 = vpop.permute.xlu0 %2123 }
 0x3ce   : > { %4369 = vst [vmem:[#allocation35_spill] sm:$0xff] %v3930_v44  ;;  %2119 = vrot.lane.b32.xlu1 %v3767_v41, %s2815_s22 }
 0x3cf   : > { %2300 = vperm.xlu0 %2787, %v1820_v43  }
 0x3d0   : > { %v3938_v13 = vpop.permute.xlu1 %1951 }
 0x3d1   : > { %v1954_v23 = vpop.permute.xlu0 %1953 }
 0x3d2   : > { %v3942_v30 = vsel %vm820_vm8, %v3938_v13, %v1954_v23  ;;  %2295 = vperm.xlu1 %2788, %v1819_v4  }
 0x3d3   : > { %2318 = vperm.xlu0 %2787, %v1822_v57  }
 0x3d4   : > { %v1956_v17 = vpop.permute.xlu1 %1955 }
 0x3d5   : > { %v3945_v15 = vsel %vm820_vm8, %v1954_v23, %v1956_v17  ;;  %v1958_v11 = vpop.permute.xlu0 %1957 }
 0x3d6   : > { %v3948_v62 = vsel %vm820_vm8, %v1956_v17, %v1958_v11  ;;  %2313 = vperm.xlu1 %2788, %v1821_v29  }
 0x3d8   : > { %v3950_v52 = vpop.permute.xlu1 %1911 }
 0x3d9   : > { %v1914_v8 = vpop.permute.xlu0 %1913 }
 0x3da   : > { %v3954_v37 = vsel %vm783_vm7, %v3950_v52, %v1914_v8 }
 0x3db   : > { %4370 = vst [vmem:[#allocation32_spill] sm:$0xff] %v3954_v37 }
 0x3dc   : > { %v1916_v6 = vpop.permute.xlu1 %1915 }
 0x3dd   : > { %v3957_v43 = vsel %vm783_vm7, %v1914_v8, %v1916_v6  ;;  %v1918_v4 = vpop.permute.xlu0 %1917 }
 0x3de   : > { %4371 = vst [vmem:[#allocation37_spill] sm:$0xff] %v3957_v43  ;;  %v3960_v57 = vsel %vm783_vm7, %v1916_v6, %v1918_v4 }
 0x3df   : > { %4372 = vst [vmem:[#allocation34_spill] sm:$0xff] %v3960_v57 }
 0x3e0   : > { %v3962_v23 = vpop.permute.xlu1 %1871 }
 0x3e1   : > { %4373 = vst [vmem:[#allocation38_spill] sm:$0xff] %v3962_v23  ;;  %v1874_v17 = vpop.permute.xlu0 %1873 }
 0x3e2   : > { %v3966_v29 = vsel %vm746_vm10, %v3962_v23, %v1874_v17 }
 0x3e3   : > { %4374 = vst [vmem:[#allocation36_spill] sm:$0xff] %v3966_v29 }
 0x3e4   : > { %v1876_v11 = vpop.permute.xlu1 %1875 }
 0x3e5   : > { %v3969_v61 = vsel %vm746_vm10, %v1874_v17, %v1876_v11  ;;  %v1878_v55 = vpop.permute.xlu0 %1877 }
 0x3e6   : > { %4375 = vst [vmem:[#allocation39_spill] sm:$0xff] %v3969_v61  ;;  %v3972_v56 = vsel %vm746_vm10, %v1876_v11, %v1878_v55 }
 0x3e7   : > { %4376 = vst [vmem:[#allocation29_spill] sm:$0xff] %v3972_v56 }
 0x3e8   : > { %v3974_v8 = vpop.permute.xlu1 %1831 }
 0x3e9   : > { %4377 = vst [vmem:[#allocation40_spill] sm:$0xff] %v3974_v8  ;;  %v1834_v20 = vpop.permute.xlu0 %1833 }
 0x3ea   : > { %v3978_v6 = vsel %vm709_vm13, %v3974_v8, %v1834_v20 }
 0x3eb   : > { %4378 = vst [vmem:[#allocation12_spill] sm:$0xff] %v3978_v6 }
 0x3ec   : > { %v1836_v4 = vpop.permute.xlu1 %1835 }
 0x3ed   : > { %v3981_v12 = vsel %vm709_vm13, %v1834_v20, %v1836_v4  ;;  %v1838_v28 = vpop.permute.xlu0 %1837 }
 0x3ee   : > { %4379 = vst [vmem:[#allocation41_spill] sm:$0xff] %v3981_v12  ;;  %v3984_v51 = vsel %vm709_vm13, %v1836_v4, %v1838_v28 }
 0x3ef   : > { %4380 = vst [vmem:[#allocation42_spill] sm:$0xff] %v3984_v51 }
 0x3f0   : > { %v2082_v17 = vpop.permute.xlu1 %2081 }
 0x3f1   : > { %v2088_v44 = vpop.permute.xlu0 %2087  ;;  %v2095_v29 = vsel %vm957_vm2, %v3905_v18, %v2082_v17  ;;  %v2096_v48 = vsel %vm957_vm2, %v2082_v17, %v3893_v16  ;;  %v4383_v18 = vld [vmem:[#allocation6_spill] sm:$0xff] }
 0x3f2   : > { %v4010_v17 = vmul.f32 %v3831_v59, %v4383_v18 }
 0x3f4   : > { %v2086_v3 = vpop.permute.xlu1 %2085 }
 0x3f5   : > { %v2048_v55 = vpop.permute.xlu0 %2047  ;;  %v2109_v56 = vsel %vm957_vm2, %v2086_v3, 0.0 }
 0x3f6   : > { %v2114_v20 = vmul.f32 %v2109_v56, %v3063_v39 }
 0x3f8   : > { %v2042_v11 = vpop.permute.xlu1 %2041 }
 0x3f9   : > { %v2008_v35 = vpop.permute.xlu0 %2007  ;;  %v2055_v56 = vsel %vm920_vm1, %v3916_v0, %v2042_v11  ;;  %v4386_v0 = vld [vmem:[#allocation5_spill] sm:$0xff] }
 0x3fa   : > { %v2071_v60 = vmul.f32 %v2055_v56, %v3147_v2 }
 0x3fc   : > { %v2046_v34 = vpop.permute.xlu1 %2045 }
 0x3fd   : > { %v2090_v25 = vpop.permute.xlu0 %2089  ;;  %v2069_v43 = vsel %vm920_vm1, %v2046_v34, 0.0 }
 0x3fe   : > { %v2098_v63 = vsel %vm957_vm2, %v2088_v44, %v2090_v25  ;;  %v4384_v44 = vld [vmem:[#allocation7_spill] sm:$0xff] }
 0x400   : > { %v2002_v8 = vpop.permute.xlu1 %2001 }
 0x401   : > { %v2094_v6 = vpop.permute.xlu0 %2093 }
 0x402   : > { %v2110_v47 = vsel %vm957_vm2, %v2094_v6, 0.0 }
 0x403   : > { %v2118_v12 = vmul.f32 %v2110_v47, %v3063_v39  ;;  %v2097_v39 = vsel %vm957_vm2, %v3893_v16, %v2086_v3  ;;  %v2056_v3 = vsel %vm920_vm1, %v2042_v11, %v3908_v58  ;;  %v2115_v16 = vmul.f32 %v2098_v63, %v4384_v44 }
 0x404   : > { %v2006_v28 = vpop.permute.xlu1 %2005  ;;  %v2113_v57 = vmul.f32 %v2097_v39, %v4386_v0  ;;  %v2072_v63 = vmul.f32 %v2056_v3, %v3045_v31 }
 0x405   : > { %v2050_v4 = vpop.permute.xlu0 %2049  ;;  %v2190_v51 = vpack.c.bf16 %v2118_v12, %v2114_v20  ;;  %v2111_v20 = vmul.f32 %v2095_v29, %v4384_v44  ;;  %v4387_v29 = vld [vmem:[#allocation3_spill] sm:$0xff] }
 0x406   : > { %v2058_v14 = vsel %vm920_vm1, %v2048_v55, %v2050_v4  ;;  %v2074_v44 = vmul.f32 %v2069_v43, %v4387_v29 }
 0x407   : > { %2250 = vmatprep.subr.bf16.mxu1 %v2190_v51  ;;  %v4006_v51 = vmul.f32 %v3837_v38, %v3163_v21  ;;  %v2057_v38 = vsel %vm920_vm1, %v3908_v58, %v2046_v34  ;;  %v2187_v55 = vpack.c.bf16 %v2115_v16, %v2111_v20 }
 0x408   : > { %v3990_v61 = vpop.permute.xlu1 %2121  ;;  %v2073_v34 = vmul.f32 %v2057_v38, %v3049_v32 }
 0x409   : > { %4381 = vst [vmem:[#allocation43_spill] sm:$0xff] %v3990_v61  ;;  %v2054_v33 = vpop.permute.xlu0 %2053  ;;  %v4385_v61 = vld [vmem:[#allocation4_spill] sm:$0xff] }
 0x40a   : > { %v2070_v12 = vsel %vm920_vm1, %v2054_v33, 0.0 }
 0x40b   : > { %v2078_v37 = vmul.f32 %v2070_v12, %v4387_v29  ;;  %v2016_v12 = vsel %vm883_vm0, %v2002_v8, %v3918_v53  ;;  %v1994_v29 = vmul.f32 %v3787_v5, %v3163_v21  ;;  %v1993_v21 = vmul.f32 %v3763_v7, %v3160_v10 }
 0x40c   : > { %v3997_v23 = vpop.permute.xlu1 %2125 }
 0x40d   : > { %4382 = vst [vmem:[#allocation44_spill] sm:$0xff] %v3997_v23  ;;  %v2010_v47 = vpop.permute.xlu0 %2009  ;;  %v2112_v23 = vmul.f32 %v2096_v48, %v4385_v61 }
 0x40e   : > { %v2018_v43 = vsel %vm883_vm0, %v2008_v35, %v2010_v47 }
 0x410   : > { %v2092_v59 = vpop.permute.xlu1 %2091 }
 0x411   : > { %v2099_v48 = vsel %vm957_vm2, %v2090_v25, %v2092_v59  ;;  %v2100_v11 = vsel %vm957_vm2, %v2092_v59, %v2094_v6  ;;  %v2014_v1 = vpop.permute.xlu0 %2013  ;;  %v2029_v25 = vsel %vm883_vm0, %v2006_v28, 0.0  ;;  %v2075_v6 = vmul.f32 %v2058_v14, %v3147_v2 }
 0x412   : > { %v2116_v39 = vmul.f32 %v2099_v48, %v4385_v61  ;;  %v2117_v56 = vmul.f32 %v2100_v11, %v4386_v0  ;;  %v2030_v58 = vsel %vm883_vm0, %v2014_v1, 0.0  ;;  %v2186_v11 = vpack.c.bf16 %v2078_v37, %v2074_v44 }
 0x413   : > { %v2038_v61 = vmul.f32 %v2030_v58, %v3031_v27  ;;  %v2015_v2 = vsel %vm883_vm0, %v3928_v9, %v2002_v8  ;;  %v2017_v14 = vsel %vm883_vm0, %v3918_v53, %v2006_v28  ;;  %v2183_v37 = vpack.c.bf16 %v2075_v6, %v2071_v60 }
 0x414   : > { %v2189_v59 = vpack.c.bf16 %v2117_v56, %v2113_v57  ;;  %v2052_v3 = vpop.permute.xlu1 %2051  ;;  %v2188_v36 = vpack.c.bf16 %v2116_v39, %v2112_v23  ;;  %v2034_v57 = vmul.f32 %v2029_v25, %v3031_v27  ;;  %v2033_v53 = vmul.f32 %v2017_v14, %v3067_v40 }
 0x415   : > { %v2059_v0 = vsel %vm920_vm1, %v2050_v4, %v2052_v3  ;;  %v2060_v48 = vsel %vm920_vm1, %v2052_v3, %v2054_v33  ;;  %v1962_v38 = vpop.permute.xlu0 %1961  ;;  %v2032_v33 = vmul.f32 %v2016_v12, %v3020_v24  ;;  %v2031_v60 = vmul.f32 %v2015_v2, %v3167_v19 }
 0x416   : > { %v2076_v20 = vmul.f32 %v2059_v0, %v3045_v31  ;;  %v2077_v16 = vmul.f32 %v2060_v48, %v3049_v32  ;;  %2207 = vmatprep.subr.bf16.mxu0 %v2188_v36  ;;  %2251 = vmatpush1.bf16.msra.mxu1 %v2189_v59  ;;  %v2035_v32 = vmul.f32 %v2018_v43, %v3167_v19  ;;  %v4390_v43 = vld [vmem:[#allocation32_spill] sm:$0xff]  ;;  %vm2515_vm1 = vcmask 254976  }
 0x417   : > { %2208 = vmatpush1.bf16.msra.mxu0 %v2187_v55  ;;  %2252 = vmatprep.subr.bf16.mxu1 %v2186_v11  ;;  %v2182_v8 = vpack.c.bf16 %v2038_v61, %v2034_v57  ;;  %v1985_v55 = vmul.f32 %v3945_v15, %v3206_v46  ;;  %v1941_v15 = vsel %vm783_vm7, 0.0, %v3950_v52  ;;  %v4389_v11 = vld [vmem:[#allocation9_spill] sm:$0xff] }
 0x418   : > { %v2185_v35 = vpack.c.bf16 %v2077_v16, %v2073_v34  ;;  %v2012_v23 = vpop.permute.xlu1 %2011  ;;  %v2184_v31 = vpack.c.bf16 %v2076_v20, %v2072_v63  ;;  %v2179_v56 = vpack.c.bf16 %v2035_v32, %v2031_v60  ;;  %v2178_v34 = vpack.c.bf16 %v4006_v51, %v1994_v29  ;;  %v4393_v32 = vld [vmem:[#allocation11_spill] sm:$0xff] }
 0x419   : > { %v2019_v36 = vsel %vm883_vm0, %v2010_v47, %v2012_v23  ;;  %v2020_v4 = vsel %vm883_vm0, %v2012_v23, %v2014_v1  ;;  %v1966_v9 = vpop.permute.xlu0 %1965  ;;  %v1997_v1 = vmul.f32 %v3855_v26, %v3160_v10  ;;  %v1984_v51 = vmul.f32 %v3942_v30, %v3203_v45  ;;  %v4392_v23 = vld [vmem:[#allocation37_spill] sm:$0xff] }
 0x41a   : > { %v2036_v27 = vmul.f32 %v2019_v36, %v3020_v24  ;;  %v2037_v28 = vmul.f32 %v2020_v4, %v3067_v40  ;;  %2209 = vmatprep.subr.bf16.mxu0 %v2184_v31  ;;  %2253 = vmatpush1.bf16.msra.mxu1 %v2185_v35  ;;  %v1992_v24 = vmul.f32 %v3781_v22, %v4383_v18  ;;  %v1981_v18 = vsel %vm820_vm8, 0.0, %v3938_v13  ;;  %v4391_v35 = vld [vmem:[#allocation10_spill] sm:$0xff] }
 0x41b   : > { %2210 = vmatpush1.bf16.msra.mxu0 %v2183_v37  ;;  %2254 = vmatprep.subr.bf16.mxu1 %v2182_v8  ;;  %v1995_v40 = vmul.f32 %v3817_v54, %v3133_v50  ;;  %v1991_v54 = vmul.f32 %v3767_v41, %v3133_v50  ;;  %v2177_v7 = vpack.c.bf16 %v1997_v1, %v1993_v21  ;;  %v4394_v36 = vld [vmem:[#allocation34_spill] sm:$0xff]  ;;  %vm2824_vm0 = vmmov 0  }
 0x41c   : > { %v2181_v47 = vpack.c.bf16 %v2037_v28, %v2033_v53  ;;  %v1960_v63 = vpop.permute.xlu1 %1959  ;;  %v2180_v39 = vpack.c.bf16 %v2036_v27, %v2032_v33  ;;  %v2176_v22 = vpack.c.bf16 %v4010_v17, %v1992_v24  ;;  %v1986_v13 = vmul.f32 %v3948_v62, %v3210_v49  ;;  %v4395_v53 = vld [vmem:[#allocation38_spill] sm:$0xff] }
 0x41d   : > { %v1970_v19 = vsel %vm820_vm8, %v1960_v63, %v1962_v38  ;;  %v1922_v58 = vpop.permute.xlu0 %1921  ;;  %v1982_v5 = vsel %vm820_vm8, 0.0, %v1960_v63  ;;  %v2175_v44 = vpack.c.bf16 %v1995_v40, %v1991_v54  ;;  %v1983_v6 = vmul.f32 %v1981_v18, %v3200_v42  ;;  %v4397_v40 = vld [vmem:[#allocation14_spill] sm:$0xff] }
 0x41e   : > { %v1988_v26 = vmul.f32 %v1970_v19, %v3203_v45  ;;  %2211 = vmatprep.subr.bf16.mxu0 %v2180_v39  ;;  %2255 = vmatpush1.bf16.msra.mxu1 %v2181_v47  ;;  %v1987_v17 = vmul.f32 %v1982_v5, %v3200_v42  ;;  %v1944_v20 = vmul.f32 %v4390_v43, %v4389_v11  ;;  %v1901_v27 = vsel %vm746_vm10, 0.0, %v4395_v53  ;;  %v4396_v39 = vld [vmem:[#allocation13_spill] sm:$0xff] }
 0x41f   : > { %2212 = vmatpush1.bf16.msra.mxu0 %v2179_v56  ;;  %2256 = vmatprep.subr.bf16.mxu1 %v2178_v34  ;;  %v1945_v31 = vmul.f32 %v4392_v23, %v4391_v35  ;;  %v1946_v4 = vmul.f32 %v4394_v36, %v4393_v32  ;;  %v1903_v24 = vmul.f32 %v1901_v27, %v4396_v39  ;;  %v4398_v56 = vld [vmem:[#allocation36_spill] sm:$0xff]  ;;  %v4414_v27 = vld [vmem:[#allocation31_spill] sm:$0xff] }
 0x420   : > { %v1964_v10 = vpop.permute.xlu1 %1963  ;;  %2213 = vmatprep.subr.bf16.mxu0 %v2176_v22  ;;  %v2172_v30 = vpack.c.bf16 %v1988_v26, %v1984_v51  ;;  %v2171_v0 = vpack.c.bf16 %v1987_v17, %v1983_v6  ;;  %v1904_v19 = vmul.f32 %v4398_v56, %v4397_v40  ;;  %v4399_v51 = vld [vmem:[#allocation15_spill] sm:$0xff]  ;;  %v4415_v56 = vld [vmem:[#allocation30_spill] sm:$0xff] }
 0x421   : > { %v1971_v12 = vsel %vm820_vm8, %v1962_v38, %v1964_v10  ;;  %v1972_v50 = vsel %vm820_vm8, %v1964_v10, %v1966_v9  ;;  %v1926_v41 = vpop.permute.xlu0 %1925  ;;  %v4388_v38 = vld [vmem:[#allocation8_spill] sm:$0xff]  ;;  %v4400_v10 = vld [vmem:[#allocation39_spill] sm:$0xff] }
 0x422   : > { %v1989_v25 = vmul.f32 %v1971_v12, %v3206_v46  ;;  %v1990_v45 = vmul.f32 %v1972_v50, %v3210_v49  ;;  %2257 = vmatpush1.bf16.msra.mxu1 %v2177_v7  ;;  %v1943_v49 = vmul.f32 %v1941_v15, %v4388_v38  ;;  %v1905_v7 = vmul.f32 %v4400_v10, %v4399_v51  ;;  %v2803_v10 = vld [vmem:[%s4191_s1 + $0x20] ss:$0 sm:$0xff] }
 0x423   : > { %2214 = vmatpush1.bf16.msra.mxu0 %v2175_v44  ;;  %v4401_v44 = vld [vmem:[#allocation16_spill] sm:$0xff] }
 0x424   : > { %v2173_v59 = vpack.c.bf16 %v1989_v25, %v1985_v55  ;;  %v1920_v3 = vpop.permute.xlu1 %1919  ;;  %2215 = vmatprep.subr.bf16.mxu0 %v2172_v30  ;;  %v2174_v61 = vpack.c.bf16 %v1990_v45, %v1986_v13  ;;  %v4402_v55 = vld [vmem:[#allocation29_spill] sm:$0xff] }
 0x425   : > { %v1930_v48 = vsel %vm783_vm7, %v1920_v3, %v1922_v58  ;;  %v1942_v62 = vsel %vm783_vm7, 0.0, %v1920_v3  ;;  %v1882_v46 = vpop.permute.xlu0 %1881  ;;  %v1906_v17 = vmul.f32 %v4402_v55, %v4401_v44  ;;  %v4404_v3 = vld [vmem:[#allocation17_spill] sm:$0xff]  ;;  %v2797_v55 = vld [vmem:[%s3903_s21] ss:$8 sps:$4 sm:$0xff]   ;;  %s672_s21 = scalar_lea.vmem %s4202_s12, %s4426_s24 }
 0x426   : > { %v1947_v42 = vmul.f32 %v1942_v62, %v4388_v38  ;;  %v1948_v52 = vmul.f32 %v1930_v48, %v4389_v11  ;;  %2258 = vmatprep.subr.bf16.mxu1 %v2174_v61  ;;  %v4406_v48 = vld [vmem:[#allocation12_spill] sm:$0xff] }
 0x427   : > { %2216 = vmatpush1.bf16.msra.mxu0 %v2171_v0  ;;  %2259 = vmatpush1.bf16.msra.mxu1 %v2173_v59  ;;  %v4405_v0 = vld [vmem:[#allocation18_spill] sm:$0xff] }
 0x428   : > { %v2167_v16 = vpack.c.bf16 %v1947_v42, %v1943_v49  ;;  %v1924_v2 = vpop.permute.xlu1 %1923  ;;  %v2168_v14 = vpack.c.bf16 %v1948_v52, %v1944_v20  ;;  %v1864_v62 = vmul.f32 %v4406_v48, %v4405_v0  ;;  %v4407_v49 = vld [vmem:[#allocation44_spill] sm:$0xff]  ;;  %v4408_v52 = vld [vmem:[#allocation19_spill] sm:$0xff] }
 0x429   : > { %v1931_v57 = vsel %vm783_vm7, %v1922_v58, %v1924_v2  ;;  %v1932_v33 = vsel %vm783_vm7, %v1924_v2, %v1926_v41  ;;  %v1886_v37 = vpop.permute.xlu0 %1885  ;;  %v4403_v41 = vld [vmem:[#allocation40_spill] sm:$0xff]  ;;  %v2149_v11 = vsel %vm994_vm4, %v4407_v49, 0.0 }
 0x42a   : > { %v1949_v9 = vmul.f32 %v1931_v57, %v4391_v35  ;;  %v1950_v8 = vmul.f32 %v1932_v33, %v4393_v32  ;;  %2217 = vmatprep.subr.bf16.mxu0 %v2168_v14  ;;  %v1861_v13 = vsel %vm709_vm13, 0.0, %v4403_v41  ;;  %v4411_v35 = vld [vmem:[#allocation42_spill] sm:$0xff] }
 0x42b   : > { %2218 = vmatpush1.bf16.msra.mxu0 %v2167_v16  ;;  %v1863_v61 = vmul.f32 %v1861_v13, %v4404_v3  ;;  %v4409_v16 = vld [vmem:[#allocation41_spill] sm:$0xff]  ;;  %v2345_v13 = vld [vmem:[%s4192_s2] sm:$0xff] }
 0x42c   : > { %v2169_v28 = vpack.c.bf16 %v1949_v9, %v1945_v31  ;;  %v1880_v60 = vpop.permute.xlu1 %1879  ;;  %v2170_v29 = vpack.c.bf16 %v1950_v8, %v1946_v4  ;;  %v1865_v2 = vmul.f32 %v4409_v16, %v4408_v52  ;;  %v4412_v4 = vld [vmem:[#allocation35_spill] sm:$0xff] }
 0x42d   : > { %v1890_v1 = vsel %vm746_vm10, %v1880_v60, %v1882_v46  ;;  %v1902_v47 = vsel %vm746_vm10, 0.0, %v1880_v60  ;;  %v1842_v63 = vpop.permute.xlu0 %1841  ;;  %v4413_v9 = vld [vmem:[#allocation43_spill] sm:$0xff]  ;;  %v2137_v53 = vsel %vm994_vm4, %v4412_v4, %v4407_v49 }
 0x42e   : > { %v1907_v58 = vmul.f32 %v1902_v47, %v4396_v39  ;;  %v1908_v34 = vmul.f32 %v1890_v1, %v4397_v40  ;;  %2260 = vmatprep.subr.bf16.mxu1 %v2170_v29  ;;  %v2136_v8 = vsel %vm994_vm4, %v4413_v9, %v4412_v4 }
 0x42f   : > { %2261 = vmatpush1.bf16.msra.mxu1 %v2169_v28  ;;  %v2154_v28 = vmul.f32 %v4414_v27, %v2149_v11 }
 0x430   : > { %v2163_v21 = vpack.c.bf16 %v1907_v58, %v1903_v24  ;;  %v1884_v5 = vpop.permute.xlu1 %1883  ;;  %v2164_v26 = vpack.c.bf16 %v1908_v34, %v1904_v19  ;;  %v2152_v19 = vmul.f32 %v4415_v56, %v2136_v8  ;;  %v4416_v58 = vld [vmem:[#allocation33_spill] sm:$0xff] }
 0x431   : > { %v1891_v22 = vsel %vm746_vm10, %v1882_v46, %v1884_v5  ;;  %v1892_v54 = vsel %vm746_vm10, %v1884_v5, %v1886_v37  ;;  %v1846_v18 = vpop.permute.xlu0 %1845  ;;  %v4410_v37 = vld [vmem:[#allocation20_spill] sm:$0xff]  ;;  %v2153_v34 = vmul.f32 %v4416_v58, %v2137_v53 }
 0x432   : > { %v1909_v12 = vmul.f32 %v1891_v22, %v4399_v51  ;;  %v1910_v50 = vmul.f32 %v1892_v54, %v4401_v44  ;;  %2219 = vmatprep.subr.bf16.mxu0 %v2164_v26  ;;  %v1866_v23 = vmul.f32 %v4411_v35, %v4410_v37 }
 0x433   : > { %2220 = vmatpush1.bf16.msra.mxu0 %v2163_v21 }
 0x434   : > { %v2165_v25 = vpack.c.bf16 %v1909_v12, %v1905_v7  ;;  %v1840_v45 = vpop.permute.xlu1 %1839  ;;  %v2166_v30 = vpack.c.bf16 %v1910_v50, %v1906_v17  ;;  %v2822_v12 = vmov 1983009808  }
 0x435   : > { %v1850_v6 = vsel %vm709_vm13, %v1840_v45, %v1842_v63  ;;  %v1862_v15 = vsel %vm709_vm13, 0.0, %v1840_v45  ;;  %v2130_v59 = vpop.permute.xlu0 %2129  ;;  %v2349_v50 = vunpack.c.l.s4 %v2822_v12  ;;  %v4417_v45 = vld [vmem:[#allocation2_spill] sm:$0xff] }
 0x436   : > { %v1867_v46 = vmul.f32 %v1862_v15, %v4404_v3  ;;  %v1868_v38 = vmul.f32 %v1850_v6, %v4405_v0  ;;  %2262 = vmatprep.subr.bf16.mxu1 %v2166_v30 }
 0x437   : > { %2263 = vmatpush1.bf16.msra.mxu1 %v2165_v25  ;;  %v2350_v41 = vunpack.c.0.s8 %v2349_v50  ;;  %v2347_v25 = vcombine.high %v2345_v13, %v2345_v13 }
 0x438   : > { %v2159_v43 = vpack.c.bf16 %v1867_v46, %v1863_v61  ;;  %v1844_v20 = vpop.permute.xlu1 %1843  ;;  %v2160_v42 = vpack.c.bf16 %v1868_v38, %v1864_v62 }
 0x439   : > { %v1851_v14 = vsel %vm709_vm13, %v1842_v63, %v1844_v20  ;;  %v1852_v57 = vsel %vm709_vm13, %v1844_v20, %v1846_v18  ;;  %v2134_v33 = vpop.permute.xlu0 %2133  ;;  %v2353_v30 = vsub.s32 %v2350_v41, %v4417_v45 }
 0x43a   : > { %v1869_v31 = vmul.f32 %v1851_v14, %v4408_v52  ;;  %v1870_v32 = vmul.f32 %v1852_v57, %v4410_v37  ;;  %v2150_v36 = vsel %vm994_vm4, %v2134_v33, 0.0  ;;  %2221 = vmatprep.subr.bf16.mxu0 %v2160_v42 }
 0x43b   : > { %v2158_v60 = vmul.f32 %v4414_v27, %v2150_v36  ;;  %2222 = vmatpush1.bf16.msra.mxu0 %v2159_v43  ;;  %v2361_v6 = vrot.slane %v2347_v25, %v2353_v30  ;;  %v4419_v27 = vld [vmem:[#allocation28_spill] sm:$0xff] }
 0x43c   : > { %v2161_v29 = vpack.c.bf16 %v1869_v31, %v1865_v2  ;;  %v2132_v1 = vpop.permute.xlu1 %2131  ;;  %v2162_v47 = vpack.c.bf16 %v1870_v32, %v1866_v23 }
 0x43d   : > { %v2139_v63 = vsel %vm994_vm4, %v2130_v59, %v2132_v1  ;;  %v2140_v39 = vsel %vm994_vm4, %v2132_v1, %v2134_v33  ;;  %v2128_v24 = vpop.permute.xlu0 %2127  ;;  %v2194_v40 = vpack.c.bf16 %v2158_v60, %v2154_v28  ;;  %v2363_v15 = vcombine.high %v2361_v6, %v2361_v6  ;;  %v4420_v1 = vld [vmem:[#allocation22_spill] sm:$0xff] }
 0x43e   : > { %v2156_v21 = vmul.f32 %v4415_v56, %v2139_v63  ;;  %v2157_v5 = vmul.f32 %v4416_v58, %v2140_v39  ;;  %2264 = vmatprep.subr.bf16.mxu1 %v2162_v47  ;;  %v2138_v26 = vsel %vm994_vm4, %v2128_v24, %v2130_v59  ;;  %v2354_v59 = vrot.slane %v2345_v13, %v2353_v30  ;;  %v4421_v24 = vld [vmem:[#allocation27_spill] sm:$0xff] }
 0x43f   : > { %2265 = vmatpush1.bf16.msra.mxu1 %v2161_v29  ;;  %v2155_v7 = vmul.f32 %v2803_v10, %v2138_v26  ;;  %v2371_v3 = vpack.c.bf16 %v2363_v15, %v2363_v15  ;;  %v2370_v45 = vpack.c.bf16 %v2361_v6, %v2361_v6  ;;  %v2823_v15 = vmov 0.0  }
 0x440   : > { %v2193_v22 = vpack.c.bf16 %v2157_v5, %v2153_v34  ;;  %v2120_v54 = vpop.permute.xlu1 %2119  ;;  %2280 = vmatprep.subr.bf16.mxu1 %v2194_v40  ;;  %v2192_v18 = vpack.c.bf16 %v2156_v21, %v2152_v19  ;;  %v2362_v61 = vcombine.high %v2354_v59, %v2354_v59  ;;  %v4422_v19 = vld [vmem:[#allocation23_spill] sm:$0xff]  ;;  %v4423_v34 = vld [vmem:[#allocation25_spill] sm:$0xff]  ;;  %v2368_v30 = vpack.c.bf16 %v2354_v59, %v2354_v59 }
 0x441   : > { %v2135_v51 = vsel %vm994_vm4, %v2120_v54, %v4413_v9  ;;  %v4418_v9 = vld [vmem:[#allocation24_spill] sm:$0xff] }
 0x442   : > { %v2151_v44 = vmul.f32 %v2803_v10, %v2135_v51  ;;  %2237 = vmatprep.subr.bf16.mxu0 %v2192_v18  ;;  %v2369_v0 = vpack.c.bf16 %v2362_v61, %v2362_v61  ;;  %v4425_v10 = vld [vmem:[#allocation26_spill] sm:$0xff] }
 0x443   : > { %2281 = vmatpush2.bf16.msra.mxu1 %v2193_v22  ;;  %v4424_v22 = vld [vmem:[#allocation21_spill] sm:$0xff] }
 0x444   : > { %v2191_v17 = vpack.c.bf16 %v2155_v7, %v2151_v44 }
 0x446   : > { %2238 = vmatpush2.bf16.msra.mxu0 %v2191_v17  ;;  %2283 = vmatmul.mubr.bf16.vlgmr.msra.gmra.mxu1 %v2797_v55 }
 0x447   : > { %2448 = vmatprep.mubr.bf16.mxu1 %v2371_v3  ;;  %v2799_v3 = vld [vmem:[%s672_s21] sm:$0xff]  }
 0x449   : > { %2240 = vmatmul.mubr.bf16.vlgmr.msra.gmra.mxu0 %v2797_v55 }
 0x44a   : > { %2408 = vmatprep.mubr.bf16.mxu0 %v2369_v0  ;;  %v2301_v62 = vpop.permute.xlu0 %2300 }
 0x44d   : > { %v2296_v48 = vpop.permute.xlu1 %2295 }
 0x44e   : > { %v2319_v57 = vpop.permute.xlu0 %2318 }
 0x451   : > { %v2314_v20 = vpop.permute.xlu1 %2313 }
 0x506   : > { %v2284_v46 = vpop.f32.mrf.mxu1 }
 0x507   : > { %v2305_v38 = vmul.f32 %v2296_v48, %v2284_v46 }
 0x508   : > { %v2286_v49 = vpop.f32.mrf.mxu1 }
 0x509   : > { %v2306_v11 = vmul.f32 %v2296_v48, %v2286_v49  ;;  %v2241_v43 = vpop.f32.mrf.mxu0  ;;  %v2323_v33 = vadd.f32 %v2314_v20, %v2305_v38 }
 0x50a   : > { %v2288_v42 = vpop.f32.mrf.mxu1  ;;  %v2303_v16 = vmul.f32 %v2296_v48, %v2241_v43  ;;  %v2742_v43 = vld [vmem:[%s675_s17] ss:$0 sm:$0xff] }
 0x50b   : > { %v2324_v52 = vadd.f32 %v2314_v20, %v2306_v11  ;;  %v2309_v2 = vmul.f32 %v2301_v62, %v2288_v42  ;;  %v2243_v14 = vpop.f32.mrf.mxu0  ;;  %v2331_v47 = vadd.f32 %v2323_v33, %v4420_v1 }
 0x50c   : > { %v2304_v37 = vmul.f32 %v2296_v48, %v2243_v14  ;;  %v2290_v35 = vpop.f32.mrf.mxu1  ;;  %v2321_v53 = vadd.f32 %v2314_v20, %v2303_v16 }
 0x50d   : > { %v2327_v23 = vadd.f32 %v2319_v57, %v2309_v2  ;;  %v2310_v31 = vmul.f32 %v2301_v62, %v2290_v35  ;;  %v2245_v32 = vpop.f32.mrf.mxu0  ;;  %v2332_v8 = vadd.f32 %v2324_v52, %v4418_v9  ;;  %v2339_v51 = vmax.f32 %v2331_v47, 0.0 }
 0x50e   : > { %v2322_v36 = vadd.f32 %v2314_v20, %v2304_v37  ;;  %v2307_v4 = vmul.f32 %v2301_v62, %v2245_v32  ;;  %v2329_v54 = vadd.f32 %v2321_v53, %v4424_v22 }
 0x50f   : > { %v2335_v28 = vadd.f32 %v2327_v23, %v4419_v27  ;;  %v2328_v60 = vadd.f32 %v2319_v57, %v2310_v31  ;;  %v2247_v29 = vpop.f32.mrf.mxu0  ;;  %v2340_v26 = vmax.f32 %v2332_v8, 0.0 }
 0x510   : > { %v2325_v63 = vadd.f32 %v2319_v57, %v2307_v4  ;;  %v2308_v39 = vmul.f32 %v2301_v62, %v2247_v29  ;;  %v2330_v58 = vadd.f32 %v2322_v36, %v4422_v19  ;;  %v2337_v41 = vmax.f32 %v2329_v54, 0.0 }
 0x511   : > { %v2336_v40 = vadd.f32 %v2328_v60, %v4421_v24  ;;  %v2343_v56 = vmax.f32 %v2335_v28, 0.0 }
 0x512   : > { %v2333_v21 = vadd.f32 %v2325_v63, %v4423_v34  ;;  %v2326_v5 = vadd.f32 %v2319_v57, %v2308_v39  ;;  %v2338_v12 = vmax.f32 %v2330_v58, 0.0 }
 0x513   : > { %v2344_v18 = vmax.f32 %v2336_v40, 0.0  ;;  %v2374_v17 = vpack.c.bf16 %v2343_v56, %v2339_v51 }
 0x514   : > { %v2334_v7 = vadd.f32 %v2326_v5, %v4425_v10  ;;  %v2341_v44 = vmax.f32 %v2333_v21, 0.0 }
 0x515   : > { %v2375_v55 = vpack.c.bf16 %v2344_v18, %v2340_v26 }
 0x516   : > { %v2342_v50 = vmax.f32 %v2334_v7, 0.0  ;;  %v2372_v25 = vpack.c.bf16 %v2341_v44, %v2337_v41 }
 0x517   : > { %2430 = vmatprep.subr.bf16.mxu1 %v2375_v55 }
 0x518   : > { %2431 = vmatpush1.bf16.xpose.msra.mxu1 %v2374_v17  ;;  %v2373_v13 = vpack.c.bf16 %v2342_v50, %v2338_v12 }
 0x51a   : > { %2390 = vmatprep.subr.bf16.mxu0 %v2373_v13 }
 0x51b   : > { %2391 = vmatpush1.bf16.xpose.msra.mxu0 %v2372_v25 }
 0x51c   : > { %2760 = vmatprep.subr.bf16.mxu0 %v2823_v15 }
 0x51f   : > { %2449 = vmatmul.mubr.bf16.vlgmr.msra.gmra.mxu1 %v2370_v45 }
 0x522   : > { %2409 = vmatmul.mubr.bf16.vlgmr.msra.gmra.mxu0 %v2368_v30 }
 0x523   : > { %2761 = vmatpush3.bf16.msra.mxu0 %v2799_v3  ;;  %2762 = vmatprep.mubr.msk.bf16.mxu0 %vm2824_vm0, %v2823_v15 }
 0x5df   : > { %v2450_v61 = vpop.f32.mrf.mxu1 }
 0x5e1   : > { %v2452_v0 = vpop.f32.mrf.mxu1 }
 0x5e2   : > { %v2410_v48 = vpop.f32.mrf.mxu0 }
 0x5e3   : > { %v2451_v6 = vadd.f32 %v2450_v61, %v2410_v48  ;;  %v2453_v59 = vpop.f32.mrf.mxu1 }
 0x5e4   : > { %v2412_v62 = vpop.f32.mrf.mxu0 }
 0x5e5   : > { %v2458_v46 = vpack.c.bf16 %v2451_v6, %v2451_v6  ;;  %v2454_v38 = vpop.f32.mrf.mxu1 }
 0x5e6   : > { %v2413_v49 = vpop.f32.mrf.mxu0 }
 0x5e7   : > { %2763 = vmatmul.mubr.msk.bf16.vlgmr.msra.gmra.mxu0 %vm746_vm10, %v2458_v46 }
 0x5e8   : > { %v2414_v11 = vpop.f32.mrf.mxu0 }
 0x6a7   : > { %v2509_v20 = vpop.f32.mrf.mxu0 }
 0x6a8   : > { %v2510_v42 = vadd.f32 %v2742_v43, %v2509_v20 }
 0x6a9   : > { %v2764_v52 = vpop.f32.mrf.mxu0 }
 0x6aa   : > { %2516 = vst.msk [vmem:[%s679_s15] sm:$0x3] %vm2515_vm1, %v2510_v42 }
 0x6ab   : > { %v2512_v16 = vpop.f32.mrf.mxu0 }
 0x6ad   : > { %v2765_v2 = vpop.f32.mrf.mxu0 }
 0x6ae PF: > { %s24_s29 = sadd.s32 1, %s2810_s29  }
 0x6af   : > { %p21_p4 = scmp.ge.s32.totalorder %s24_s29, 4  }
 0x6b1   :  { %23 = sbr.rel (!%p21_p4) target bundleno = 1 (0x1), region = 139 }

// kernel: forward.3
= control target key start
LH: loop header
LB: loop body
LE: loop exit
PB: predicated region body
PF: predicated region fallthrough
CT: control target
= control target key end

     0   :  { %s5135_s0 = inlined_call_operand.vmem [shape: f32[16,1], index: 0, kind: input, shape index: {}]   ;;  %s5136_s1 = inlined_call_operand.vmem [shape: f32[8,64], index: 1, kind: input, shape index: {}]   ;;  %s5137_s2 = inlined_call_operand.vmem [shape: f32[1,64], index: 2, kind: input, shape index: {}]   ;;  %s5138_s3 = inlined_call_operand.vmem [shape: f32[1,64], index: 3, kind: input, shape index: {}]   ;;  %s5139_s4 = inlined_call_operand.vmem [shape: bf16[3,64,64], index: 4, kind: input, shape index: {}]   ;;  %s5140_s5 = inlined_call_operand.vmem [shape: f32[3,1,64], index: 5, kind: input, shape index: {}]   ;;  %s5141_s6 = inlined_call_operand.vmem [shape: bf16[3,64,64], index: 6, kind: input, shape index: {}]   ;;  %s5142_s7 = inlined_call_operand.vmem [shape: f32[3,1,64], index: 7, kind: input, shape index: {}]   ;;  %s5143_s8 = inlined_call_operand.vmem [shape: bf16[3,64,64], index: 8, kind: input, shape index: {}]   ;;  %s5144_s9 = inlined_call_operand.vmem [shape: f32[3,1,64], index: 9, kind: input, shape index: {}]   ;;  %s5145_s10 = inlined_call_operand.vmem [shape: bf16[3,64,64], index: 10, kind: input, shape index: {}]   ;;  %s5146_s11 = inlined_call_operand.vmem [shape: f32[3,1,64], index: 11, kind: input, shape index: {}]   ;;  %s5147_s12 = inlined_call_operand.vmem [shape: f32[3,1,64], index: 12, kind: input, shape index: {}]   ;;  %s5148_s13 = inlined_call_operand.vmem [shape: f32[3,1,64], index: 13, kind: input, shape index: {}]   ;;  %s5149_s14 = inlined_call_operand.vmem [shape: bf16[3,64,128], index: 14, kind: input, shape index: {}]   ;;  %s5150_s15 = inlined_call_operand.vmem [shape: f32[3,1,128], index: 15, kind: input, shape index: {}]   ;;  %s5151_s16 = inlined_call_operand.vmem [shape: bf16[3,128,64], index: 16, kind: input, shape index: {}]   ;;  %s5152_s17 = inlined_call_operand.vmem [shape: f32[3,1,64], index: 17, kind: input, shape index: {}]   ;;  %s5153_s18 = inlined_call_operand.vmem [shape: f32[3,1,64], index: 18, kind: input, shape index: {}]   ;;  %s5154_s19 = inlined_call_operand.vmem [shape: f32[3,1,64], index: 19, kind: input, shape index: {}]   ;;  %s5155_s20 = inlined_call_operand.vmem [shape: bf16[64,32], index: 20, kind: input, shape index: {}]   ;;  %s5156_s21 = inlined_call_operand.vmem [shape: f32[1,32], index: 21, kind: input, shape index: {}]   ;;  %s5157_s22 = inlined_call_operand.vmem [shape: f32[2,32], index: 22, kind: output, shape index: {}]  }
   0x1   :  { %5163 = sst [smem:[#allocation6_spill]] %s5135_s0 }
   0x2   :  { %5164 = sst [smem:[#allocation7_spill]] %s5136_s1 }
   0x3   :  { %5165 = sst [smem:[#allocation8_spill]] %s5137_s2 }
   0x4   :  { %5166 = sst [smem:[#allocation9_spill]] %s5138_s3  ;;  %s4528_s3 = smov 0  }
   0x5   :  { %5167 = sst [smem:[#allocation10_spill]] %s5139_s4 }
   0x6   :  { %5168 = sst [smem:[#allocation11_spill]] %s5140_s5 }
   0x7   :  { %5169 = sst [smem:[#allocation12_spill]] %s5141_s6 }
   0x8   :  { %5170 = sst [smem:[#allocation13_spill]] %s5143_s8 }
   0x9   :  { %5171 = sst [smem:[#allocation14_spill]] %s5145_s10 }
   0xa   :  { %5172 = sst [smem:[#allocation15_spill]] %s5149_s14 }
   0xb   :  { %5173 = sst [smem:[#allocation16_spill]] %s5154_s19 }
   0xc   :  { %5174 = sst [smem:[#allocation17_spill]] %s5155_s20 }
   0xd   :  { %5175 = sst [smem:[#allocation18_spill]] %s5156_s21 }
   0xe   :  { %5176 = sst [smem:[#allocation19_spill]] %s5157_s22 }
   0xf LB: > { %5177 = sst [smem:[#allocation3_spill]] %s4392_s3  ;;  %s4534_s28 = sadd.s32 4294967295, %s4392_s3   ;;  %s4392_s3 = sphi %s4528_s3, %s32_s3  }
  0x10   : > { %5178 = sst [smem:[#allocation4_spill]] %s4534_s28  ;;  %p3724_p0 = scmp.ge.s32.totalorder %s4392_s3, 1 }
  0x11   : > { %p737_p1 = scmp.lt.s32.totalorder %s4392_s3, 4 }
  0x13   : > { %p738_p2 = pnand %p3724_p0, %p737_p1 }
  0x15   : > { %741 = sbr.rel (%p738_p2) target bundleno = 6317 (0x18ad), region = 108 }
  0x1a   : > { %p849_p3 = scmp.lt.s32.totalorder %s4534_s28, 2  ;;  %s5180_s6 = sld [smem:[#allocation10_spill]] }
  0x1b   : > { %s5181_s27 = sld [smem:[#allocation12_spill]] }
  0x1c   : > { %s4540_s29 = scalar_select %p849_p3, %s4534_s28, 2 }
  0x1d   : > { %s5182_s8 = sld [smem:[#allocation13_spill]] }
  0x1e   : > { %s3824_s30 = sshll.u32 %s4540_s29, 5  ;;  %s5184_s10 = sld [smem:[#allocation14_spill]] }
  0x1f   : > { %s5185_s14 = sld [smem:[#allocation15_spill]]  ;;  %s902_s19 = scalar_lea.vmem %s5152_s17, %s4540_s29 }
  0x20   : > { %s4550_s25 = scalar_lea.vmem %s5180_s6, %s3824_s30  ;;  %s5186_s20 = sld [smem:[#allocation16_spill]] }
  0x21   : > { %s4555_s3 = scalar_lea.vmem %s5181_s27, %s3824_s30  ;;  %s5187_s24 = sld [smem:[#allocation4_spill]] }
  0x23   : > { %s4564_s4 = scalar_lea.vmem %s5182_s8, %s3824_s30 }
  0x24   : > { %5183 = sst [smem:[#allocation5_spill]] %s4564_s4  ;;  %s4573_s1 = scalar_lea.vmem %s5184_s10, %s3824_s30 }
  0x25   : > { %s4590_s23 = scalar_lea.vmem %s5185_s14, %s3824_s30  ;;  %s3829_s10 = sshll.u32 %s4540_s29, 6 }
  0x26   : > { %s4600_s27 = scalar_lea.vmem %s5151_s16, %s3829_s10  ;;  %s905_s4 = scalar_lea.vmem %s5153_s18, %s4540_s29 }
  0x27   : > { %s908_s14 = scalar_lea.vmem %s5186_s20, %s4540_s29  ;;  %p3737_p4 = scmp.ne.s32.totalorder %s5187_s24, 0 }
  0x28   : > { %s5188_s26 = sld [smem:[#allocation6_spill]] (!%p3737_p4) }
  0x29   : > { %913 = sbr.rel (%p3737_p4) target bundleno = 183 (0xb7), region = 112  ;;  %s5189_s22 = sld [smem:[#allocation8_spill]] (!%p3737_p4) }
  0x2a   : > { %s5190_s30 = sld [smem:[#allocation9_spill]] (!%p3737_p4) }
  0x2b   : > { %s5191_s24 = sld [smem:[#allocation7_spill]] (!%p3737_p4) }
  0x2e   : > { %v914_v0 = vld [vmem:[%s5188_s26] sm:$0xff]  ;;  %v4394_v1 = vmov 0   ;;  %v915_v2 = vld [vmem:[%s5188_s26 + $0x8] sm:$0xff]  ;;  %vm947_vm0 = vcmask 523264  }
  0x2f   : > { %4244 = vset.pattern.permute.xlu0 %v4394_v1  ;;  %v3738_v3 = vld [vmem:[%s5189_s22] ss:$0 sm:$0xff] }
  0x30   : > { %919 = vperm.xlu0 %4244, %v914_v0   ;;  %v3739_v4 = vld [vmem:[%s5190_s30] ss:$0 sm:$0xff] }
  0x31   : > { %v944_v7 = vld [vmem:[%s5191_s24] sm:$0xff] }
  0x34   : > { %924 = vperm.xlu0 %4244, %v915_v2  }
  0xab   : > { %v920_v5 = vpop.permute.xlu0 %919 }
  0xac   : > { %v933_v6 = vmul.f32 %v3738_v3, %v920_v5 }
  0xae   : > { %v942_v8 = vadd.f32 %v3739_v4, %v933_v6 }
  0xaf   : > { %v925_v9 = vpop.permute.xlu0 %924 }
  0xb0   : > { %v945_v10 = vadd.f32 %v944_v7, %v942_v8  ;;  %v934_v11 = vmul.f32 %v3738_v3, %v925_v9 }
  0xb2   : > { %948 = vst.msk [vmem:[#allocation2] sm:$0xff] %vm947_vm0, %v945_v10  ;;  %v943_v12 = vadd.f32 %v3739_v4, %v934_v11 }
  0xb4   : > { %v946_v13 = vadd.f32 %v944_v7, %v943_v12 }
  0xb6   : > { %949 = vst.msk [vmem:[#allocation2 + $0x8] sm:$0xff] %vm947_vm0, %v946_v13 }
  0xb7 PF: > { %v4280_v14 = vld [vmem:[%s4550_s25 + $0x18] sm:$0xff]   ;;  %v4395_v15 = vmov 0.0   ;;  %v4281_v16 = vld [vmem:[%s4550_s25 + $0x10] sm:$0xff]   ;;  %vm4396_vm1 = vmmov 0   ;;  %v4282_v17 = vld [vmem:[%s4550_s25 + $0x8] sm:$0xff]   ;;  %vm992_vm2 = vcmask 523264   ;;  %s5192_s10 = scalar_lea.vmem %s5142_s7, %s4540_s29  ;;  %s5196_s5 = scalar_lea.vmem %s5144_s9, %s4540_s29 }
  0xb8   : > { %3933 = vmatprep.subr.bf16.mxu1 %v4395_v15  ;;  %3957 = vmatprep.subr.bf16.mxu0 %v4395_v15  ;;  %v4283_v18 = vld [vmem:[%s4550_s25] sm:$0xff]   ;;  %v4284_v21 = vld [vmem:[%s4555_s3 + $0x18] sm:$0xff]   ;;  %v4285_v23 = vld [vmem:[%s4555_s3 + $0x10] sm:$0xff]   ;;  %vm1201_vm3 = vcmask 64512   ;;  %s5193_s8 = sld [smem:[#allocation11_spill]]  ;;  %s4397_s20 = smov 120  }
  0xb9   : > { %3934 = vmatpush3.bf16.msra.mxu1 %v4280_v14  ;;  %3941 = vmatprep.mubr.msk.bf16.mxu1 %vm4396_vm1, %v4395_v15  ;;  %v950_v19 = vld [vmem:[#allocation2] sm:$0xff]  ;;  %v4286_v24 = vld [vmem:[%s4555_s3 + $0x8] sm:$0xff]   ;;  %s5195_s22 = sld [smem:[#allocation5_spill]]  ;;  %vm1325_vm4 = vcmask 1043456   ;;  %s4398_s0 = smov 112   ;;  %vm3033_vm5 = vcmask 130048  }
  0xba   : > { %3935 = vmatprep.subr.bf16.mxu1 %v4395_v15  ;;  %3965 = vmatprep.mubr.msk.bf16.mxu0 %vm4396_vm1, %v4395_v15  ;;  %v4287_v25 = vld [vmem:[%s4555_s3] sm:$0xff]   ;;  %s4399_s24 = smov 104   ;;  %s4400_s25 = smov 96   ;;  %vm3036_vm6 = vcmask 195584   ;;  %vm3039_vm7 = vcmask 261120   ;;  %vm3042_vm8 = vcmask 326656  }
  0xbb   : > { %v3746_v30 = vld [vmem:[%s5192_s10] ss:$0 sm:$0xff]  ;;  %s4401_s6 = smov 88   ;;  %s4402_s10 = smov 80   ;;  %vm3045_vm9 = vcmask 392192   ;;  %vm3048_vm10 = vcmask 457728  }
  0xbc   : > { %v3752_v9 = vld [vmem:[%s5196_s5] ss:$0 sm:$0xff]  ;;  %s4403_s3 = smov 72   ;;  %s4404_s2 = smov 8  }
  0xbd   : > { %3936 = vmatpush3.bf16.msra.mxu1 %v4281_v16  ;;  %v951_v20 = vld [vmem:[#allocation2 + $0x8] sm:$0xff]  ;;  %s4409_s28 = smov 40   ;;  %s4410_s30 = smov 56  }
  0xbe   : > { %3937 = vmatprep.subr.bf16.mxu1 %v4395_v15  ;;  %v960_v22 = vpack.c.bf16 %v951_v20, %v950_v19  ;;  %s5194_s21 = scalar_lea.vmem %s5193_s8, %s4540_s29  ;;  %s4405_s8 = smov 16  }
  0xbf   : > { %v3740_v35 = vld [vmem:[%s5194_s21] ss:$0 sm:$0xff]  ;;  %v4288_v46 = vld [vmem:[%s5195_s22 + $0x18] sm:$0xff]   ;;  %v4289_v47 = vld [vmem:[%s5195_s22 + $0x10] sm:$0xff]   ;;  %s4406_s21 = smov 32   ;;  %s5202_s5 = sld [smem:[#allocation4_spill]] }
  0xc0   : > { %3958 = vmatpush3.bf16.msra.mxu0 %v4288_v46  ;;  %v4290_v48 = vld [vmem:[%s5195_s22 + $0x8] sm:$0xff]   ;;  %v4291_v49 = vld [vmem:[%s5195_s22] sm:$0xff]   ;;  %s4407_s22 = smov 48  }
  0xc1   : > { %3938 = vmatpush3.bf16.msra.mxu1 %v4282_v17  ;;  %3959 = vmatprep.subr.bf16.mxu0 %v4395_v15 }
  0xc2   : > { %3939 = vmatprep.subr.bf16.mxu1 %v4395_v15 }
  0xc4   : > { %3960 = vmatpush3.bf16.msra.mxu0 %v4289_v47 }
  0xc5   : > { %3940 = vmatpush3.bf16.msra.mxu1 %v4283_v18  ;;  %3961 = vmatprep.subr.bf16.mxu0 %v4395_v15  ;;  %p3815_p5 = scmp.ne.s32.totalorder %s5202_s5, 2 }
  0xc6   : > { %3945 = vmatprep.subr.bf16.mxu1 %v4395_v15 }
  0xc8   : > { %3942 = vmatmul.mubr.msk.bf16.vlgmr.msra.gmra.mxu1 %vm992_vm2, %v960_v22  ;;  %3962 = vmatpush3.bf16.msra.mxu0 %v4290_v48 }
  0xc9   : > { %3946 = vmatpush3.bf16.msra.mxu1 %v4284_v21  ;;  %3953 = vmatprep.mubr.msk.bf16.mxu1 %vm4396_vm1, %v4395_v15 }
  0xca   : > { %3947 = vmatprep.subr.bf16.mxu1 %v4395_v15  ;;  %3963 = vmatprep.subr.bf16.mxu0 %v4395_v15 }
  0xcc   : > { %3964 = vmatpush3.bf16.msra.mxu0 %v4291_v49 }
  0xcd   : > { %3948 = vmatpush3.bf16.msra.mxu1 %v4285_v23  ;;  %3981 = vmatprep.subr.bf16.mxu0 %v4395_v15 }
  0xce   : > { %3949 = vmatprep.subr.bf16.mxu1 %v4395_v15 }
  0xcf   : > { %3966 = vmatmul.mubr.msk.bf16.vlgmr.msra.gmra.mxu0 %vm992_vm2, %v960_v22 }
  0xd0   : > { %3983 = vmatprep.mubr.msk.bf16.mxu0 %vm4396_vm1, %v4395_v15 }
  0xd1   : > { %3950 = vmatpush3.bf16.msra.mxu1 %v4286_v24 }
  0xd2   : > { %3951 = vmatprep.subr.bf16.mxu1 %v4395_v15 }
  0xd5   : > { %3952 = vmatpush3.bf16.msra.mxu1 %v4287_v25 }
  0xd6   : > { %3969 = vmatprep.subr.bf16.mxu1 %v4395_v15 }
  0xd8   : > { %3954 = vmatmul.mubr.msk.bf16.vlgmr.msra.gmra.mxu1 %vm992_vm2, %v960_v22 }
  0xd9   : > { %3971 = vmatprep.mubr.msk.bf16.mxu1 %vm4396_vm1, %v4395_v15 }
 0x188   : > { %v1030_v26 = vpop.f32.mrf.mxu1 }
 0x189   : > { %v1031_v40 = vadd.f32 %v3740_v35, %v1030_v26 }
 0x18a   : > { %v3943_v27 = vpop.f32.mrf.mxu1 }
 0x18b   : > { %v4677_v42 = vpack.c.bf16 %v1031_v40, %v1031_v40 }
 0x18c   : > { %v1033_v28 = vpop.f32.mrf.mxu1 }
 0x18d   : > { %v1034_v44 = vadd.f32 %v3740_v35, %v1033_v28 }
 0x18e   : > { %v3944_v29 = vpop.f32.mrf.mxu1 }
 0x18f   : > { %v4686_v45 = vpack.c.bf16 %v1034_v44, %v1034_v44  ;;  %v1190_v8 = vpop.f32.mrf.mxu0 }
 0x190   : > { %v1191_v11 = vadd.f32 %v3752_v9, %v1190_v8 }
 0x191   : > { %v3967_v10 = vpop.f32.mrf.mxu0 }
 0x192   : > { %v4714_v16 = vpack.c.bf16 %v1191_v11, %v1191_v11 }
 0x193   : > { %v1193_v12 = vpop.f32.mrf.mxu0 }
 0x194   : > { %v1194_v13 = vadd.f32 %v3752_v9, %v1193_v12  ;;  %v1327_v18 = vsel %vm1325_vm4, %v4714_v16, 0 }
 0x195   : > { %v3968_v14 = vpop.f32.mrf.mxu0  ;;  %3982 = vmatpush3.bf16.msra.mxu0 %v1327_v18 }
 0x196   : > { %v4716_v17 = vpack.c.bf16 %v1194_v13, %v1194_v13  ;;  %3993 = vmatprep.subr.bf16.mxu0 %v4395_v15 }
 0x198   : > { %v1110_v31 = vpop.f32.mrf.mxu1  ;;  %v1373_v19 = vsel %vm1325_vm4, %v4716_v17, 0 }
 0x199   : > { %v1111_v32 = vadd.f32 %v3746_v30, %v1110_v31 }
 0x19a   : > { %v3955_v33 = vpop.f32.mrf.mxu1 }
 0x19b   : > { %v4663_v34 = vpack.c.bf16 %v1111_v32, %v1111_v32 }
 0x19c   : > { %v1113_v36 = vpop.f32.mrf.mxu1 }
 0x19d   : > { %v1114_v37 = vadd.f32 %v3746_v30, %v1113_v36  ;;  %v1206_v38 = vsel %vm1201_vm3, %v4663_v34, 0 }
 0x19e   : > { %v3956_v39 = vpop.f32.mrf.mxu1  ;;  %3970 = vmatpush3.bf16.xpose.msra.mxu1 %v1206_v38 }
 0x19f   : > { %v4672_v41 = vpack.c.bf16 %v1114_v37, %v1114_v37  ;;  %3975 = vmatprep.subr.bf16.mxu1 %v4395_v15 }
 0x1a1   : > { %1471 = vrot.lane.b32.xlu1 %v4672_v41, %s4397_s20  ;;  %v1252_v43 = vsel %vm1201_vm3, %v4672_v41, 0 }
 0x1a5   : > { %3972 = vmatmul.mubr.msk.bf16.vlgmr.msra.gmra.mxu1 %vm1201_vm3, %v4677_v42 }
 0x1a6   : > { %3976 = vmatpush3.bf16.xpose.msra.mxu1 %v1252_v43  ;;  %3977 = vmatprep.mubr.msk.bf16.mxu1 %vm4396_vm1, %v4395_v15 }
 0x1a7   : > { %3987 = vmatprep.subr.bf16.mxu1 %v4395_v15 }
 0x1ad   : > { %3978 = vmatmul.mubr.msk.bf16.vlgmr.msra.gmra.mxu1 %vm1201_vm3, %v4686_v45 }
 0x1ae   : > { %3989 = vmatprep.mubr.msk.bf16.mxu1 %vm4396_vm1, %v4395_v15  ;;  %3988 = vmatpush3.bf16.msra.mxu1 %v1373_v19 }
 0x1af   : > { %3999 = vmatprep.subr.bf16.mxu1 %v4395_v15 }
 0x213   : > { %v1472_v20 = vpop.permute.xlu1 %1471 }
 0x214   : > { %v1477_v32 = vsel %vm1201_vm3, %v1472_v20, 0 }
 0x265   : > { %v1242_v50 = vpop.f32.mrf.mxu1 }
 0x266   : > { %v1294_v51 = vmul.f32 0.35355338, %v1242_v50 }
 0x267   : > { %v3973_v52 = vpop.f32.mrf.mxu1 }
 0x268   : > { %v1296_v53 = vsel %vm1201_vm3, %v1294_v51, -inf }
 0x269   : > { %1297 = vmax.xlane.f32.xlu0 %v1296_v53  ;;  %v1245_v54 = vpop.f32.mrf.mxu1 }
 0x26b   : > { %v3974_v55 = vpop.f32.mrf.mxu1 }
 0x26d   : > { %v1288_v56 = vpop.f32.mrf.mxu1 }
 0x26e   : > { %v1295_v57 = vmul.f32 0.35355338, %v1288_v56 }
 0x26f   : > { %v3979_v58 = vpop.f32.mrf.mxu1 }
 0x270   : > { %v1299_v59 = vsel %vm1201_vm3, %v1295_v57, -inf }
 0x271   : > { %1300 = vmax.xlane.f32.xlu0 %v1299_v59  ;;  %v1291_v60 = vpop.f32.mrf.mxu1 }
 0x273   : > { %v3980_v61 = vpop.f32.mrf.mxu1 }
 0x287   : > { %1419 = vrot.lane.b32.xlu0 %v4663_v34, %s4397_s20 }
 0x2f2   : > { %v1298_v62 = vpop.xlane.xlu0 %1297 }
 0x2f3   : > { %v1302_v63 = vsub.f32 %v1294_v51, %v1298_v62 }
 0x2f5   : > { %v1304_v0 = vmul.f32 1.442695, %v1302_v63 }
 0x2f7   : > { %4308 = vpow2.f32 %v1304_v0 }
 0x2fa   : > { %v1301_v1 = vpop.xlane.xlu0 %1300 }
 0x2fb   : > { %v1303_v2 = vsub.f32 %v1295_v57, %v1301_v1 }
 0x2fd   : > { %v1306_v3 = vmul.f32 1.442695, %v1303_v2 }
 0x2fe   : > { %v1420_v25 = vpop.permute.xlu0 %1419 }
 0x2ff   : > { %4310 = vpow2.f32 %v1306_v3  ;;  %v1425_v27 = vsel %vm1201_vm3, %v1420_v25, 0 }
 0x304   : > { %v4309_v4 = vpop.eup %4308 }
 0x305   : > { %v1308_v5 = vsel %vm1201_vm3, %v4309_v4, 0.0 }
 0x306   : > { %1309 = vadd.xlane.f32.xlu1 %v1308_v5 }
 0x30c   : > { %v4311_v6 = vpop.eup %4310 }
 0x30d   : > { %v1311_v7 = vsel %vm1201_vm3, %v4311_v6, 0.0 }
 0x30e   : > { %1312 = vadd.xlane.f32.xlu1 %v1311_v7 }
 0x31f   : > { %1416 = vrot.lane.b32.xlu1 %v4677_v42, %s4397_s20 }
 0x323   : > { %1468 = vrot.lane.b32.xlu1 %v4686_v45, %s4397_s20 }
 0x38f   : > { %v1310_v21 = vpop.xlane.xlu1 %1309 }
 0x390   : > { %4312 = vrcp.f32 %v1310_v21 }
 0x397   : > { %v1313_v22 = vpop.xlane.xlu1 %1312 }
 0x398   : > { %4314 = vrcp.f32 %v1313_v22 }
 0x39b   : > { %v1417_v31 = vpop.permute.xlu1 %1416 }
 0x39d   : > { %v4313_v23 = vpop.eup %4312 }
 0x39e   : > { %v1316_v24 = vmul.f32 %v4313_v23, %v4309_v4 }
 0x39f   : > { %v1469_v33 = vpop.permute.xlu1 %1468 }
 0x3a0   : > { %v1318_v26 = vpack.c.bf16 %v1316_v24, %v1316_v24 }
 0x3a2   : > { %3984 = vmatmul.mubr.msk.bf16.vlgmr.msra.gmra.mxu0 %vm1201_vm3, %v1318_v26 }
 0x3a3   : > { %3994 = vmatpush3.bf16.xpose.msra.mxu0 %v1425_v27  ;;  %3995 = vmatprep.mubr.msk.bf16.mxu0 %vm4396_vm1, %v4395_v15 }
 0x3a4   : > { %4005 = vmatprep.subr.bf16.mxu0 %v4395_v15 }
 0x3a5   : > { %v4315_v28 = vpop.eup %4314 }
 0x3a6   : > { %v1317_v29 = vmul.f32 %v4315_v28, %v4311_v6 }
 0x3a8   : > { %v1319_v30 = vpack.c.bf16 %v1317_v29, %v1317_v29 }
 0x3aa   : > { %3990 = vmatmul.mubr.msk.bf16.vlgmr.msra.gmra.mxu1 %vm1201_vm3, %v1319_v30  ;;  %3996 = vmatmul.mubr.msk.bf16.vlgmr.msra.gmra.mxu0 %vm1201_vm3, %v1417_v31 }
 0x3ab   : > { %4000 = vmatpush3.bf16.xpose.msra.mxu1 %v1477_v32  ;;  %4001 = vmatprep.mubr.msk.bf16.mxu1 %vm4396_vm1, %v4395_v15 }
 0x3ac   : > { %4011 = vmatprep.subr.bf16.mxu1 %v4395_v15  ;;  %4007 = vmatprep.mubr.msk.bf16.mxu0 %vm4396_vm1, %v4395_v15 }
 0x3b2   : > { %4002 = vmatmul.mubr.msk.bf16.vlgmr.msra.gmra.mxu1 %vm1201_vm3, %v1469_v33 }
 0x3b3   : > { %4013 = vmatprep.mubr.msk.bf16.mxu1 %vm4396_vm1, %v4395_v15 }
 0x462   : > { %v4744_v35 = vpop.f32.mrf.mxu0 }
 0x464   : > { %v3985_v36 = vpop.f32.mrf.mxu0 }
 0x466   : > { %v1366_v37 = vpop.f32.mrf.mxu0 }
 0x468   : > { %v3986_v38 = vpop.f32.mrf.mxu0 }
 0x46a   : > { %v4746_v39 = vpop.f32.mrf.mxu1  ;;  %v1461_v40 = vpop.f32.mrf.mxu0 }
 0x46b   : > { %v1519_v43 = vmul.f32 0.35355338, %v1461_v40 }
 0x46c   : > { %v3991_v44 = vpop.f32.mrf.mxu1  ;;  %v3997_v46 = vpop.f32.mrf.mxu0 }
 0x46d   : > { %v1521_v47 = vsel %vm1201_vm3, %v1519_v43, -inf }
 0x46e   : > { %1522 = vmax.xlane.f32.xlu0 %v1521_v47  ;;  %v1412_v48 = vpop.f32.mrf.mxu1  ;;  %v1464_v49 = vpop.f32.mrf.mxu0 }
 0x470   : > { %v3992_v50 = vpop.f32.mrf.mxu1  ;;  %v3998_v51 = vpop.f32.mrf.mxu0 }
 0x472   : > { %v1513_v52 = vpop.f32.mrf.mxu1 }
 0x473   : > { %v1520_v53 = vmul.f32 0.35355338, %v1513_v52 }
 0x474   : > { %v4003_v54 = vpop.f32.mrf.mxu1 }
 0x475   : > { %v1524_v55 = vsel %vm1201_vm3, %v1520_v53, -inf }
 0x476   : > { %1525 = vmax.xlane.f32.xlu1 %v1524_v55  ;;  %v1516_v56 = vpop.f32.mrf.mxu1 }
 0x478   : > { %v4004_v57 = vpop.f32.mrf.mxu1 }
 0x487   : > { %1595 = vrot.lane.b32.xlu1 %v4716_v17, %s4397_s20 }
 0x48b   : > { %1645 = vrot.lane.b32.xlu1 %v4663_v34, %s4398_s0 }
 0x48f   : > { %1695 = vrot.lane.b32.xlu1 %v4672_v41, %s4398_s0 }
 0x493   : > { %1693 = vrot.lane.b32.xlu1 %v4686_v45, %s4398_s0 }
 0x4f7   : > { %v1523_v58 = vpop.xlane.xlu0 %1522 }
 0x4f8   : > { %v1527_v59 = vsub.f32 %v1519_v43, %v1523_v58 }
 0x4fa   : > { %v1529_v60 = vmul.f32 1.442695, %v1527_v59 }
 0x4fc   : > { %4316 = vpow2.f32 %v1529_v60 }
 0x4ff   : > { %v1526_v61 = vpop.xlane.xlu1 %1525 }
 0x500   : > { %v1528_v62 = vsub.f32 %v1520_v53, %v1526_v61 }
 0x502   : > { %v1531_v63 = vmul.f32 1.442695, %v1528_v62 }
 0x503   : > { %v1596_v0 = vpop.permute.xlu1 %1595 }
 0x504   : > { %4318 = vpow2.f32 %v1531_v63  ;;  %v1601_v1 = vsel %vm1325_vm4, %v1596_v0, 0 }
 0x505   : > { %4012 = vmatpush3.bf16.msra.mxu1 %v1601_v1 }
 0x506   : > { %4023 = vmatprep.subr.bf16.mxu1 %v4395_v15 }
 0x507   : > { %v1646_v12 = vpop.permute.xlu1 %1645 }
 0x508   : > { %v1651_v14 = vsel %vm1201_vm3, %v1646_v12, 0 }
 0x509   : > { %v4317_v2 = vpop.eup %4316 }
 0x50a   : > { %v1533_v3 = vsel %vm1201_vm3, %v4317_v2, 0.0 }
 0x50b   : > { %1534 = vadd.xlane.f32.xlu0 %v1533_v3  ;;  %v1696_v20 = vpop.permute.xlu1 %1695 }
 0x50c   : > { %v1701_v23 = vsel %vm1201_vm3, %v1696_v20, 0 }
 0x50f   : > { %v1694_v24 = vpop.permute.xlu1 %1693 }
 0x511   : > { %v4319_v4 = vpop.eup %4318 }
 0x512   : > { %v1536_v5 = vsel %vm1201_vm3, %v4319_v4, 0.0 }
 0x513   : > { %1537 = vadd.xlane.f32.xlu0 %v1536_v5 }
 0x529   : > { %1546 = vrot.lane.b32.xlu0 %v4714_v16, %s4397_s20  ;;  %s4408_s20 = smov 24  }
 0x52d   : > { %1643 = vrot.lane.b32.xlu0 %v4677_v42, %s4398_s0 }
 0x594   : > { %v1535_v6 = vpop.xlane.xlu0 %1534 }
 0x595   : > { %4320 = vrcp.f32 %v1535_v6 }
 0x59c   : > { %v1538_v7 = vpop.xlane.xlu0 %1537 }
 0x59d   : > { %4322 = vrcp.f32 %v1538_v7 }
 0x5a0   : > { %v1547_v8 = vpop.permute.xlu0 %1546 }
 0x5a1   : > { %v1552_v9 = vsel %vm1325_vm4, %v1547_v8, 0 }
 0x5a2   : > { %v4321_v10 = vpop.eup %4320  ;;  %4006 = vmatpush3.bf16.msra.mxu0 %v1552_v9 }
 0x5a3   : > { %4017 = vmatprep.subr.bf16.mxu0 %v4395_v15  ;;  %v1541_v11 = vmul.f32 %v4321_v10, %v4317_v2 }
 0x5a4   : > { %v1644_v22 = vpop.permute.xlu0 %1643 }
 0x5a5   : > { %v1543_v13 = vpack.c.bf16 %v1541_v11, %v1541_v11 }
 0x5a7   : > { %4008 = vmatmul.mubr.msk.bf16.vlgmr.msra.gmra.mxu0 %vm1201_vm3, %v1543_v13 }
 0x5a8   : > { %4018 = vmatpush3.bf16.xpose.msra.mxu0 %v1651_v14  ;;  %4019 = vmatprep.mubr.msk.bf16.mxu0 %vm4396_vm1, %v4395_v15 }
 0x5a9   : > { %4029 = vmatprep.subr.bf16.mxu0 %v4395_v15 }
 0x5aa   : > { %v4323_v18 = vpop.eup %4322 }
 0x5ab   : > { %v1542_v19 = vmul.f32 %v4323_v18, %v4319_v4 }
 0x5ad   : > { %v1544_v21 = vpack.c.bf16 %v1542_v19, %v1542_v19 }
 0x5af   : > { %4014 = vmatmul.mubr.msk.bf16.vlgmr.msra.gmra.mxu1 %vm1201_vm3, %v1544_v21  ;;  %4020 = vmatmul.mubr.msk.bf16.vlgmr.msra.gmra.mxu0 %vm1201_vm3, %v1644_v22 }
 0x5b0   : > { %4024 = vmatpush3.bf16.xpose.msra.mxu1 %v1701_v23  ;;  %4025 = vmatprep.mubr.msk.bf16.mxu1 %vm4396_vm1, %v4395_v15 }
 0x5b1   : > { %4035 = vmatprep.subr.bf16.mxu1 %v4395_v15  ;;  %4031 = vmatprep.mubr.msk.bf16.mxu0 %vm4396_vm1, %v4395_v15 }
 0x5b7   : > { %4026 = vmatmul.mubr.msk.bf16.vlgmr.msra.gmra.mxu1 %vm1201_vm3, %v1694_v24 }
 0x5b8   : > { %4037 = vmatprep.mubr.msk.bf16.mxu1 %vm4396_vm1, %v4395_v15 }
 0x667   : > { %v4784_v25 = vpop.f32.mrf.mxu0 }
 0x669   : > { %v4009_v26 = vpop.f32.mrf.mxu0 }
 0x66b   : > { %v1591_v27 = vpop.f32.mrf.mxu0 }
 0x66d   : > { %v4010_v28 = vpop.f32.mrf.mxu0 }
 0x66f   : > { %v4786_v29 = vpop.f32.mrf.mxu1  ;;  %v1687_v30 = vpop.f32.mrf.mxu0 }
 0x670   : > { %v4245_v31 = vpack.i.bf16 %v4786_v29, %v4784_v25  ;;  %v1743_v32 = vmul.f32 0.35355338, %v1687_v30 }
 0x671   : > { %v4015_v33 = vpop.f32.mrf.mxu1  ;;  %v4021_v36 = vpop.f32.mrf.mxu0 }
 0x672   : > { %v1745_v37 = vsel %vm1201_vm3, %v1743_v32, -inf }
 0x673   : > { %1746 = vmax.xlane.f32.xlu0 %v1745_v37  ;;  %v1640_v38 = vpop.f32.mrf.mxu1  ;;  %v1690_v40 = vpop.f32.mrf.mxu0 }
 0x675   : > { %v4016_v43 = vpop.f32.mrf.mxu1  ;;  %v4022_v44 = vpop.f32.mrf.mxu0 }
 0x677   : > { %v1737_v46 = vpop.f32.mrf.mxu1 }
 0x678   : > { %v1744_v47 = vmul.f32 0.35355338, %v1737_v46 }
 0x679   : > { %v4027_v48 = vpop.f32.mrf.mxu1 }
 0x67a   : > { %v1748_v49 = vsel %vm1201_vm3, %v1744_v47, -inf }
 0x67b   : > { %1749 = vmax.xlane.f32.xlu1 %v1748_v49  ;;  %v1740_v50 = vpop.f32.mrf.mxu1 }
 0x67d   : > { %v4028_v51 = vpop.f32.mrf.mxu1 }
 0x68c   : > { %1817 = vrot.lane.b32.xlu1 %v4716_v17, %s4398_s0 }
 0x690   : > { %1867 = vrot.lane.b32.xlu1 %v4663_v34, %s4399_s24 }
 0x694   : > { %1917 = vrot.lane.b32.xlu1 %v4672_v41, %s4399_s24 }
 0x698   : > { %1915 = vrot.lane.b32.xlu1 %v4686_v45, %s4399_s24 }
 0x6fc   : > { %v1747_v52 = vpop.xlane.xlu0 %1746 }
 0x6fd   : > { %v1751_v53 = vsub.f32 %v1743_v32, %v1747_v52 }
 0x6ff   : > { %v1753_v54 = vmul.f32 1.442695, %v1751_v53 }
 0x701   : > { %4324 = vpow2.f32 %v1753_v54 }
 0x704   : > { %v1750_v55 = vpop.xlane.xlu1 %1749 }
 0x705   : > { %v1752_v56 = vsub.f32 %v1744_v47, %v1750_v55 }
 0x707   : > { %v1755_v57 = vmul.f32 1.442695, %v1752_v56 }
 0x708   : > { %v1818_v58 = vpop.permute.xlu1 %1817 }
 0x709   : > { %4326 = vpow2.f32 %v1755_v57  ;;  %v1823_v59 = vsel %vm1325_vm4, %v1818_v58, 0 }
 0x70a   : > { %4036 = vmatpush3.bf16.msra.mxu1 %v1823_v59 }
 0x70b   : > { %4047 = vmatprep.subr.bf16.mxu1 %v4395_v15 }
 0x70c   : > { %v1868_v6 = vpop.permute.xlu1 %1867 }
 0x70d   : > { %v1873_v8 = vsel %vm1201_vm3, %v1868_v6, 0 }
 0x70e   : > { %v4325_v60 = vpop.eup %4324 }
 0x70f   : > { %v1757_v61 = vsel %vm1201_vm3, %v4325_v60, 0.0 }
 0x710   : > { %1758 = vadd.xlane.f32.xlu0 %v1757_v61  ;;  %v1918_v11 = vpop.permute.xlu1 %1917 }
 0x711   : > { %v1923_v14 = vsel %vm1201_vm3, %v1918_v11, 0 }
 0x714   : > { %v1916_v18 = vpop.permute.xlu1 %1915 }
 0x716   : > { %v4327_v62 = vpop.eup %4326 }
 0x717   : > { %v1760_v63 = vsel %vm1201_vm3, %v4327_v62, 0.0 }
 0x718   : > { %1761 = vadd.xlane.f32.xlu0 %v1760_v63 }
 0x72e   : > { %1769 = vrot.lane.b32.xlu0 %v4714_v16, %s4398_s0  ;;  %s5197_s0 = scalar_lea.vmem %s5146_s11, %s4540_s29 }
 0x732   : > { %1865 = vrot.lane.b32.xlu0 %v4677_v42, %s4399_s24 }
 0x799   : > { %v1759_v0 = vpop.xlane.xlu0 %1758 }
 0x79a   : > { %4328 = vrcp.f32 %v1759_v0 }
 0x7a1   : > { %v1762_v1 = vpop.xlane.xlu0 %1761 }
 0x7a2   : > { %4330 = vrcp.f32 %v1762_v1 }
 0x7a5   : > { %v1770_v2 = vpop.permute.xlu0 %1769 }
 0x7a6   : > { %v1775_v3 = vsel %vm1325_vm4, %v1770_v2, 0 }
 0x7a7   : > { %v4329_v4 = vpop.eup %4328  ;;  %4030 = vmatpush3.bf16.msra.mxu0 %v1775_v3 }
 0x7a8   : > { %4041 = vmatprep.subr.bf16.mxu0 %v4395_v15  ;;  %v1765_v5 = vmul.f32 %v4329_v4, %v4325_v60 }
 0x7a9   : > { %v1866_v13 = vpop.permute.xlu0 %1865 }
 0x7aa   : > { %v1767_v7 = vpack.c.bf16 %v1765_v5, %v1765_v5 }
 0x7ac   : > { %4032 = vmatmul.mubr.msk.bf16.vlgmr.msra.gmra.mxu0 %vm1201_vm3, %v1767_v7 }
 0x7ad   : > { %4042 = vmatpush3.bf16.xpose.msra.mxu0 %v1873_v8  ;;  %4043 = vmatprep.mubr.msk.bf16.mxu0 %vm4396_vm1, %v4395_v15 }
 0x7ae   : > { %4053 = vmatprep.subr.bf16.mxu0 %v4395_v15 }
 0x7af   : > { %v4331_v9 = vpop.eup %4330 }
 0x7b0   : > { %v1766_v10 = vmul.f32 %v4331_v9, %v4327_v62 }
 0x7b2   : > { %v1768_v12 = vpack.c.bf16 %v1766_v10, %v1766_v10 }
 0x7b4   : > { %4038 = vmatmul.mubr.msk.bf16.vlgmr.msra.gmra.mxu1 %vm1201_vm3, %v1768_v12  ;;  %4044 = vmatmul.mubr.msk.bf16.vlgmr.msra.gmra.mxu0 %vm1201_vm3, %v1866_v13 }
 0x7b5   : > { %4048 = vmatpush3.bf16.xpose.msra.mxu1 %v1923_v14  ;;  %4049 = vmatprep.mubr.msk.bf16.mxu1 %vm4396_vm1, %v4395_v15 }
 0x7b6   : > { %4059 = vmatprep.subr.bf16.mxu1 %v4395_v15  ;;  %4055 = vmatprep.mubr.msk.bf16.mxu0 %vm4396_vm1, %v4395_v15 }
 0x7bc   : > { %4050 = vmatmul.mubr.msk.bf16.vlgmr.msra.gmra.mxu1 %vm1201_vm3, %v1916_v18 }
 0x7bd   : > { %4061 = vmatprep.mubr.msk.bf16.mxu1 %vm4396_vm1, %v4395_v15 }
 0x86c   : > { %v4826_v19 = vpop.f32.mrf.mxu0 }
 0x86e   : > { %v4033_v20 = vpop.f32.mrf.mxu0 }
 0x870   : > { %v1814_v21 = vpop.f32.mrf.mxu0 }
 0x872   : > { %v4034_v22 = vpop.f32.mrf.mxu0 }
 0x874   : > { %v4828_v23 = vpop.f32.mrf.mxu1  ;;  %v1909_v24 = vpop.f32.mrf.mxu0 }
 0x875   : > { %v4250_v26 = vpack.i.bf16 %v4828_v23, %v4826_v19  ;;  %v1965_v27 = vmul.f32 0.35355338, %v1909_v24 }
 0x876   : > { %v4039_v28 = vpop.f32.mrf.mxu1  ;;  %v4045_v30 = vpop.f32.mrf.mxu0 }
 0x877   : > { %v1967_v32 = vsel %vm1201_vm3, %v1965_v27, -inf }
 0x878   : > { %1968 = vmax.xlane.f32.xlu0 %v1967_v32  ;;  %v1862_v33 = vpop.f32.mrf.mxu1  ;;  %v1912_v36 = vpop.f32.mrf.mxu0 }
 0x87a   : > { %v4040_v37 = vpop.f32.mrf.mxu1  ;;  %v4046_v38 = vpop.f32.mrf.mxu0 }
 0x87c   : > { %v1959_v40 = vpop.f32.mrf.mxu1 }
 0x87d   : > { %v1966_v43 = vmul.f32 0.35355338, %v1959_v40 }
 0x87e   : > { %v4051_v44 = vpop.f32.mrf.mxu1 }
 0x87f   : > { %v1970_v46 = vsel %vm1201_vm3, %v1966_v43, -inf }
 0x880   : > { %1971 = vmax.xlane.f32.xlu1 %v1970_v46  ;;  %v1962_v47 = vpop.f32.mrf.mxu1 }
 0x882   : > { %v4052_v48 = vpop.f32.mrf.mxu1 }
 0x891   : > { %2039 = vrot.lane.b32.xlu1 %v4716_v17, %s4399_s24 }
 0x895   : > { %2089 = vrot.lane.b32.xlu1 %v4663_v34, %s4400_s25 }
 0x899   : > { %2139 = vrot.lane.b32.xlu1 %v4672_v41, %s4400_s25 }
 0x89d   : > { %2137 = vrot.lane.b32.xlu1 %v4686_v45, %s4400_s25 }
 0x901   : > { %v1969_v49 = vpop.xlane.xlu0 %1968 }
 0x902   : > { %v1973_v50 = vsub.f32 %v1965_v27, %v1969_v49 }
 0x904   : > { %v1975_v51 = vmul.f32 1.442695, %v1973_v50 }
 0x906   : > { %4332 = vpow2.f32 %v1975_v51 }
 0x909   : > { %v1972_v52 = vpop.xlane.xlu1 %1971 }
 0x90a   : > { %v1974_v53 = vsub.f32 %v1966_v43, %v1972_v52 }
 0x90c   : > { %v1977_v54 = vmul.f32 1.442695, %v1974_v53 }
 0x90d   : > { %v2040_v55 = vpop.permute.xlu1 %2039 }
 0x90e   : > { %4334 = vpow2.f32 %v1977_v54  ;;  %v2045_v56 = vsel %vm1325_vm4, %v2040_v55, 0 }
 0x90f   : > { %4060 = vmatpush3.bf16.msra.mxu1 %v2045_v56 }
 0x910   : > { %4071 = vmatprep.subr.bf16.mxu1 %v4395_v15 }
 0x911   : > { %v2090_v3 = vpop.permute.xlu1 %2089 }
 0x912   : > { %v2095_v5 = vsel %vm1201_vm3, %v2090_v3, 0 }
 0x913   : > { %v4333_v57 = vpop.eup %4332 }
 0x914   : > { %v1979_v58 = vsel %vm1201_vm3, %v4333_v57, 0.0 }
 0x915   : > { %1980 = vadd.xlane.f32.xlu0 %v1979_v58  ;;  %v2140_v8 = vpop.permute.xlu1 %2139 }
 0x916   : > { %v2145_v11 = vsel %vm1201_vm3, %v2140_v8, 0 }
 0x919   : > { %v2138_v12 = vpop.permute.xlu1 %2137 }
 0x91b   : > { %v4335_v59 = vpop.eup %4334 }
 0x91c   : > { %v1982_v60 = vsel %vm1201_vm3, %v4335_v59, 0.0 }
 0x91d   : > { %1983 = vadd.xlane.f32.xlu0 %v1982_v60 }
 0x933   : > { %1991 = vrot.lane.b32.xlu0 %v4714_v16, %s4399_s24 }
 0x937   : > { %2087 = vrot.lane.b32.xlu0 %v4677_v42, %s4400_s25 }
 0x99e   : > { %v1981_v61 = vpop.xlane.xlu0 %1980 }
 0x99f   : > { %4336 = vrcp.f32 %v1981_v61 }
 0x9a6   : > { %v1984_v62 = vpop.xlane.xlu0 %1983 }
 0x9a7   : > { %4338 = vrcp.f32 %v1984_v62 }
 0x9aa   : > { %v1992_v63 = vpop.permute.xlu0 %1991 }
 0x9ab   : > { %v1997_v0 = vsel %vm1325_vm4, %v1992_v63, 0 }
 0x9ac   : > { %v4337_v1 = vpop.eup %4336  ;;  %4054 = vmatpush3.bf16.msra.mxu0 %v1997_v0 }
 0x9ad   : > { %4065 = vmatprep.subr.bf16.mxu0 %v4395_v15  ;;  %v1987_v2 = vmul.f32 %v4337_v1, %v4333_v57 }
 0x9ae   : > { %v2088_v10 = vpop.permute.xlu0 %2087 }
 0x9af   : > { %v1989_v4 = vpack.c.bf16 %v1987_v2, %v1987_v2 }
 0x9b1   : > { %4056 = vmatmul.mubr.msk.bf16.vlgmr.msra.gmra.mxu0 %vm1201_vm3, %v1989_v4 }
 0x9b2   : > { %4066 = vmatpush3.bf16.xpose.msra.mxu0 %v2095_v5  ;;  %4067 = vmatprep.mubr.msk.bf16.mxu0 %vm4396_vm1, %v4395_v15 }
 0x9b3   : > { %4077 = vmatprep.subr.bf16.mxu0 %v4395_v15 }
 0x9b4   : > { %v4339_v6 = vpop.eup %4338 }
 0x9b5   : > { %v1988_v7 = vmul.f32 %v4339_v6, %v4335_v59 }
 0x9b7   : > { %v1990_v9 = vpack.c.bf16 %v1988_v7, %v1988_v7 }
 0x9b9   : > { %4062 = vmatmul.mubr.msk.bf16.vlgmr.msra.gmra.mxu1 %vm1201_vm3, %v1990_v9  ;;  %4068 = vmatmul.mubr.msk.bf16.vlgmr.msra.gmra.mxu0 %vm1201_vm3, %v2088_v10 }
 0x9ba   : > { %4072 = vmatpush3.bf16.xpose.msra.mxu1 %v2145_v11  ;;  %4073 = vmatprep.mubr.msk.bf16.mxu1 %vm4396_vm1, %v4395_v15 }
 0x9bb   : > { %4083 = vmatprep.subr.bf16.mxu1 %v4395_v15  ;;  %4079 = vmatprep.mubr.msk.bf16.mxu0 %vm4396_vm1, %v4395_v15 }
 0x9c1   : > { %4074 = vmatmul.mubr.msk.bf16.vlgmr.msra.gmra.mxu1 %vm1201_vm3, %v2138_v12 }
 0x9c2   : > { %4085 = vmatprep.mubr.msk.bf16.mxu1 %vm4396_vm1, %v4395_v15 }
 0xa71   : > { %v4868_v13 = vpop.f32.mrf.mxu0 }
 0xa73   : > { %v4057_v14 = vpop.f32.mrf.mxu0 }
 0xa75   : > { %v2036_v18 = vpop.f32.mrf.mxu0 }
 0xa77   : > { %v4058_v20 = vpop.f32.mrf.mxu0 }
 0xa79   : > { %v4870_v21 = vpop.f32.mrf.mxu1  ;;  %v2131_v22 = vpop.f32.mrf.mxu0 }
 0xa7a   : > { %v4255_v24 = vpack.i.bf16 %v4870_v21, %v4868_v13  ;;  %v2187_v27 = vmul.f32 0.35355338, %v2131_v22 }
 0xa7b   : > { %v4063_v28 = vpop.f32.mrf.mxu1  ;;  %v4069_v30 = vpop.f32.mrf.mxu0 }
 0xa7c   : > { %v2189_v32 = vsel %vm1201_vm3, %v2187_v27, -inf }
 0xa7d   : > { %2190 = vmax.xlane.f32.xlu0 %v2189_v32  ;;  %v2084_v33 = vpop.f32.mrf.mxu1  ;;  %v2134_v36 = vpop.f32.mrf.mxu0 }
 0xa7f   : > { %v4064_v37 = vpop.f32.mrf.mxu1  ;;  %v4070_v38 = vpop.f32.mrf.mxu0 }
 0xa81   : > { %v2181_v40 = vpop.f32.mrf.mxu1 }
 0xa82   : > { %v2188_v43 = vmul.f32 0.35355338, %v2181_v40 }
 0xa83   : > { %v4075_v44 = vpop.f32.mrf.mxu1 }
 0xa84   : > { %v2192_v46 = vsel %vm1201_vm3, %v2188_v43, -inf }
 0xa85   : > { %2193 = vmax.xlane.f32.xlu1 %v2192_v46  ;;  %v2184_v47 = vpop.f32.mrf.mxu1 }
 0xa87   : > { %v4076_v48 = vpop.f32.mrf.mxu1 }
 0xa96   : > { %2261 = vrot.lane.b32.xlu1 %v4716_v17, %s4400_s25 }
 0xa9a   : > { %2311 = vrot.lane.b32.xlu1 %v4663_v34, %s4401_s6 }
 0xa9e   : > { %2361 = vrot.lane.b32.xlu1 %v4672_v41, %s4401_s6 }
 0xaa2   : > { %2359 = vrot.lane.b32.xlu1 %v4686_v45, %s4401_s6 }
 0xb06   : > { %v2191_v49 = vpop.xlane.xlu0 %2190 }
 0xb07   : > { %v2195_v50 = vsub.f32 %v2187_v27, %v2191_v49 }
 0xb09   : > { %v2197_v51 = vmul.f32 1.442695, %v2195_v50 }
 0xb0b   : > { %4340 = vpow2.f32 %v2197_v51 }
 0xb0e   : > { %v2194_v52 = vpop.xlane.xlu1 %2193 }
 0xb0f   : > { %v2196_v53 = vsub.f32 %v2188_v43, %v2194_v52 }
 0xb11   : > { %v2199_v54 = vmul.f32 1.442695, %v2196_v53 }
 0xb12   : > { %v2262_v55 = vpop.permute.xlu1 %2261 }
 0xb13   : > { %4342 = vpow2.f32 %v2199_v54  ;;  %v2267_v56 = vsel %vm1325_vm4, %v2262_v55, 0 }
 0xb14   : > { %4084 = vmatpush3.bf16.msra.mxu1 %v2267_v56 }
 0xb15   : > { %4095 = vmatprep.subr.bf16.mxu1 %v4395_v15 }
 0xb16   : > { %v2312_v3 = vpop.permute.xlu1 %2311 }
 0xb17   : > { %v2317_v5 = vsel %vm1201_vm3, %v2312_v3, 0 }
 0xb18   : > { %v4341_v57 = vpop.eup %4340 }
 0xb19   : > { %v2201_v58 = vsel %vm1201_vm3, %v4341_v57, 0.0 }
 0xb1a   : > { %2202 = vadd.xlane.f32.xlu0 %v2201_v58  ;;  %v2362_v8 = vpop.permute.xlu1 %2361 }
 0xb1b   : > { %v2367_v11 = vsel %vm1201_vm3, %v2362_v8, 0 }
 0xb1e   : > { %v2360_v12 = vpop.permute.xlu1 %2359 }
 0xb20   : > { %v4343_v59 = vpop.eup %4342 }
 0xb21   : > { %v2204_v60 = vsel %vm1201_vm3, %v4343_v59, 0.0 }
 0xb22   : > { %2205 = vadd.xlane.f32.xlu0 %v2204_v60 }
 0xb38   : > { %2213 = vrot.lane.b32.xlu0 %v4714_v16, %s4400_s25  ;;  %s5198_s25 = scalar_lea.vmem %s5147_s12, %s4540_s29 }
 0xb3c   : > { %2309 = vrot.lane.b32.xlu0 %v4677_v42, %s4401_s6 }
 0xba3   : > { %v2203_v61 = vpop.xlane.xlu0 %2202 }
 0xba4   : > { %4344 = vrcp.f32 %v2203_v61 }
 0xbab   : > { %v2206_v62 = vpop.xlane.xlu0 %2205 }
 0xbac   : > { %4346 = vrcp.f32 %v2206_v62 }
 0xbaf   : > { %v2214_v63 = vpop.permute.xlu0 %2213 }
 0xbb0   : > { %v2219_v0 = vsel %vm1325_vm4, %v2214_v63, 0 }
 0xbb1   : > { %v4345_v1 = vpop.eup %4344  ;;  %4078 = vmatpush3.bf16.msra.mxu0 %v2219_v0 }
 0xbb2   : > { %4089 = vmatprep.subr.bf16.mxu0 %v4395_v15  ;;  %v2209_v2 = vmul.f32 %v4345_v1, %v4341_v57 }
 0xbb3   : > { %v2310_v10 = vpop.permute.xlu0 %2309 }
 0xbb4   : > { %v2211_v4 = vpack.c.bf16 %v2209_v2, %v2209_v2 }
 0xbb6   : > { %4080 = vmatmul.mubr.msk.bf16.vlgmr.msra.gmra.mxu0 %vm1201_vm3, %v2211_v4 }
 0xbb7   : > { %4090 = vmatpush3.bf16.xpose.msra.mxu0 %v2317_v5  ;;  %4091 = vmatprep.mubr.msk.bf16.mxu0 %vm4396_vm1, %v4395_v15 }
 0xbb8   : > { %4101 = vmatprep.subr.bf16.mxu0 %v4395_v15 }
 0xbb9   : > { %v4347_v6 = vpop.eup %4346 }
 0xbba   : > { %v2210_v7 = vmul.f32 %v4347_v6, %v4343_v59 }
 0xbbc   : > { %v2212_v9 = vpack.c.bf16 %v2210_v7, %v2210_v7 }
 0xbbe   : > { %4086 = vmatmul.mubr.msk.bf16.vlgmr.msra.gmra.mxu1 %vm1201_vm3, %v2212_v9  ;;  %4092 = vmatmul.mubr.msk.bf16.vlgmr.msra.gmra.mxu0 %vm1201_vm3, %v2310_v10 }
 0xbbf   : > { %4096 = vmatpush3.bf16.xpose.msra.mxu1 %v2367_v11  ;;  %4097 = vmatprep.mubr.msk.bf16.mxu1 %vm4396_vm1, %v4395_v15 }
 0xbc0   : > { %4107 = vmatprep.subr.bf16.mxu1 %v4395_v15  ;;  %4103 = vmatprep.mubr.msk.bf16.mxu0 %vm4396_vm1, %v4395_v15 }
 0xbc6   : > { %4098 = vmatmul.mubr.msk.bf16.vlgmr.msra.gmra.mxu1 %vm1201_vm3, %v2360_v12 }
 0xbc7   : > { %4109 = vmatprep.mubr.msk.bf16.mxu1 %vm4396_vm1, %v4395_v15 }
 0xc76   : > { %v4910_v14 = vpop.f32.mrf.mxu0 }
 0xc78   : > { %v4081_v18 = vpop.f32.mrf.mxu0 }
 0xc7a   : > { %v2258_v20 = vpop.f32.mrf.mxu0 }
 0xc7c   : > { %v4082_v22 = vpop.f32.mrf.mxu0 }
 0xc7e   : > { %v4912_v27 = vpop.f32.mrf.mxu1  ;;  %v2353_v28 = vpop.f32.mrf.mxu0 }
 0xc7f   : > { %v4260_v30 = vpack.i.bf16 %v4912_v27, %v4910_v14  ;;  %v2409_v32 = vmul.f32 0.35355338, %v2353_v28 }
 0xc80   : > { %v4087_v33 = vpop.f32.mrf.mxu1  ;;  %v4093_v36 = vpop.f32.mrf.mxu0 }
 0xc81   : > { %v2411_v37 = vsel %vm1201_vm3, %v2409_v32, -inf }
 0xc82   : > { %2412 = vmax.xlane.f32.xlu0 %v2411_v37  ;;  %v2306_v38 = vpop.f32.mrf.mxu1  ;;  %v2356_v40 = vpop.f32.mrf.mxu0 }
 0xc84   : > { %v4088_v43 = vpop.f32.mrf.mxu1  ;;  %v4094_v44 = vpop.f32.mrf.mxu0 }
 0xc86   : > { %v2403_v46 = vpop.f32.mrf.mxu1 }
 0xc87   : > { %v2410_v47 = vmul.f32 0.35355338, %v2403_v46 }
 0xc88   : > { %v4099_v48 = vpop.f32.mrf.mxu1 }
 0xc89   : > { %v2414_v49 = vsel %vm1201_vm3, %v2410_v47, -inf }
 0xc8a   : > { %2415 = vmax.xlane.f32.xlu1 %v2414_v49  ;;  %v2406_v50 = vpop.f32.mrf.mxu1 }
 0xc8c   : > { %v4100_v51 = vpop.f32.mrf.mxu1 }
 0xc9b   : > { %2483 = vrot.lane.b32.xlu1 %v4716_v17, %s4401_s6 }
 0xc9f   : > { %2533 = vrot.lane.b32.xlu1 %v4663_v34, %s4402_s10 }
 0xca3   : > { %2583 = vrot.lane.b32.xlu1 %v4672_v41, %s4402_s10 }
 0xca7   : > { %2581 = vrot.lane.b32.xlu1 %v4686_v45, %s4402_s10 }
 0xd0b   : > { %v2413_v52 = vpop.xlane.xlu0 %2412 }
 0xd0c   : > { %v2417_v53 = vsub.f32 %v2409_v32, %v2413_v52 }
 0xd0e   : > { %v2419_v54 = vmul.f32 1.442695, %v2417_v53 }
 0xd10   : > { %4348 = vpow2.f32 %v2419_v54 }
 0xd13   : > { %v2416_v55 = vpop.xlane.xlu1 %2415 }
 0xd14   : > { %v2418_v56 = vsub.f32 %v2410_v47, %v2416_v55 }
 0xd16   : > { %v2421_v57 = vmul.f32 1.442695, %v2418_v56 }
 0xd17   : > { %v2484_v58 = vpop.permute.xlu1 %2483 }
 0xd18   : > { %4350 = vpow2.f32 %v2421_v57  ;;  %v2489_v59 = vsel %vm1325_vm4, %v2484_v58, 0 }
 0xd19   : > { %4108 = vmatpush3.bf16.msra.mxu1 %v2489_v59 }
 0xd1a   : > { %4119 = vmatprep.subr.bf16.mxu1 %v4395_v15 }
 0xd1b   : > { %v2534_v6 = vpop.permute.xlu1 %2533 }
 0xd1c   : > { %v2539_v8 = vsel %vm1201_vm3, %v2534_v6, 0 }
 0xd1d   : > { %v4349_v60 = vpop.eup %4348 }
 0xd1e   : > { %v2423_v61 = vsel %vm1201_vm3, %v4349_v60, 0.0 }
 0xd1f   : > { %2424 = vadd.xlane.f32.xlu0 %v2423_v61  ;;  %v2584_v11 = vpop.permute.xlu1 %2583 }
 0xd20   : > { %v2589_v20 = vsel %vm1201_vm3, %v2584_v11, 0 }
 0xd23   : > { %v2582_v22 = vpop.permute.xlu1 %2581 }
 0xd25   : > { %v4351_v62 = vpop.eup %4350 }
 0xd26   : > { %v2426_v63 = vsel %vm1201_vm3, %v4351_v62, 0.0 }
 0xd27   : > { %2427 = vadd.xlane.f32.xlu0 %v2426_v63 }
 0xd3d   : > { %2435 = vrot.lane.b32.xlu0 %v4714_v16, %s4401_s6 }
 0xd41   : > { %2531 = vrot.lane.b32.xlu0 %v4677_v42, %s4402_s10 }
 0xda8   : > { %v2425_v0 = vpop.xlane.xlu0 %2424 }
 0xda9   : > { %4352 = vrcp.f32 %v2425_v0 }
 0xdb0   : > { %v2428_v1 = vpop.xlane.xlu0 %2427 }
 0xdb1   : > { %4354 = vrcp.f32 %v2428_v1 }
 0xdb4   : > { %v2436_v2 = vpop.permute.xlu0 %2435 }
 0xdb5   : > { %v2441_v3 = vsel %vm1325_vm4, %v2436_v2, 0 }
 0xdb6   : > { %v4353_v4 = vpop.eup %4352  ;;  %4102 = vmatpush3.bf16.msra.mxu0 %v2441_v3 }
 0xdb7   : > { %4113 = vmatprep.subr.bf16.mxu0 %v4395_v15  ;;  %v2431_v5 = vmul.f32 %v4353_v4, %v4349_v60 }
 0xdb8   : > { %v2532_v18 = vpop.permute.xlu0 %2531 }
 0xdb9   : > { %v2433_v7 = vpack.c.bf16 %v2431_v5, %v2431_v5 }
 0xdbb   : > { %4104 = vmatmul.mubr.msk.bf16.vlgmr.msra.gmra.mxu0 %vm1201_vm3, %v2433_v7 }
 0xdbc   : > { %4114 = vmatpush3.bf16.xpose.msra.mxu0 %v2539_v8  ;;  %4115 = vmatprep.mubr.msk.bf16.mxu0 %vm4396_vm1, %v4395_v15 }
 0xdbd   : > { %4125 = vmatprep.subr.bf16.mxu0 %v4395_v15 }
 0xdbe   : > { %v4355_v9 = vpop.eup %4354 }
 0xdbf   : > { %v2432_v10 = vmul.f32 %v4355_v9, %v4351_v62 }
 0xdc1   : > { %v2434_v12 = vpack.c.bf16 %v2432_v10, %v2432_v10 }
 0xdc3   : > { %4110 = vmatmul.mubr.msk.bf16.vlgmr.msra.gmra.mxu1 %vm1201_vm3, %v2434_v12  ;;  %4116 = vmatmul.mubr.msk.bf16.vlgmr.msra.gmra.mxu0 %vm1201_vm3, %v2532_v18 }
 0xdc4   : > { %4120 = vmatpush3.bf16.xpose.msra.mxu1 %v2589_v20  ;;  %4121 = vmatprep.mubr.msk.bf16.mxu1 %vm4396_vm1, %v4395_v15 }
 0xdc5   : > { %4131 = vmatprep.subr.bf16.mxu1 %v4395_v15  ;;  %4127 = vmatprep.mubr.msk.bf16.mxu0 %vm4396_vm1, %v4395_v15 }
 0xdcb   : > { %4122 = vmatmul.mubr.msk.bf16.vlgmr.msra.gmra.mxu1 %vm1201_vm3, %v2582_v22 }
 0xdcc   : > { %4133 = vmatprep.mubr.msk.bf16.mxu1 %vm4396_vm1, %v4395_v15 }
 0xe7b   : > { %v4952_v28 = vpop.f32.mrf.mxu0 }
 0xe7d   : > { %v4105_v32 = vpop.f32.mrf.mxu0 }
 0xe7f   : > { %v2480_v33 = vpop.f32.mrf.mxu0 }
 0xe81   : > { %v4106_v36 = vpop.f32.mrf.mxu0 }
 0xe83   : > { %v4954_v37 = vpop.f32.mrf.mxu1  ;;  %v2575_v38 = vpop.f32.mrf.mxu0 }
 0xe84   : > { %v4265_v40 = vpack.i.bf16 %v4954_v37, %v4952_v28  ;;  %v2631_v43 = vmul.f32 0.35355338, %v2575_v38  ;;  %v4292_v37 = vld [vmem:[%s4573_s1 + $0x18] sm:$0xff]  }
 0xe85   : > { %v4111_v44 = vpop.f32.mrf.mxu1  ;;  %v4117_v46 = vpop.f32.mrf.mxu0 }
 0xe86   : > { %v2633_v47 = vsel %vm1201_vm3, %v2631_v43, -inf }
 0xe87   : > { %2634 = vmax.xlane.f32.xlu0 %v2633_v47  ;;  %v2528_v48 = vpop.f32.mrf.mxu1  ;;  %v2578_v49 = vpop.f32.mrf.mxu0 }
 0xe89   : > { %v4112_v50 = vpop.f32.mrf.mxu1  ;;  %v4118_v51 = vpop.f32.mrf.mxu0 }
 0xe8b   : > { %v2625_v52 = vpop.f32.mrf.mxu1 }
 0xe8c   : > { %v2632_v53 = vmul.f32 0.35355338, %v2625_v52 }
 0xe8d   : > { %v4123_v54 = vpop.f32.mrf.mxu1 }
 0xe8e   : > { %v2636_v55 = vsel %vm1201_vm3, %v2632_v53, -inf }
 0xe8f   : > { %2637 = vmax.xlane.f32.xlu1 %v2636_v55  ;;  %v2628_v56 = vpop.f32.mrf.mxu1 }
 0xe91   : > { %v4124_v57 = vpop.f32.mrf.mxu1 }
 0xea0   : > { %2705 = vrot.lane.b32.xlu1 %v4716_v17, %s4402_s10 }
 0xea4   : > { %2755 = vrot.lane.b32.xlu1 %v4663_v34, %s4403_s3 }
 0xea8   : > { %2805 = vrot.lane.b32.xlu1 %v4672_v41, %s4403_s3 }
 0xeac   : > { %2803 = vrot.lane.b32.xlu1 %v4686_v45, %s4403_s3 }
 0xf10   : > { %v2635_v58 = vpop.xlane.xlu0 %2634 }
 0xf11   : > { %v2639_v59 = vsub.f32 %v2631_v43, %v2635_v58 }
 0xf13   : > { %v2641_v60 = vmul.f32 1.442695, %v2639_v59 }
 0xf15   : > { %4356 = vpow2.f32 %v2641_v60 }
 0xf18   : > { %v2638_v61 = vpop.xlane.xlu1 %2637 }
 0xf19   : > { %v2640_v62 = vsub.f32 %v2632_v53, %v2638_v61 }
 0xf1b   : > { %v2643_v63 = vmul.f32 1.442695, %v2640_v62 }
 0xf1c   : > { %v2706_v0 = vpop.permute.xlu1 %2705 }
 0xf1d   : > { %4358 = vpow2.f32 %v2643_v63  ;;  %v2711_v1 = vsel %vm1325_vm4, %v2706_v0, 0 }
 0xf1e   : > { %4132 = vmatpush3.bf16.msra.mxu1 %v2711_v1 }
 0xf1f   : > { %4143 = vmatprep.subr.bf16.mxu1 %v4395_v15 }
 0xf20   : > { %v2756_v9 = vpop.permute.xlu1 %2755 }
 0xf21   : > { %v2761_v11 = vsel %vm1201_vm3, %v2756_v9, 0 }
 0xf22   : > { %v4357_v34 = vpop.eup %4356 }
 0xf23   : > { %v2645_v41 = vsel %vm1201_vm3, %v4357_v34, 0.0 }
 0xf24   : > { %2646 = vadd.xlane.f32.xlu0 %v2645_v41  ;;  %v2806_v18 = vpop.permute.xlu1 %2805 }
 0xf25   : > { %v2811_v32 = vsel %vm1201_vm3, %v2806_v18, 0 }
 0xf28   : > { %v2804_v33 = vpop.permute.xlu1 %2803 }
 0xf2a   : > { %v4359_v2 = vpop.eup %4358 }
 0xf2b   : > { %v2648_v45 = vsel %vm1201_vm3, %v4359_v2, 0.0 }
 0xf2c   : > { %2649 = vadd.xlane.f32.xlu0 %v2648_v45 }
 0xf42   : > { %2657 = vrot.lane.b32.xlu0 %v4714_v16, %s4402_s10 }
 0xf46   : > { %2753 = vrot.lane.b32.xlu0 %v4677_v42, %s4403_s3 }
 0xfad   : > { %v2647_v3 = vpop.xlane.xlu0 %2646 }
 0xfae   : > { %4360 = vrcp.f32 %v2647_v3  ;;  %v4294_v3 = vld [vmem:[%s4573_s1 + $0x8] sm:$0xff]  }
 0xfb5   : > { %v2650_v4 = vpop.xlane.xlu0 %2649 }
 0xfb6   : > { %4362 = vrcp.f32 %v2650_v4  ;;  %v4295_v4 = vld [vmem:[%s4573_s1] sm:$0xff]  }
 0xfb9   : > { %v2658_v5 = vpop.permute.xlu0 %2657 }
 0xfba   : > { %v2663_v6 = vsel %vm1325_vm4, %v2658_v5, 0 }
 0xfbb   : > { %v4361_v7 = vpop.eup %4360  ;;  %4126 = vmatpush3.bf16.msra.mxu0 %v2663_v6 }
 0xfbc   : > { %4137 = vmatprep.subr.bf16.mxu0 %v4395_v15  ;;  %v2653_v8 = vmul.f32 %v4361_v7, %v4357_v34 }
 0xfbd   : > { %v2754_v22 = vpop.permute.xlu0 %2753 }
 0xfbe   : > { %v2655_v10 = vpack.c.bf16 %v2653_v8, %v2653_v8 }
 0xfc0   : > { %4128 = vmatmul.mubr.msk.bf16.vlgmr.msra.gmra.mxu0 %vm1201_vm3, %v2655_v10 }
 0xfc1   : > { %4138 = vmatpush3.bf16.xpose.msra.mxu0 %v2761_v11  ;;  %4139 = vmatprep.mubr.msk.bf16.mxu0 %vm4396_vm1, %v4395_v15 }
 0xfc2   : > { %4149 = vmatprep.subr.bf16.mxu0 %v4395_v15 }
 0xfc3   : > { %v4363_v42 = vpop.eup %4362 }
 0xfc4   : > { %v2654_v12 = vmul.f32 %v4363_v42, %v4359_v2 }
 0xfc6   : > { %v2656_v20 = vpack.c.bf16 %v2654_v12, %v2654_v12 }
 0xfc8   : > { %4134 = vmatmul.mubr.msk.bf16.vlgmr.msra.gmra.mxu1 %vm1201_vm3, %v2656_v20  ;;  %4140 = vmatmul.mubr.msk.bf16.vlgmr.msra.gmra.mxu0 %vm1201_vm3, %v2754_v22 }
 0xfc9   : > { %4144 = vmatpush3.bf16.xpose.msra.mxu1 %v2811_v32  ;;  %4145 = vmatprep.mubr.msk.bf16.mxu1 %vm4396_vm1, %v4395_v15 }
 0xfca   : > { %4155 = vmatprep.subr.bf16.mxu1 %v4395_v15  ;;  %4151 = vmatprep.mubr.msk.bf16.mxu0 %vm4396_vm1, %v4395_v15 }
 0xfd0   : > { %4146 = vmatmul.mubr.msk.bf16.vlgmr.msra.gmra.mxu1 %vm1201_vm3, %v2804_v33 }
 0xfd1   : > { %4157 = vmatprep.mubr.msk.bf16.mxu1 %vm4396_vm1, %v4395_v15 }
0x1080   : > { %v2699_v36 = vpop.f32.mrf.mxu0 }
0x1082   : > { %v4129_v38 = vpop.f32.mrf.mxu0 }
0x1084   : > { %v2702_v43 = vpop.f32.mrf.mxu0 }
0x1086   : > { %v4130_v44 = vpop.f32.mrf.mxu0 }
0x1088   : > { %v2747_v46 = vpop.f32.mrf.mxu1  ;;  %v2797_v47 = vpop.f32.mrf.mxu0 }
0x1089   : > { %v2853_v48 = vmul.f32 0.35355338, %v2797_v47  ;;  %v4270_v62 = vpack.i.bf16 %v2747_v46, %v2699_v36 }
0x108a   : > { %v4135_v49 = vpop.f32.mrf.mxu1  ;;  %v4141_v50 = vpop.f32.mrf.mxu0 }
0x108b   : > { %v2855_v51 = vsel %vm1201_vm3, %v2853_v48, -inf }
0x108c   : > { %2856 = vmax.xlane.f32.xlu0 %v2855_v51  ;;  %v2750_v52 = vpop.f32.mrf.mxu1  ;;  %v2800_v53 = vpop.f32.mrf.mxu0 }
0x108e   : > { %v4136_v54 = vpop.f32.mrf.mxu1  ;;  %v4142_v55 = vpop.f32.mrf.mxu0 }
0x1090   : > { %v2847_v56 = vpop.f32.mrf.mxu1 }
0x1091   : > { %v2854_v57 = vmul.f32 0.35355338, %v2847_v56 }
0x1092   : > { %v4147_v58 = vpop.f32.mrf.mxu1 }
0x1093   : > { %v2858_v59 = vsel %vm1201_vm3, %v2854_v57, -inf }
0x1094   : > { %2859 = vmax.xlane.f32.xlu1 %v2858_v59  ;;  %v2850_v60 = vpop.f32.mrf.mxu1 }
0x1096   : > { %v4148_v61 = vpop.f32.mrf.mxu1 }
0x10a5   : > { %2927 = vrot.lane.b32.xlu1 %v4716_v17, %s4403_s3 }
0x10a9   : > { %4246 = vrot.lane.b32.xlu1 %v4245_v31, %s4404_s2 }
0x10ad   : > { %4251 = vrot.lane.b32.xlu1 %v4250_v26, %s4405_s8  ;;  %s5204_s8 = sld [smem:[#allocation18_spill]] (!%p3815_p5) }
0x10b1   : > { %4261 = vrot.lane.b32.xlu1 %v4260_v30, %s4406_s21  ;;  %s5200_s21 = scalar_lea.vmem %s5150_s15, %s4540_s29 }
0x10b5   : > { %4271 = vrot.lane.b32.xlu1 %v4270_v62, %s4407_s22 }
0x1115   : > { %v2857_v63 = vpop.xlane.xlu0 %2856 }
0x1116   : > { %v2861_v17 = vsub.f32 %v2853_v48, %v2857_v63 }
0x1118   : > { %v2863_v0 = vmul.f32 1.442695, %v2861_v17 }
0x111a   : > { %4364 = vpow2.f32 %v2863_v0 }
0x111d   : > { %v2860_v1 = vpop.xlane.xlu1 %2859 }
0x111e   : > { %v2862_v25 = vsub.f32 %v2854_v57, %v2860_v1 }
0x1120   : > { %v2865_v29 = vmul.f32 1.442695, %v2862_v25 }
0x1121   : > { %v2928_v31 = vpop.permute.xlu1 %2927 }
0x1122   : > { %4366 = vpow2.f32 %v2865_v29  ;;  %v2933_v19 = vsel %vm1325_vm4, %v2928_v31, 0 }
0x1123   : > { %4156 = vmatpush3.bf16.msra.mxu1 %v2933_v19 }
0x1124   : > { %4173 = vmatprep.subr.bf16.mxu1 %v4395_v15 }
0x1125   : > { %v4247_v18 = vpop.permute.xlu1 %4246 }
0x1126   : > { %v4249_v32 = vunpack.i.h.bf16 %v4247_v18  ;;  %v4248_v33 = vunpack.i.l.bf16 %v4247_v18  ;;  %v4300_v18 = vld [vmem:[%s4600_s27 + $0x38] sm:$0xff]  }
0x1127   : > { %v4365_v23 = vpop.eup %4364 }
0x1128   : > { %v2867_v26 = vsel %vm1201_vm3, %v4365_v23, 0.0  ;;  %v3032_v48 = vsel %vm1201_vm3, %v4746_v39, %v4249_v32  ;;  %v3031_v49 = vsel %vm1201_vm3, %v4744_v35, %v4248_v33  ;;  %v4303_v32 = vld [vmem:[%s4600_s27 + $0x20] sm:$0xff]   ;;  %v4304_v33 = vld [vmem:[%s4600_s27 + $0x18] sm:$0xff]  }
0x1129   : > { %2868 = vadd.xlane.f32.xlu0 %v2867_v26  ;;  %v4252_v20 = vpop.permute.xlu1 %4251 }
0x112a   : > { %v4254_v36 = vunpack.i.h.bf16 %v4252_v20  ;;  %v4253_v38 = vunpack.i.l.bf16 %v4252_v20  ;;  %v4301_v20 = vld [vmem:[%s4600_s27 + $0x30] sm:$0xff]  }
0x112c   : > { %v3034_v50 = vsel %vm3033_vm5, %v3031_v49, %v4253_v38  ;;  %v3035_v51 = vsel %vm3033_vm5, %v3032_v48, %v4254_v36 }
0x112d   : > { %v4262_v43 = vpop.permute.xlu1 %4261 }
0x112e   : > { %v4264_v56 = vunpack.i.h.bf16 %v4262_v43  ;;  %v4263_v57 = vunpack.i.l.bf16 %v4262_v43 }
0x112f   : > { %v4367_v14 = vpop.eup %4366 }
0x1130   : > { %v2870_v27 = vsel %vm1201_vm3, %v4367_v14, 0.0 }
0x1131   : > { %2871 = vadd.xlane.f32.xlu0 %v2870_v27  ;;  %v4272_v58 = vpop.permute.xlu1 %4271 }
0x1132   : > { %v4274_v39 = vunpack.i.h.bf16 %v4272_v58  ;;  %v4273_v63 = vunpack.i.l.bf16 %v4272_v58 }
0x1147   : > { %2879 = vrot.lane.b32.xlu0 %v4714_v16, %s4403_s3  ;;  %s5199_s3 = scalar_lea.vmem %s5148_s13, %s4540_s29 }
0x114b   : > { %4256 = vrot.lane.b32.xlu0 %v4255_v24, %s4408_s20  ;;  %s5205_s20 = sld [smem:[#allocation19_spill]] (!%p3815_p5) }
0x114f   : > { %4266 = vrot.lane.b32.xlu0 %v4265_v40, %s4409_s28  ;;  %v4293_v40 = vld [vmem:[%s4573_s1 + $0x10] sm:$0xff]  }
0x11b2   : > { %v2869_v30 = vpop.xlane.xlu0 %2868 }
0x11b3   : > { %4368 = vrcp.f32 %v2869_v30  ;;  %v4380_v30 = vld [vmem:[#allocation2] sm:$0xff] }
0x11ba   : > { %v2872_v34 = vpop.xlane.xlu0 %2871 }
0x11bb   : > { %4370 = vrcp.f32 %v2872_v34 }
0x11be   : > { %v2880_v41 = vpop.permute.xlu0 %2879 }
0x11bf   : > { %v2885_v2 = vsel %vm1325_vm4, %v2880_v41, 0 }
0x11c0   : > { %v4369_v16 = vpop.eup %4368  ;;  %4150 = vmatpush3.bf16.msra.mxu0 %v2885_v2 }
0x11c1   : > { %v2875_v45 = vmul.f32 %v4369_v16, %v4365_v23  ;;  %4161 = vmatprep.subr.bf16.mxu0 %v4395_v15  ;;  %v3790_v23 = vld [vmem:[%s5197_s0] ss:$0 sm:$0xff] }
0x11c2   : > { %v4257_v22 = vpop.permute.xlu0 %4256 }
0x11c3   : > { %v2877_v13 = vpack.c.bf16 %v2875_v45, %v2875_v45  ;;  %v4259_v44 = vunpack.i.h.bf16 %v4257_v22  ;;  %v4258_v46 = vunpack.i.l.bf16 %v4257_v22  ;;  %v4302_v22 = vld [vmem:[%s4600_s27 + $0x28] sm:$0xff]  }
0x11c5   : > { %4152 = vmatmul.mubr.msk.bf16.vlgmr.msra.gmra.mxu0 %vm1201_vm3, %v2877_v13  ;;  %v3037_v52 = vsel %vm3036_vm6, %v3034_v50, %v4258_v46  ;;  %v3038_v53 = vsel %vm3036_vm6, %v3035_v51, %v4259_v44  ;;  %v4381_v13 = vld [vmem:[#allocation2 + $0x8] sm:$0xff]  ;;  %v3796_v50 = vld [vmem:[%s5198_s25] ss:$0 sm:$0xff] }
0x11c6   : > { %4169 = vmatprep.mubr.msk.bf16.mxu0 %vm4396_vm1, %v4395_v15  ;;  %4162 = vmatpush3.bf16.msra.mxu0 %v4292_v37  ;;  %v4267_v47 = vpop.permute.xlu0 %4266  ;;  %v3040_v59 = vsel %vm3039_vm7, %v3037_v52, %v4263_v57  ;;  %v3041_v60 = vsel %vm3039_vm7, %v3038_v53, %v4264_v56 }
0x11c7   : > { %4163 = vmatprep.subr.bf16.mxu0 %v4395_v15  ;;  %v4269_v54 = vunpack.i.h.bf16 %v4267_v47  ;;  %v4268_v55 = vunpack.i.l.bf16 %v4267_v47 }
0x11c8   : > { %v4371_v21 = vpop.eup %4370 }
0x11c9   : > { %v2876_v24 = vmul.f32 %v4371_v21, %v4367_v14  ;;  %v3043_v61 = vsel %vm3042_vm8, %v3040_v59, %v4268_v55  ;;  %v3044_v62 = vsel %vm3042_vm8, %v3041_v60, %v4269_v54  ;;  %v3797_v54 = vld [vmem:[%s5199_s3] ss:$0 sm:$0xff]  ;;  %v4305_v59 = vld [vmem:[%s4600_s27 + $0x10] sm:$0xff]   ;;  %v4306_v60 = vld [vmem:[%s4600_s27 + $0x8] sm:$0xff]  }
0x11ca   : > { %4164 = vmatpush3.bf16.msra.mxu0 %v4293_v40  ;;  %v3046_v1 = vsel %vm3045_vm9, %v3043_v61, %v4273_v63  ;;  %v3047_v25 = vsel %vm3045_vm9, %v3044_v62, %v4274_v39  ;;  %v4307_v61 = vld [vmem:[%s4600_s27] sm:$0xff]  }
0x11cb   : > { %v2878_v28 = vpack.c.bf16 %v2876_v24, %v2876_v24  ;;  %4165 = vmatprep.subr.bf16.mxu0 %v4395_v15  ;;  %v3798_v62 = vld [vmem:[%s5200_s21] ss:$0 sm:$0xff] }
0x11cd   : > { %4158 = vmatmul.mubr.msk.bf16.vlgmr.msra.gmra.mxu1 %vm1201_vm3, %v2878_v28 }
0x11ce   : > { %4181 = vmatprep.mubr.msk.bf16.mxu1 %vm4396_vm1, %v4395_v15  ;;  %4166 = vmatpush3.bf16.msra.mxu0 %v4294_v3 }
0x11cf   : > { %4167 = vmatprep.subr.bf16.mxu0 %v4395_v15 }
0x11d2   : > { %4168 = vmatpush3.bf16.msra.mxu0 %v4295_v4 }
0x11d3   : > { %4185 = vmatprep.subr.bf16.mxu0 %v4395_v15 }
0x1285   : > { %v2921_v5 = vpop.f32.mrf.mxu0 }
0x1287   : > { %v4153_v6 = vpop.f32.mrf.mxu0 }
0x1289   : > { %v2924_v7 = vpop.f32.mrf.mxu0 }
0x128b   : > { %v4154_v8 = vpop.f32.mrf.mxu0 }
0x128d   : > { %v2969_v9 = vpop.f32.mrf.mxu1 }
0x128e   : > { %v4275_v10 = vpack.i.bf16 %v2969_v9, %v2921_v5 }
0x128f   : > { %v4159_v11 = vpop.f32.mrf.mxu1 }
0x1290   : > { %4276 = vrot.lane.b32.xlu0 %v4275_v10, %s4410_s30  ;;  %v4296_v10 = vld [vmem:[%s4590_s23 + $0x18] sm:$0xff]   ;;  %v4297_v11 = vld [vmem:[%s4590_s23 + $0x10] sm:$0xff]  }
0x1291   : > { %v2972_v42 = vpop.f32.mrf.mxu1  ;;  %4174 = vmatpush3.bf16.msra.mxu1 %v4296_v10 }
0x1292   : > { %4175 = vmatprep.subr.bf16.mxu1 %v4395_v15  ;;  %v4298_v42 = vld [vmem:[%s4590_s23 + $0x8] sm:$0xff]  }
0x1293   : > { %v4160_v12 = vpop.f32.mrf.mxu1 }
0x1294   : > { %v4299_v12 = vld [vmem:[%s4590_s23] sm:$0xff]   ;;  %s5203_s23 = sld [smem:[#allocation17_spill]] (!%p3815_p5) }
0x1295   : > { %4176 = vmatpush3.bf16.msra.mxu1 %v4297_v11 }
0x1296   : > { %4177 = vmatprep.subr.bf16.mxu1 %v4395_v15 }
0x1299   : > { %4178 = vmatpush3.bf16.msra.mxu1 %v4298_v42 }
0x129a   : > { %4179 = vmatprep.subr.bf16.mxu1 %v4395_v15 }
0x129d   : > { %4180 = vmatpush3.bf16.msra.mxu1 %v4299_v12  ;;  %v3813_v12 = vld [vmem:[%s905_s4] ss:$0 sm:$0xff] }
0x1302   : > { %v4277_v35 = vpop.permute.xlu0 %4276 }
0x1303   : > { %v4279_v17 = vunpack.i.h.bf16 %v4277_v35  ;;  %v4278_v0 = vunpack.i.l.bf16 %v4277_v35 }
0x1305   : > { %v3050_v29 = vsel %vm3048_vm10, %v3047_v25, %v4279_v17  ;;  %v3049_v31 = vsel %vm3048_vm10, %v3046_v1, %v4278_v0 }
0x1306   : > { %v3059_v19 = vpack.c.bf16 %v3050_v29, %v3049_v31 }
0x1308   : > { %4170 = vmatmul.mubr.msk.bf16.vlgmr.msra.gmra.mxu0 %vm992_vm2, %v3059_v19 }
0x1309   : > { %4201 = vmatprep.mubr.msk.bf16.mxu0 %vm4396_vm1, %v4395_v15  ;;  %4186 = vmatpush3.bf16.msra.mxu0 %v4300_v18 }
0x130a   : > { %4187 = vmatprep.subr.bf16.mxu0 %v4395_v15 }
0x130d   : > { %4188 = vmatpush3.bf16.msra.mxu0 %v4301_v20  ;;  %v3814_v20 = vld [vmem:[%s908_s14] ss:$0 sm:$0xff] }
0x130e   : > { %4189 = vmatprep.subr.bf16.mxu0 %v4395_v15 }
0x1311   : > { %4190 = vmatpush3.bf16.msra.mxu0 %v4302_v22 }
0x1312   : > { %4191 = vmatprep.subr.bf16.mxu0 %v4395_v15 }
0x1315   : > { %4192 = vmatpush3.bf16.msra.mxu0 %v4303_v32 }
0x1316   : > { %4193 = vmatprep.subr.bf16.mxu0 %v4395_v15 }
0x1319   : > { %4194 = vmatpush3.bf16.msra.mxu0 %v4304_v33 }
0x131a   : > { %4195 = vmatprep.subr.bf16.mxu0 %v4395_v15 }
0x131d   : > { %4196 = vmatpush3.bf16.msra.mxu0 %v4305_v59 }
0x131e   : > { %4197 = vmatprep.subr.bf16.mxu0 %v4395_v15 }
0x1321   : > { %4198 = vmatpush3.bf16.msra.mxu0 %v4306_v60 }
0x1322   : > { %4199 = vmatprep.subr.bf16.mxu0 %v4395_v15  ;;  %v3804_v15 = vld [vmem:[%s902_s19] ss:$0 sm:$0xff] }
0x1325   : > { %4200 = vmatpush3.bf16.msra.mxu0 %v4307_v61 }
0x13c8   : > { %v3128_v26 = vpop.f32.mrf.mxu0 }
0x13c9   : > { %v3129_v14 = vadd.f32 %v3790_v23, %v3128_v26 }
0x13ca   : > { %v4171_v27 = vpop.f32.mrf.mxu0 }
0x13cb   : > { %v3135_v34 = vadd.f32 %v4380_v30, %v3129_v14 }
0x13cc   : > { %v3131_v41 = vpop.f32.mrf.mxu0 }
0x13cd   : > { %v3132_v2 = vadd.f32 %v3790_v23, %v3131_v41  ;;  %v3139_v16 = vsel %vm992_vm2, %v3135_v34, 0.0 }
0x13ce   : > { %3140 = vadd.xlane.f32.xlu1 %v3139_v16  ;;  %v4172_v45 = vpop.f32.mrf.mxu0 }
0x13cf   : > { %v3136_v21 = vadd.f32 %v4381_v13, %v3132_v2 }
0x13d1   : > { %v3142_v24 = vsel %vm992_vm2, %v3136_v21, 0.0 }
0x13d2   : > { %3143 = vadd.xlane.f32.xlu0 %v3142_v24 }
0x1457   : > { %v3141_v28 = vpop.xlane.xlu1 %3140 }
0x1458   : > { %v3146_v37 = vmul.f32 0.015625, %v3141_v28 }
0x145a   : > { %v3148_v40 = vsub.f32 %v3135_v34, %v3146_v37 }
0x145b   : > { %v3144_v3 = vpop.xlane.xlu0 %3143 }
0x145c   : > { %v3147_v4 = vmul.f32 0.015625, %v3144_v3  ;;  %v3150_v5 = vmul.f32 %v3148_v40, %v3148_v40 }
0x145e   : > { %v3149_v6 = vsub.f32 %v3136_v21, %v3147_v4  ;;  %v3152_v7 = vsel %vm992_vm2, %v3150_v5, 0.0 }
0x145f   : > { %3153 = vadd.xlane.f32.xlu0 %v3152_v7 }
0x1460   : > { %v3151_v8 = vmul.f32 %v3149_v6, %v3149_v6 }
0x1462   : > { %v3155_v9 = vsel %vm992_vm2, %v3151_v8, 0.0 }
0x1463   : > { %3156 = vadd.xlane.f32.xlu0 %v3155_v9 }
0x14e8   : > { %v3154_v36 = vpop.xlane.xlu0 %3153 }
0x14e9   : > { %v3158_v38 = vmul.f32 0.015625, %v3154_v36 }
0x14eb   : > { %v3160_v43 = vadd.f32 1e-05, %v3158_v38 }
0x14ec   : > { %v3157_v44 = vpop.xlane.xlu0 %3156 }
0x14ed   : > { %4372 = vrsqrt.f32 %v3160_v43  ;;  %v3159_v46 = vmul.f32 0.015625, %v3157_v44 }
0x14ef   : > { %v3161_v47 = vadd.f32 1e-05, %v3159_v46 }
0x14f1   : > { %4374 = vrsqrt.f32 %v3161_v47 }
0x14fa   : > { %v4373_v48 = vpop.eup %4372 }
0x14fb   : > { %v3164_v49 = vmul.f32 %v4373_v48, %v3148_v40 }
0x14fd   : > { %v3172_v53 = vmul.f32 %v3796_v50, %v3164_v49 }
0x14fe   : > { %v4375_v51 = vpop.eup %4374 }
0x14ff   : > { %v3165_v52 = vmul.f32 %v4375_v51, %v3149_v6  ;;  %v3180_v56 = vadd.f32 %v3797_v54, %v3172_v53 }
0x1501   : > { %v3173_v55 = vmul.f32 %v3796_v50, %v3165_v52 }
0x1503   : > { %v3181_v57 = vadd.f32 %v3797_v54, %v3173_v55 }
0x1505   : > { %v3190_v58 = vpack.c.bf16 %v3181_v57, %v3180_v56 }
0x1507   : > { %4182 = vmatmul.mubr.msk.bf16.vlgmr.msra.gmra.mxu1 %vm992_vm2, %v3190_v58 }
0x15c7   : > { %v3259_v39 = vpop.f32.mrf.mxu1 }
0x15c8   : > { %v3260_v35 = vadd.f32 %v3798_v62, %v3259_v39 }
0x15c9   : > { %v4183_v63 = vpop.f32.mrf.mxu1 }
0x15ca   : > { %v3266_v25 = vmax.f32 %v3260_v35, 0.0 }
0x15cb   : > { %v3262_v17 = vpop.f32.mrf.mxu1 }
0x15cc   : > { %v3263_v0 = vadd.f32 %v3798_v62, %v3262_v17 }
0x15cd   : > { %v4184_v1 = vpop.f32.mrf.mxu1 }
0x15ce   : > { %v3267_v29 = vmax.f32 %v3263_v0, 0.0 }
0x15d0   : > { %v3284_v31 = vpack.c.bf16 %v3267_v29, %v3266_v25 }
0x15d2   : > { %4202 = vmatmul.mubr.bf16.vlgmr.msra.gmra.mxu0 %v3284_v31 }
0x1692   : > { %v3374_v19 = vpop.f32.mrf.mxu0 }
0x1693   : > { %v3375_v23 = vadd.f32 %v3804_v15, %v3374_v19 }
0x1694   : > { %v4203_v26 = vpop.f32.mrf.mxu0 }
0x1695   : > { %v3381_v14 = vadd.f32 %v3375_v23, %v3180_v56 }
0x1696   : > { %v3377_v27 = vpop.f32.mrf.mxu0 }
0x1697   : > { %v3378_v30 = vadd.f32 %v3804_v15, %v3377_v27  ;;  %v3385_v34 = vsel %vm992_vm2, %v3381_v14, 0.0 }
0x1698   : > { %3386 = vadd.xlane.f32.xlu1 %v3385_v34  ;;  %v4204_v41 = vpop.f32.mrf.mxu0 }
0x1699   : > { %v3382_v2 = vadd.f32 %v3378_v30, %v3181_v57 }
0x169b   : > { %v3388_v16 = vsel %vm992_vm2, %v3382_v2, 0.0 }
0x169c   : > { %3389 = vadd.xlane.f32.xlu0 %v3388_v16 }
0x1721   : > { %v3387_v45 = vpop.xlane.xlu1 %3386 }
0x1722   : > { %v3391_v13 = vmul.f32 0.015625, %v3387_v45 }
0x1724   : > { %v3393_v21 = vsub.f32 %v3381_v14, %v3391_v13 }
0x1725   : > { %v3390_v24 = vpop.xlane.xlu0 %3389 }
0x1726   : > { %v3392_v28 = vmul.f32 0.015625, %v3390_v24  ;;  %v3395_v37 = vmul.f32 %v3393_v21, %v3393_v21 }
0x1728   : > { %v3394_v40 = vsub.f32 %v3382_v2, %v3392_v28  ;;  %v3397_v3 = vsel %vm992_vm2, %v3395_v37, 0.0 }
0x1729   : > { %3398 = vadd.xlane.f32.xlu1 %v3397_v3 }
0x172a   : > { %v3396_v4 = vmul.f32 %v3394_v40, %v3394_v40 }
0x172c   : > { %v3400_v5 = vsel %vm992_vm2, %v3396_v4, 0.0 }
0x172d   : > { %3401 = vadd.xlane.f32.xlu0 %v3400_v5 }
0x17b2   : > { %v3399_v6 = vpop.xlane.xlu1 %3398 }
0x17b3   : > { %v3403_v7 = vmul.f32 0.015625, %v3399_v6 }
0x17b5   : > { %v3405_v8 = vadd.f32 1e-05, %v3403_v7 }
0x17b6   : > { %v3402_v9 = vpop.xlane.xlu0 %3401 }
0x17b7   : > { %4376 = vrsqrt.f32 %v3405_v8  ;;  %v3404_v10 = vmul.f32 0.015625, %v3402_v9 }
0x17b9   : > { %v3406_v11 = vadd.f32 1e-05, %v3404_v10 }
0x17bb   : > { %4378 = vrsqrt.f32 %v3406_v11 }
0x17c4   : > { %v4377_v42 = vpop.eup %4376 }
0x17c5   : > { %v3409_v18 = vmul.f32 %v4377_v42, %v3393_v21 }
0x17c7   : > { %v3417_v22 = vmul.f32 %v3813_v12, %v3409_v18 }
0x17c8   : > { %v4379_v32 = vpop.eup %4378 }
0x17c9   : > { %v3425_v33 = vadd.f32 %v3814_v20, %v3417_v22  ;;  %v3410_v36 = vmul.f32 %v4379_v32, %v3394_v40 }
0x17cb   : > { %3427 = vst.msk [vmem:[#allocation2] sm:$0xff] %vm992_vm2, %v3425_v33  ;;  %v3418_v38 = vmul.f32 %v3813_v12, %v3410_v36  ;;  %3432 = sbr.rel (%p3815_p5) target bundleno = 6317 (0x18ad), region = 116 }
0x17cd   : > { %v3426_v43 = vadd.f32 %v3814_v20, %v3418_v38 }
0x17cf   : > { %3428 = vst.msk [vmem:[#allocation2 + $0x8] sm:$0xff] %vm992_vm2, %v3426_v43 }
0x17d0   : > { %v4382_v44 = vld [vmem:[%s5203_s23 + $0x18] sm:$0xff]   ;;  %v4411_v46 = vmov 0.0   ;;  %v4383_v47 = vld [vmem:[%s5203_s23 + $0x10] sm:$0xff]   ;;  %vm4412_vm11 = vmmov 0   ;;  %v3433_v48 = vsel %vm992_vm2, %v3425_v33, 0.0  ;;  %v3440_v50 = vsel %vm992_vm2, %v3426_v43, 0.0 }
0x17d1   : > { %4205 = vmatprep.subr.bf16.mxu0 %v4411_v46  ;;  %4213 = vmatprep.mubr.msk.bf16.mxu0 %vm4412_vm11, %v4411_v46  ;;  %v3434_v49 = vrot.slane %v3433_v48, 4  ;;  %v3441_v52 = vrot.slane %v3440_v50, 4  ;;  %v4384_v53 = vld [vmem:[%s5203_s23 + $0x8] sm:$0xff]   ;;  %v4385_v58 = vld [vmem:[%s5203_s23] sm:$0xff]   ;;  %vm3471_vm12 = vcmask 1041409   ;;  %vm3541_vm13 = vcmask 254976  }
0x17d2   : > { %4206 = vmatpush3.bf16.msra.mxu0 %v4382_v44  ;;  %v3816_v15 = vld [vmem:[%s5204_s8] ss:$0 sm:$0xff] }
0x17d3   : > { %4207 = vmatprep.subr.bf16.mxu0 %v4411_v46  ;;  %v3435_v51 = vadd.f32 %v3434_v49, %v3433_v48  ;;  %v3442_v55 = vadd.f32 %v3441_v52, %v3440_v50 }
0x17d5   : > { %v3436_v54 = vrot.slane %v3435_v51, 2  ;;  %v3443_v57 = vrot.slane %v3442_v55, 2 }
0x17d6   : > { %4208 = vmatpush3.bf16.msra.mxu0 %v4383_v47 }
0x17d7   : > { %4209 = vmatprep.subr.bf16.mxu0 %v4411_v46  ;;  %v3437_v56 = vadd.f32 %v3436_v54, %v3435_v51  ;;  %v3444_v60 = vadd.f32 %v3443_v57, %v3442_v55 }
0x17d9   : > { %v3438_v59 = vrot.slane %v3437_v56, 1  ;;  %v3445_v62 = vrot.slane %v3444_v60, 1 }
0x17da   : > { %4210 = vmatpush3.bf16.msra.mxu0 %v4384_v53 }
0x17db   : > { %4211 = vmatprep.subr.bf16.mxu0 %v4411_v46  ;;  %v3439_v61 = vadd.f32 %v3438_v59, %v3437_v56  ;;  %v3446_v39 = vadd.f32 %v3445_v62, %v3444_v60 }
0x17dd   : > { %v3448_v63 = vmul.f32 0.125, %v3439_v61  ;;  %v3449_v35 = vmul.f32 0.125, %v3446_v39 }
0x17de   : > { %4212 = vmatpush3.bf16.msra.mxu0 %v4385_v58 }
0x17df   : > { %v3458_v17 = vpack.c.bf16 %v3448_v63, %v3448_v63  ;;  %v3459_v0 = vpack.c.bf16 %v3449_v35, %v3449_v35 }
0x17e1   : > { %v3469_v1 = vunpack.c.l.b16 %v3458_v17  ;;  %v3470_v25 = vunpack.c.l.b16 %v3459_v0 }
0x17e3   : > { %v3472_v29 = vsel %vm3471_vm12, %v3470_v25, %v3469_v1 }
0x17e4   : > { %v3473_v31 = vpack.c.b16 %v3472_v29, %v3472_v29 }
0x17e6   : > { %4214 = vmatmul.mubr.msk.bf16.vlgmr.msra.gmra.mxu0 %vm992_vm2, %v3473_v31 }
0x18a6   : > { %v3535_v19 = vpop.f32.mrf.mxu0 }
0x18a7   : > { %v3536_v23 = vadd.f32 %v3816_v15, %v3535_v19 }
0x18a8   : > { %v4215_v26 = vpop.f32.mrf.mxu0 }
0x18a9   : > { %3542 = vst.msk [vmem:[%s5205_s20] sm:$0x3] %vm3541_vm13, %v3536_v23 }
0x18aa   : > { %v3538_v14 = vpop.f32.mrf.mxu0 }
0x18ac   : > { %v4216_v27 = vpop.f32.mrf.mxu0 }
0x18ad PF: > { %s5206_s27 = sld [smem:[#allocation3_spill]] }
0x18b3   : > { %s32_s3 = sadd.s32 1, %s5206_s27  }
0x18b4   : > { %p29_p6 = scmp.ge.s32.totalorder %s32_s3, 5  }
0x18b6   :  { %31 = sbr.rel (!%p29_p6) target bundleno = 15 (0xf), region = 187 }

</bundles_post_ra>
